<compile_context>
chip_gen: v5e
topology: v5e:2x2
jax: 0.10.0
libtpu: 0.0.40
codegen_flags: <defaults>
</compile_context>

<pallas_src>
import functools

import jax
import jax.numpy as jnp
import numpy as np
from jax.experimental import pallas as pl
from jax.experimental.pallas import tpu as pltpu

_VMEM = pltpu.MemorySpace.VMEM


# ------------------------------ fused kernel ----------------------------------

def _decoder_layer_kernel(
    x_ref, mem_ref,                                   # activations
    sa_wqkv_ref, sa_bqkv_ref, sa_wo_ref, sa_bo_ref,   # self-attention params
    ca_wq_ref, ca_bq_ref, ca_wkv_ref, ca_bkv_ref, ca_wo_ref, ca_bo_ref,  # cross
    w1_ref, b1_ref, w2_ref, b2_ref,                   # FFN params
    ln1_w_ref, ln1_b_ref, ln2_w_ref, ln2_b_ref, ln3_w_ref, ln3_b_ref,    # LNs
    o_ref,
    btD_ref, tbD_ref,                                 # VMEM scratch (tiny)
    *, B, T, S, num_heads, eps):
    D = x_ref.shape[-1]
    hd = D // num_heads
    f32, bf16 = jnp.float32, jnp.bfloat16

    x = x_ref[...]            # (B*T, D) f32, rows ordered b*T + t (b-major)
    mem16 = mem_ref[...]      # (T*S, D) bf16, rows ordered t*S + s (t-major)

    def add_layernorm(a, b, w, bias):                 # all f32 (PyTorch LN)
        z = a + b
        mu = jnp.mean(z, axis=-1, keepdims=True)
        zc = z - mu
        var = jnp.mean(zc * zc, axis=-1, keepdims=True)      # biased variance
        return zc * jax.lax.rsqrt(var + eps) * w + bias

    # Batched multi-head attention.  q3:(G,Lq,D), k3/v3:(G,Lk,D), f32, with the
    # 1/sqrt(hd) softmax scale already folded into the q projection.  Per-head
    # (hd-wide) contractions; head h's output is written to cat_ref[..., h*hd:]
    # which is exactly concat(heads) -> one output-projection matmul later.
    def mha_heads(q3, k3, v3, cat_ref):
        for h in range(num_heads):                    # static, small H
            sl = slice(h * hd, (h + 1) * hd)
            qh = q3[..., sl].astype(bf16)
            kh = k3[..., sl].astype(bf16)
            vh = v3[..., sl].astype(bf16)
            s = jnp.einsum('gqd,gkd->gqk', qh, kh,
                           preferred_element_type=f32)        # (G,Lq,Lk) f32
            m = jnp.max(s, axis=-1, keepdims=True)
            p = jnp.exp(s - m)
            denom = jnp.sum(p, axis=-1, keepdims=True)
            p = (p * pl.reciprocal(denom, approx=True)).astype(bf16)
            cat_ref[:, :, sl] = jnp.einsum('gqk,gkd->gqd', p, vh,
                                           preferred_element_type=f32)

    # ---------------- self-attention (batch = B, seq = T) + norm1 -------------
    qkv = jnp.dot(x.astype(bf16), sa_wqkv_ref[...],
                  preferred_element_type=f32) + sa_bqkv_ref[...]     # (B*T, 3D)
    mha_heads(qkv[:, 0 * D:1 * D].reshape(B, T, D),
              qkv[:, 1 * D:2 * D].reshape(B, T, D),
              qkv[:, 2 * D:3 * D].reshape(B, T, D),
              btD_ref)
    sa = jnp.dot(btD_ref[...].reshape(B * T, D).astype(bf16), sa_wo_ref[...],
                 preferred_element_type=f32) + sa_bo_ref[...]
    x = add_layernorm(x, sa, ln1_w_ref[...], ln1_b_ref[...])

    # -------- cross-attention (batch = T, q len = B, k len = S) + norm2 -------
    q_ca = jnp.dot(x.astype(bf16), ca_wq_ref[...],
                   preferred_element_type=f32) + ca_bq_ref[...]      # (B*T, D)
    kv = jnp.dot(mem16, ca_wkv_ref[...],
                 preferred_element_type=f32) + ca_bkv_ref[...]       # (T*S, 2D)

    # b-major (B,T,D) -> t-major (T,B,D) via VMEM scratch slot copies (static
    # stores/loads, pure data movement).  At production shapes put t on a grid
    # axis instead and this staging disappears entirely.
    btD_ref[...] = q_ca.reshape(B, T, D)
    for t in range(T):
        tbD_ref[t] = btD_ref[:, t, :]
    q_t3 = tbD_ref[...]                                              # (T, B, D)

    mha_heads(q_t3,
              kv[:, :D].reshape(T, S, D),
              kv[:, D:].reshape(T, S, D),
              tbD_ref)               # overwrites tbD_ref after q_t3 was loaded
    # t-major (T,B,D) -> b-major rows (B*T, D), again via scratch slot copies.
    for b in range(B):
        btD_ref[b] = tbD_ref[:, b, :]
    ca = jnp.dot(btD_ref[...].reshape(B * T, D).astype(bf16), ca_wo_ref[...],
                 preferred_element_type=f32) + ca_bo_ref[...]
    x = add_layernorm(x, ca, ln2_w_ref[...], ln2_b_ref[...])

    # ---------------- FFN + norm3 ---------------------------------------------
    # At production D/F, tile this over dim_ffn with a VMEM accumulator instead
    # of holding DxF, FxD and the (rows, F) activation whole (64 MiB on v7x).
    h1 = jnp.maximum(
        jnp.dot(x.astype(bf16), w1_ref[...], preferred_element_type=f32)
        + b1_ref[...], 0.0)
    ff = jnp.dot(h1.astype(bf16), w2_ref[...],
                 preferred_element_type=f32) + b2_ref[...]
    o_ref[...] = add_layernorm(x, ff, ln3_w_ref[...], ln3_b_ref[...])


# ------------------------------ host-side glue ---------------------------------

def prepare_params(p, num_heads):
    """One-time conversion of PyTorch-layout params into kernel layout:
    transposed bf16 matmul weights, concatenated QKV, (1, n) f32 biases, and the
    1/sqrt(hd) softmax scale folded into the q projection (weights AND bias,
    matching PyTorch which scales after the bias add)."""
    D = p['sa_out_w'].shape[0]
    hd = D // num_heads
    scale = float(hd) ** -0.5
    f32, bf16 = jnp.float32, jnp.bfloat16

    def row(v):
        return v.reshape(1, -1).astype(f32)

    # x @ in_w.T == x @ [Wq^T | Wk^T | Wv^T]; scale the q third.
    q_scale = jnp.concatenate([jnp.full((D,), scale, f32),
                               jnp.ones((2 * D,), f32)])
    sa_wqkv = (p['sa_in_w'].T.astype(f32) * q_scale[None, :]).astype(bf16)
    sa_bqkv = row(p['sa_in_b']) * q_scale[None, :]

    ca_wq = (p['ca_in_w'][:D].T.astype(f32) * scale).astype(bf16)
    ca_bq = row(p['ca_in_b'][:D]) * scale
    ca_wkv = p['ca_in_w'][D:].T.astype(bf16)          # (D, 2D) -> [k | v]
    ca_bkv = row(p['ca_in_b'][D:])

    return dict(
        sa_wqkv=sa_wqkv, sa_bqkv=sa_bqkv,
        sa_wo=p['sa_out_w'].T.astype(bf16), sa_bo=row(p['sa_out_b']),
        ca_wq=ca_wq, ca_bq=ca_bq, ca_wkv=ca_wkv, ca_bkv=ca_bkv,
        ca_wo=p['ca_out_w'].T.astype(bf16), ca_bo=row(p['ca_out_b']),
        w1=p['lin1_w'].T.astype(bf16), b1=row(p['lin1_b']),
        w2=p['lin2_w'].T.astype(bf16), b2=row(p['lin2_b']),
        ln1_w=row(p['ln1_w']), ln1_b=row(p['ln1_b']),
        ln2_w=row(p['ln2_w']), ln2_b=row(p['ln2_b']),
        ln3_w=row(p['ln3_w']), ln3_b=row(p['ln3_b']),
    )


def transformer_decoder_layer(tgt, memory, prep, num_heads, eps=1e-5):
    """Forward pass (eval mode, no masks, rpe=False) — one fused Pallas call."""
    B, T, D = tgt.shape
    S = memory.shape[0]
    assert memory.shape == (S, T, D)
    F = prep['w1'].shape[1]

    x2 = tgt.reshape(B * T, D).astype(jnp.float32)            # b-major rows
    # memory -> t-major token rows (t*S + s); host-side transpose is free glue.
    mem2 = jnp.transpose(memory, (1, 0, 2)).reshape(T * S, D).astype(jnp.bfloat16)

    args = (x2, mem2,
            prep['sa_wqkv'], prep['sa_bqkv'], prep['sa_wo'], prep['sa_bo'],
            prep['ca_wq'], prep['ca_bq'], prep['ca_wkv'], prep['ca_bkv'],
            prep['ca_wo'], prep['ca_bo'],
            prep['w1'], prep['b1'], prep['w2'], prep['b2'],
            prep['ln1_w'], prep['ln1_b'], prep['ln2_w'], prep['ln2_b'],
            prep['ln3_w'], prep['ln3_b'])

    n_tok, m_tok = B * T, S * T
    flops = (2 * n_tok * D * 3 * D            # self-attn qkv projection
             + 4 * B * T * T * D              # self-attn QK^T + PV (all heads)
             + 2 * n_tok * D * D              # self-attn out projection
             + 2 * n_tok * D * D              # cross-attn q projection
             + 2 * m_tok * D * 2 * D          # cross-attn kv projection
             + 4 * T * B * S * D              # cross-attn QK^T + PV (all heads)
             + 2 * n_tok * D * D              # cross-attn out projection
             + 4 * n_tok * D * F)             # FFN
    transcendentals = num_heads * (B * T * T + T * B * S) + 3 * n_tok
    bytes_accessed = (sum(int(a.size) * a.dtype.itemsize for a in args)
                      + n_tok * D * 4)

    out = pl.pallas_call(
        functools.partial(_decoder_layer_kernel,
                          B=B, T=T, S=S, num_heads=num_heads, eps=eps),
        out_shape=jax.ShapeDtypeStruct((B * T, D), jnp.float32),
        in_specs=[pl.BlockSpec(memory_space=_VMEM)] * len(args),
        out_specs=pl.BlockSpec(memory_space=_VMEM),
        scratch_shapes=[pltpu.VMEM((B, T, D), jnp.float32),
                        pltpu.VMEM((T, B, D), jnp.float32)],
        compiler_params=pltpu.CompilerParams(
            vmem_limit_bytes=32 * 1024 * 1024),
        cost_estimate=pl.CostEstimate(flops=int(flops),
                                      transcendentals=int(transcendentals),
                                      bytes_accessed=int(bytes_accessed)),
    )(*args)
    return out.reshape(B, T, D)


# --------------------------- parameter init (PyTorch layout) --------------------

def init_params(key, d_model, dim_ffn):
    D, F = d_model, dim_ffn
    ks = jax.random.split(key, 12)

    def w(k, shape, scale):
        return (scale * jax.random.normal(k, shape)).astype(jnp.float32)

    p = {
        'sa_in_w':  w(ks[0], (3 * D, D), D ** -0.5),
        'sa_in_b':  w(ks[1], (3 * D,), 0.02),
        'sa_out_w': w(ks[2], (D, D), D ** -0.5),
        'sa_out_b': w(ks[3], (D,), 0.02),
        'ca_in_w':  w(ks[4], (3 * D, D), D ** -0.5),
        'ca_in_b':  w(ks[5], (3 * D,), 0.02),
        'ca_out_w': w(ks[6], (D, D), D ** -0.5),
        'ca_out_b': w(ks[7], (D,), 0.02),
        'lin1_w':   w(ks[8], (F, D), D ** -0.5),
        'lin1_b':   w(ks[9], (F,), 0.02),
        'lin2_w':   w(ks[10], (D, F), F ** -0.5),
        'lin2_b':   w(ks[11], (D,), 0.02),
    }
    for n in ('ln1', 'ln2', 'ln3'):
        p[n + '_w'] = jnp.ones((D,), jnp.float32)
        p[n + '_b'] = jnp.zeros((D,), jnp.float32)
    return p


# ---------------------------- pure-JAX reference --------------------------------

def _mha_ref(q, kv, in_w, in_b, out_w, out_b, H):
    B, L, D = q.shape
    S = kv.shape[1]
    hd = D // H
    qp = q @ in_w[:D].T + in_b[:D]
    kp = kv @ in_w[D:2 * D].T + in_b[D:2 * D]
    vp = kv @ in_w[2 * D:].T + in_b[2 * D:]
    qh = qp.reshape(B, L, H, hd).transpose(0, 2, 1, 3)
    kh = kp.reshape(B, S, H, hd).transpose(0, 2, 1, 3)
    vh = vp.reshape(B, S, H, hd).transpose(0, 2, 1, 3)
    s = (qh * hd ** -0.5) @ kh.transpose(0, 1, 3, 2)
    pr = jax.nn.softmax(s, axis=-1)
    o = (pr @ vh).transpose(0, 2, 1, 3).reshape(B, L, D)
    return o @ out_w.T + out_b


def _ln_ref(x, w, b, eps):
    mu = x.mean(-1, keepdims=True)
    var = ((x - mu) ** 2).mean(-1, keepdims=True)
    return (x - mu) / jnp.sqrt(var + eps) * w + b


def _decoder_ref(tgt, memory, p, H, eps=1e-5):
    x = tgt
    x = _ln_ref(x + _mha_ref(x, x, p['sa_in_w'], p['sa_in_b'],
                             p['sa_out_w'], p['sa_out_b'], H),
                p['ln1_w'], p['ln1_b'], eps)
    xq = jnp.transpose(x, (1, 0, 2))
    mem = jnp.transpose(memory, (1, 0, 2))
    ca = jnp.transpose(_mha_ref(xq, mem, p['ca_in_w'], p['ca_in_b'],
                                p['ca_out_w'], p['ca_out_b'], H), (1, 0, 2))
    x = _ln_ref(x + ca, p['ln2_w'], p['ln2_b'], eps)
    h = jnp.maximum(x @ p['lin1_w'].T + p['lin1_b'], 0.0)
    ff = h @ p['lin2_w'].T + p['lin2_b']
    x = _ln_ref(x + ff, p['ln3_w'], p['ln3_b'], eps)
    return x


# --------------------------------- main ------------------------------------------

if __name__ == "__main__":
    B, T, S, D, H, F = 2, 8, 8, 32, 4, 64   # d_model=32, num_heads=4, dim_ffn=64
    key = jax.random.PRNGKey(0)
    k_tgt, k_mem, k_par = jax.random.split(key, 3)
    tgt = jax.random.normal(k_tgt, (B, T, D), jnp.float32)     # (batch, tgt_seq, d)
    memory = jax.random.normal(k_mem, (S, T, D), jnp.float32)  # (src_seq, batch, d)
    params = init_params(k_par, D, F)
    prep = prepare_params(params, H)     # one-time: transpose / concat / bf16 cast

    out = transformer_decoder_layer(tgt, memory, prep, H)
    out = jax.block_until_ready(out)
    assert out.shape == (B, T, D)

    # f32 'highest'-precision reference (the kernel's dots are bf16-operand /
    # f32-accumulate, so the precision context does not touch the kernel).
    with jax.default_matmul_precision("highest"):
        ref = _decoder_ref(tgt, memory, params, H)
    ref = jax.block_until_ready(ref)

    if not np.allclose(np.asarray(out), np.asarray(ref), atol=5e-2, rtol=5e-2):
        raise AssertionError(
            "mismatch vs reference: max |diff| = %e"
            % float(jnp.max(jnp.abs(out - ref))))
    print("KERNEL_OK")
</pallas_src>

<mosaic_0001>
module attributes {stable_mosaic.version = 11 : i64} {
  func.func @_decoder_layer_kernel(%arg0: memref<16x32xf32, #tpu.memory_space<vmem>>, %arg1: memref<64x32xbf16, #tpu.memory_space<vmem>>, %arg2: memref<32x96xbf16, #tpu.memory_space<vmem>>, %arg3: memref<1x96xf32, #tpu.memory_space<vmem>>, %arg4: memref<32x32xbf16, #tpu.memory_space<vmem>>, %arg5: memref<1x32xf32, #tpu.memory_space<vmem>>, %arg6: memref<32x32xbf16, #tpu.memory_space<vmem>>, %arg7: memref<1x32xf32, #tpu.memory_space<vmem>>, %arg8: memref<32x64xbf16, #tpu.memory_space<vmem>>, %arg9: memref<1x64xf32, #tpu.memory_space<vmem>>, %arg10: memref<32x32xbf16, #tpu.memory_space<vmem>>, %arg11: memref<1x32xf32, #tpu.memory_space<vmem>>, %arg12: memref<32x64xbf16, #tpu.memory_space<vmem>>, %arg13: memref<1x64xf32, #tpu.memory_space<vmem>>, %arg14: memref<64x32xbf16, #tpu.memory_space<vmem>>, %arg15: memref<1x32xf32, #tpu.memory_space<vmem>>, %arg16: memref<1x32xf32, #tpu.memory_space<vmem>>, %arg17: memref<1x32xf32, #tpu.memory_space<vmem>>, %arg18: memref<1x32xf32, #tpu.memory_space<vmem>>, %arg19: memref<1x32xf32, #tpu.memory_space<vmem>>, %arg20: memref<1x32xf32, #tpu.memory_space<vmem>>, %arg21: memref<1x32xf32, #tpu.memory_space<vmem>>, %arg22: memref<16x32xf32, #tpu.memory_space<vmem>>, %arg23: memref<2x8x32xf32, #tpu.memory_space<vmem>>, %arg24: memref<8x2x32xf32, #tpu.memory_space<vmem>>) attributes {dimension_semantics = [], scalar_prefetch = 0 : i64, scratch_operands = 2 : i64, tpu.core_type = #tpu.core_type<tc>} {
    %c0 = arith.constant 0 : index
    %c0_0 = arith.constant 0 : index
    %0 = vector.load %arg0[%c0, %c0_0] : memref<16x32xf32, #tpu.memory_space<vmem>>, vector<16x32xf32>
    %c0_1 = arith.constant 0 : index
    %c0_2 = arith.constant 0 : index
    %1 = vector.load %arg1[%c0_1, %c0_2] : memref<64x32xbf16, #tpu.memory_space<vmem>>, vector<64x32xbf16>
    %2 = arith.truncf %0 : vector<16x32xf32> to vector<16x32xbf16>
    %c0_3 = arith.constant 0 : index
    %c0_4 = arith.constant 0 : index
    %3 = vector.load %arg2[%c0_3, %c0_4] : memref<32x96xbf16, #tpu.memory_space<vmem>>, vector<32x96xbf16>
    %cst = arith.constant dense<0.000000e+00> : vector<16x96xf32>
    %4 = tpu.matmul %2, %3, %cst {dimension_numbers = #tpu.dot_dimension_numbers<[1], [0], [0], [1], [0, 0, 1, 1], [], []>} : vector<16x32xbf16>, vector<32x96xbf16>, vector<16x96xf32> -> vector<16x96xf32>
    %c0_5 = arith.constant 0 : index
    %c0_6 = arith.constant 0 : index
    %5 = vector.load %arg3[%c0_5, %c0_6] : memref<1x96xf32, #tpu.memory_space<vmem>>, vector<1x96xf32>
    %6 = vector.broadcast %5 : vector<1x96xf32> to vector<16x96xf32>
    %7 = arith.addf %4, %6 : vector<16x96xf32>
    %8 = vector.extract_strided_slice %7 {offsets = [0, 0], sizes = [16, 32], strides = [1, 1]} : vector<16x96xf32> to vector<16x32xf32>
    %9 = vector.shape_cast %8 : vector<16x32xf32> to vector<2x8x32xf32>
    %10 = vector.extract_strided_slice %7 {offsets = [0, 32], sizes = [16, 32], strides = [1, 1]} : vector<16x96xf32> to vector<16x32xf32>
    %11 = vector.shape_cast %10 : vector<16x32xf32> to vector<2x8x32xf32>
    %12 = vector.extract_strided_slice %7 {offsets = [0, 64], sizes = [16, 32], strides = [1, 1]} : vector<16x96xf32> to vector<16x32xf32>
    %13 = vector.shape_cast %12 : vector<16x32xf32> to vector<2x8x32xf32>
    %14 = vector.extract_strided_slice %9 {offsets = [0, 0, 0], sizes = [2, 8, 8], strides = [1, 1, 1]} : vector<2x8x32xf32> to vector<2x8x8xf32>
    %15 = arith.truncf %14 : vector<2x8x8xf32> to vector<2x8x8xbf16>
    %16 = vector.extract_strided_slice %11 {offsets = [0, 0, 0], sizes = [2, 8, 8], strides = [1, 1, 1]} : vector<2x8x32xf32> to vector<2x8x8xf32>
    %17 = arith.truncf %16 : vector<2x8x8xf32> to vector<2x8x8xbf16>
    %18 = vector.extract_strided_slice %13 {offsets = [0, 0, 0], sizes = [2, 8, 8], strides = [1, 1, 1]} : vector<2x8x32xf32> to vector<2x8x8xf32>
    %19 = arith.truncf %18 : vector<2x8x8xf32> to vector<2x8x8xbf16>
    "tpu.trace_start"() <{level = 10 : i32, message = "gqd,gkd->gqk"}> : () -> ()
    %cst_7 = arith.constant dense<0.000000e+00> : vector<2x8x8xf32>
    %20 = tpu.matmul %15, %17, %cst_7 {dimension_numbers = #tpu.dot_dimension_numbers<[2], [2], [1], [1], [0, 0, 0, 1, 1, 1], [0], [0]>} : vector<2x8x8xbf16>, vector<2x8x8xbf16>, vector<2x8x8xf32> -> vector<2x8x8xf32>
    "tpu.trace_stop"() : () -> ()
    %cst_8 = arith.constant dense<0xFF800000> : vector<2x8xf32>
    %21 = vector.multi_reduction <maximumf>, %20, %cst_8 [2] : vector<2x8x8xf32> to vector<2x8xf32>
    %22 = vector.shape_cast %21 : vector<2x8xf32> to vector<2x8x1xf32>
    %23 = vector.broadcast %22 : vector<2x8x1xf32> to vector<2x8x8xf32>
    %24 = arith.subf %20, %23 : vector<2x8x8xf32>
    %25 = math.exp %24 : vector<2x8x8xf32>
    %cst_9 = arith.constant dense<0.000000e+00> : vector<2x8xf32>
    %26 = vector.multi_reduction <add>, %25, %cst_9 [2] : vector<2x8x8xf32> to vector<2x8xf32>
    %27 = vector.shape_cast %26 : vector<2x8xf32> to vector<2x8x1xf32>
    %28 = tpu.reciprocal %27 {approx = true} : vector<2x8x1xf32> -> vector<2x8x1xf32>
    %29 = vector.broadcast %28 : vector<2x8x1xf32> to vector<2x8x8xf32>
    %30 = arith.mulf %25, %29 : vector<2x8x8xf32>
    %31 = arith.truncf %30 : vector<2x8x8xf32> to vector<2x8x8xbf16>
    "tpu.trace_start"() <{level = 10 : i32, message = "gqk,gkd->gqd"}> : () -> ()
    %cst_10 = arith.constant dense<0.000000e+00> : vector<2x8x8xf32>
    %32 = tpu.matmul %31, %19, %cst_10 {dimension_numbers = #tpu.dot_dimension_numbers<[2], [1], [1], [2], [0, 0, 0, 1, 1, 2], [0], [0]>} : vector<2x8x8xbf16>, vector<2x8x8xbf16>, vector<2x8x8xf32> -> vector<2x8x8xf32>
    "tpu.trace_stop"() : () -> ()
    %c0_11 = arith.constant 0 : index
    %c0_12 = arith.constant 0 : index
    %c0_13 = arith.constant 0 : index
    %33 = vector.load %arg23[%c0_11, %c0_12, %c0_13] : memref<2x8x32xf32, #tpu.memory_space<vmem>>, vector<2x8x8xf32>
    tpu.vector_store %arg23[%c0_11, %c0_12, %c0_13], %32 {strides = array<i32>} : memref<2x8x32xf32, #tpu.memory_space<vmem>>, vector<2x8x8xf32>,
    %34 = vector.extract_strided_slice %9 {offsets = [0, 0, 8], sizes = [2, 8, 8], strides = [1, 1, 1]} : vector<2x8x32xf32> to vector<2x8x8xf32>
    %35 = arith.truncf %34 : vector<2x8x8xf32> to vector<2x8x8xbf16>
    %36 = vector.extract_strided_slice %11 {offsets = [0, 0, 8], sizes = [2, 8, 8], strides = [1, 1, 1]} : vector<2x8x32xf32> to vector<2x8x8xf32>
    %37 = arith.truncf %36 : vector<2x8x8xf32> to vector<2x8x8xbf16>
    %38 = vector.extract_strided_slice %13 {offsets = [0, 0, 8], sizes = [2, 8, 8], strides = [1, 1, 1]} : vector<2x8x32xf32> to vector<2x8x8xf32>
    %39 = arith.truncf %38 : vector<2x8x8xf32> to vector<2x8x8xbf16>
    "tpu.trace_start"() <{level = 10 : i32, message = "gqd,gkd->gqk"}> : () -> ()
    %cst_14 = arith.constant dense<0.000000e+00> : vector<2x8x8xf32>
    %40 = tpu.matmul %35, %37, %cst_14 {dimension_numbers = #tpu.dot_dimension_numbers<[2], [2], [1], [1], [0, 0, 0, 1, 1, 1], [0], [0]>} : vector<2x8x8xbf16>, vector<2x8x8xbf16>, vector<2x8x8xf32> -> vector<2x8x8xf32>
    "tpu.trace_stop"() : () -> ()
    %cst_15 = arith.constant dense<0xFF800000> : vector<2x8xf32>
    %41 = vector.multi_reduction <maximumf>, %40, %cst_15 [2] : vector<2x8x8xf32> to vector<2x8xf32>
    %42 = vector.shape_cast %41 : vector<2x8xf32> to vector<2x8x1xf32>
    %43 = vector.broadcast %42 : vector<2x8x1xf32> to vector<2x8x8xf32>
    %44 = arith.subf %40, %43 : vector<2x8x8xf32>
    %45 = math.exp %44 : vector<2x8x8xf32>
    %cst_16 = arith.constant dense<0.000000e+00> : vector<2x8xf32>
    %46 = vector.multi_reduction <add>, %45, %cst_16 [2] : vector<2x8x8xf32> to vector<2x8xf32>
    %47 = vector.shape_cast %46 : vector<2x8xf32> to vector<2x8x1xf32>
    %48 = tpu.reciprocal %47 {approx = true} : vector<2x8x1xf32> -> vector<2x8x1xf32>
    %49 = vector.broadcast %48 : vector<2x8x1xf32> to vector<2x8x8xf32>
    %50 = arith.mulf %45, %49 : vector<2x8x8xf32>
    %51 = arith.truncf %50 : vector<2x8x8xf32> to vector<2x8x8xbf16>
    "tpu.trace_start"() <{level = 10 : i32, message = "gqk,gkd->gqd"}> : () -> ()
    %cst_17 = arith.constant dense<0.000000e+00> : vector<2x8x8xf32>
    %52 = tpu.matmul %51, %39, %cst_17 {dimension_numbers = #tpu.dot_dimension_numbers<[2], [1], [1], [2], [0, 0, 0, 1, 1, 2], [0], [0]>} : vector<2x8x8xbf16>, vector<2x8x8xbf16>, vector<2x8x8xf32> -> vector<2x8x8xf32>
    "tpu.trace_stop"() : () -> ()
    %c0_18 = arith.constant 0 : index
    %c0_19 = arith.constant 0 : index
    %c8 = arith.constant 8 : index
    %53 = vector.load %arg23[%c0_18, %c0_19, %c8] : memref<2x8x32xf32, #tpu.memory_space<vmem>>, vector<2x8x8xf32>
    tpu.vector_store %arg23[%c0_18, %c0_19, %c8], %52 {strides = array<i32>} : memref<2x8x32xf32, #tpu.memory_space<vmem>>, vector<2x8x8xf32>,
    %54 = vector.extract_strided_slice %9 {offsets = [0, 0, 16], sizes = [2, 8, 8], strides = [1, 1, 1]} : vector<2x8x32xf32> to vector<2x8x8xf32>
    %55 = arith.truncf %54 : vector<2x8x8xf32> to vector<2x8x8xbf16>
    %56 = vector.extract_strided_slice %11 {offsets = [0, 0, 16], sizes = [2, 8, 8], strides = [1, 1, 1]} : vector<2x8x32xf32> to vector<2x8x8xf32>
    %57 = arith.truncf %56 : vector<2x8x8xf32> to vector<2x8x8xbf16>
    %58 = vector.extract_strided_slice %13 {offsets = [0, 0, 16], sizes = [2, 8, 8], strides = [1, 1, 1]} : vector<2x8x32xf32> to vector<2x8x8xf32>
    %59 = arith.truncf %58 : vector<2x8x8xf32> to vector<2x8x8xbf16>
    "tpu.trace_start"() <{level = 10 : i32, message = "gqd,gkd->gqk"}> : () -> ()
    %cst_20 = arith.constant dense<0.000000e+00> : vector<2x8x8xf32>
    %60 = tpu.matmul %55, %57, %cst_20 {dimension_numbers = #tpu.dot_dimension_numbers<[2], [2], [1], [1], [0, 0, 0, 1, 1, 1], [0], [0]>} : vector<2x8x8xbf16>, vector<2x8x8xbf16>, vector<2x8x8xf32> -> vector<2x8x8xf32>
    "tpu.trace_stop"() : () -> ()
    %cst_21 = arith.constant dense<0xFF800000> : vector<2x8xf32>
    %61 = vector.multi_reduction <maximumf>, %60, %cst_21 [2] : vector<2x8x8xf32> to vector<2x8xf32>
    %62 = vector.shape_cast %61 : vector<2x8xf32> to vector<2x8x1xf32>
    %63 = vector.broadcast %62 : vector<2x8x1xf32> to vector<2x8x8xf32>
    %64 = arith.subf %60, %63 : vector<2x8x8xf32>
    %65 = math.exp %64 : vector<2x8x8xf32>
    %cst_22 = arith.constant dense<0.000000e+00> : vector<2x8xf32>
    %66 = vector.multi_reduction <add>, %65, %cst_22 [2] : vector<2x8x8xf32> to vector<2x8xf32>
    %67 = vector.shape_cast %66 : vector<2x8xf32> to vector<2x8x1xf32>
    %68 = tpu.reciprocal %67 {approx = true} : vector<2x8x1xf32> -> vector<2x8x1xf32>
    %69 = vector.broadcast %68 : vector<2x8x1xf32> to vector<2x8x8xf32>
    %70 = arith.mulf %65, %69 : vector<2x8x8xf32>
    %71 = arith.truncf %70 : vector<2x8x8xf32> to vector<2x8x8xbf16>
    "tpu.trace_start"() <{level = 10 : i32, message = "gqk,gkd->gqd"}> : () -> ()
    %cst_23 = arith.constant dense<0.000000e+00> : vector<2x8x8xf32>
    %72 = tpu.matmul %71, %59, %cst_23 {dimension_numbers = #tpu.dot_dimension_numbers<[2], [1], [1], [2], [0, 0, 0, 1, 1, 2], [0], [0]>} : vector<2x8x8xbf16>, vector<2x8x8xbf16>, vector<2x8x8xf32> -> vector<2x8x8xf32>
    "tpu.trace_stop"() : () -> ()
    %c0_24 = arith.constant 0 : index
    %c0_25 = arith.constant 0 : index
    %c16 = arith.constant 16 : index
    %73 = vector.load %arg23[%c0_24, %c0_25, %c16] : memref<2x8x32xf32, #tpu.memory_space<vmem>>, vector<2x8x8xf32>
    tpu.vector_store %arg23[%c0_24, %c0_25, %c16], %72 {strides = array<i32>} : memref<2x8x32xf32, #tpu.memory_space<vmem>>, vector<2x8x8xf32>,
    %74 = vector.extract_strided_slice %9 {offsets = [0, 0, 24], sizes = [2, 8, 8], strides = [1, 1, 1]} : vector<2x8x32xf32> to vector<2x8x8xf32>
    %75 = arith.truncf %74 : vector<2x8x8xf32> to vector<2x8x8xbf16>
    %76 = vector.extract_strided_slice %11 {offsets = [0, 0, 24], sizes = [2, 8, 8], strides = [1, 1, 1]} : vector<2x8x32xf32> to vector<2x8x8xf32>
    %77 = arith.truncf %76 : vector<2x8x8xf32> to vector<2x8x8xbf16>
    %78 = vector.extract_strided_slice %13 {offsets = [0, 0, 24], sizes = [2, 8, 8], strides = [1, 1, 1]} : vector<2x8x32xf32> to vector<2x8x8xf32>
    %79 = arith.truncf %78 : vector<2x8x8xf32> to vector<2x8x8xbf16>
    "tpu.trace_start"() <{level = 10 : i32, message = "gqd,gkd->gqk"}> : () -> ()
    %cst_26 = arith.constant dense<0.000000e+00> : vector<2x8x8xf32>
    %80 = tpu.matmul %75, %77, %cst_26 {dimension_numbers = #tpu.dot_dimension_numbers<[2], [2], [1], [1], [0, 0, 0, 1, 1, 1], [0], [0]>} : vector<2x8x8xbf16>, vector<2x8x8xbf16>, vector<2x8x8xf32> -> vector<2x8x8xf32>
    "tpu.trace_stop"() : () -> ()
    %cst_27 = arith.constant dense<0xFF800000> : vector<2x8xf32>
    %81 = vector.multi_reduction <maximumf>, %80, %cst_27 [2] : vector<2x8x8xf32> to vector<2x8xf32>
    %82 = vector.shape_cast %81 : vector<2x8xf32> to vector<2x8x1xf32>
    %83 = vector.broadcast %82 : vector<2x8x1xf32> to vector<2x8x8xf32>
    %84 = arith.subf %80, %83 : vector<2x8x8xf32>
    %85 = math.exp %84 : vector<2x8x8xf32>
    %cst_28 = arith.constant dense<0.000000e+00> : vector<2x8xf32>
    %86 = vector.multi_reduction <add>, %85, %cst_28 [2] : vector<2x8x8xf32> to vector<2x8xf32>
    %87 = vector.shape_cast %86 : vector<2x8xf32> to vector<2x8x1xf32>
    %88 = tpu.reciprocal %87 {approx = true} : vector<2x8x1xf32> -> vector<2x8x1xf32>
    %89 = vector.broadcast %88 : vector<2x8x1xf32> to vector<2x8x8xf32>
    %90 = arith.mulf %85, %89 : vector<2x8x8xf32>
    %91 = arith.truncf %90 : vector<2x8x8xf32> to vector<2x8x8xbf16>
    "tpu.trace_start"() <{level = 10 : i32, message = "gqk,gkd->gqd"}> : () -> ()
    %cst_29 = arith.constant dense<0.000000e+00> : vector<2x8x8xf32>
    %92 = tpu.matmul %91, %79, %cst_29 {dimension_numbers = #tpu.dot_dimension_numbers<[2], [1], [1], [2], [0, 0, 0, 1, 1, 2], [0], [0]>} : vector<2x8x8xbf16>, vector<2x8x8xbf16>, vector<2x8x8xf32> -> vector<2x8x8xf32>
    "tpu.trace_stop"() : () -> ()
    %c0_30 = arith.constant 0 : index
    %c0_31 = arith.constant 0 : index
    %c24 = arith.constant 24 : index
    %93 = vector.load %arg23[%c0_30, %c0_31, %c24] : memref<2x8x32xf32, #tpu.memory_space<vmem>>, vector<2x8x8xf32>
    tpu.vector_store %arg23[%c0_30, %c0_31, %c24], %92 {strides = array<i32>} : memref<2x8x32xf32, #tpu.memory_space<vmem>>, vector<2x8x8xf32>,
    %c0_32 = arith.constant 0 : index
    %c0_33 = arith.constant 0 : index
    %c0_34 = arith.constant 0 : index
    %94 = vector.load %arg23[%c0_32, %c0_33, %c0_34] : memref<2x8x32xf32, #tpu.memory_space<vmem>>, vector<2x8x32xf32>
    %95 = vector.shape_cast %94 : vector<2x8x32xf32> to vector<16x32xf32>
    %96 = arith.truncf %95 : vector<16x32xf32> to vector<16x32xbf16>
    %c0_35 = arith.constant 0 : index
    %c0_36 = arith.constant 0 : index
    %97 = vector.load %arg4[%c0_35, %c0_36] : memref<32x32xbf16, #tpu.memory_space<vmem>>, vector<32x32xbf16>
    %cst_37 = arith.constant dense<0.000000e+00> : vector<16x32xf32>
    %98 = tpu.matmul %96, %97, %cst_37 {dimension_numbers = #tpu.dot_dimension_numbers<[1], [0], [0], [1], [0, 0, 1, 1], [], []>} : vector<16x32xbf16>, vector<32x32xbf16>, vector<16x32xf32> -> vector<16x32xf32>
    %c0_38 = arith.constant 0 : index
    %c0_39 = arith.constant 0 : index
    %99 = vector.load %arg5[%c0_38, %c0_39] : memref<1x32xf32, #tpu.memory_space<vmem>>, vector<1x32xf32>
    %100 = vector.broadcast %99 : vector<1x32xf32> to vector<16x32xf32>
    %101 = arith.addf %98, %100 : vector<16x32xf32>
    %c0_40 = arith.constant 0 : index
    %c0_41 = arith.constant 0 : index
    %102 = vector.load %arg16[%c0_40, %c0_41] : memref<1x32xf32, #tpu.memory_space<vmem>>, vector<1x32xf32>
    %c0_42 = arith.constant 0 : index
    %c0_43 = arith.constant 0 : index
    %103 = vector.load %arg17[%c0_42, %c0_43] : memref<1x32xf32, #tpu.memory_space<vmem>>, vector<1x32xf32>
    %104 = arith.addf %0, %101 : vector<16x32xf32>
    %cst_44 = arith.constant dense<0.000000e+00> : vector<16xf32>
    %105 = vector.multi_reduction <add>, %104, %cst_44 [1] : vector<16x32xf32> to vector<16xf32>
    %106 = vector.shape_cast %105 : vector<16xf32> to vector<16x1xf32>
    %cst_45 = arith.constant 3.200000e+01 : f32
    %107 = vector.broadcast %cst_45 : f32 to vector<16x1xf32>
    %108 = arith.divf %106, %107 : vector<16x1xf32>
    %109 = vector.broadcast %108 : vector<16x1xf32> to vector<16x32xf32>
    %110 = arith.subf %104, %109 : vector<16x32xf32>
    %111 = arith.mulf %110, %110 : vector<16x32xf32>
    %cst_46 = arith.constant dense<0.000000e+00> : vector<16xf32>
    %112 = vector.multi_reduction <add>, %111, %cst_46 [1] : vector<16x32xf32> to vector<16xf32>
    %113 = vector.shape_cast %112 : vector<16xf32> to vector<16x1xf32>
    %cst_47 = arith.constant 3.200000e+01 : f32
    %114 = vector.broadcast %cst_47 : f32 to vector<16x1xf32>
    %115 = arith.divf %113, %114 : vector<16x1xf32>
    %cst_48 = arith.constant 9.99999974E-6 : f32
    %116 = vector.broadcast %cst_48 : f32 to vector<16x1xf32>
    %117 = arith.addf %115, %116 : vector<16x1xf32>
    %118 = math.rsqrt %117 : vector<16x1xf32>
    %119 = vector.broadcast %118 : vector<16x1xf32> to vector<16x32xf32>
    %120 = arith.mulf %110, %119 : vector<16x32xf32>
    %121 = vector.broadcast %102 : vector<1x32xf32> to vector<16x32xf32>
    %122 = arith.mulf %120, %121 : vector<16x32xf32>
    %123 = vector.broadcast %103 : vector<1x32xf32> to vector<16x32xf32>
    %124 = arith.addf %122, %123 : vector<16x32xf32>
    %125 = arith.truncf %124 : vector<16x32xf32> to vector<16x32xbf16>
    %c0_49 = arith.constant 0 : index
    %c0_50 = arith.constant 0 : index
    %126 = vector.load %arg6[%c0_49, %c0_50] : memref<32x32xbf16, #tpu.memory_space<vmem>>, vector<32x32xbf16>
    %cst_51 = arith.constant dense<0.000000e+00> : vector<16x32xf32>
    %127 = tpu.matmul %125, %126, %cst_51 {dimension_numbers = #tpu.dot_dimension_numbers<[1], [0], [0], [1], [0, 0, 1, 1], [], []>} : vector<16x32xbf16>, vector<32x32xbf16>, vector<16x32xf32> -> vector<16x32xf32>
    %c0_52 = arith.constant 0 : index
    %c0_53 = arith.constant 0 : index
    %128 = vector.load %arg7[%c0_52, %c0_53] : memref<1x32xf32, #tpu.memory_space<vmem>>, vector<1x32xf32>
    %129 = vector.broadcast %128 : vector<1x32xf32> to vector<16x32xf32>
    %130 = arith.addf %127, %129 : vector<16x32xf32>
    %c0_54 = arith.constant 0 : index
    %c0_55 = arith.constant 0 : index
    %131 = vector.load %arg8[%c0_54, %c0_55] : memref<32x64xbf16, #tpu.memory_space<vmem>>, vector<32x64xbf16>
    %cst_56 = arith.constant dense<0.000000e+00> : vector<64x64xf32>
    %132 = tpu.matmul %1, %131, %cst_56 {dimension_numbers = #tpu.dot_dimension_numbers<[1], [0], [0], [1], [0, 0, 1, 1], [], []>} : vector<64x32xbf16>, vector<32x64xbf16>, vector<64x64xf32> -> vector<64x64xf32>
    %c0_57 = arith.constant 0 : index
    %c0_58 = arith.constant 0 : index
    %133 = vector.load %arg9[%c0_57, %c0_58] : memref<1x64xf32, #tpu.memory_space<vmem>>, vector<1x64xf32>
    %134 = vector.broadcast %133 : vector<1x64xf32> to vector<64x64xf32>
    %135 = arith.addf %132, %134 : vector<64x64xf32>
    %136 = vector.shape_cast %130 : vector<16x32xf32> to vector<2x8x32xf32>
    %c0_59 = arith.constant 0 : index
    %c0_60 = arith.constant 0 : index
    %c0_61 = arith.constant 0 : index
    %137 = vector.load %arg23[%c0_59, %c0_60, %c0_61] : memref<2x8x32xf32, #tpu.memory_space<vmem>>, vector<2x8x32xf32>
    tpu.vector_store %arg23[%c0_59, %c0_60, %c0_61], %136 {strides = array<i32>} : memref<2x8x32xf32, #tpu.memory_space<vmem>>, vector<2x8x32xf32>,
    %c0_62 = arith.constant 0 : index
    %c0_63 = arith.constant 0 : index
    %c0_64 = arith.constant 0 : index
    %138 = vector.load %arg23[%c0_62, %c0_63, %c0_64] : memref<2x8x32xf32, #tpu.memory_space<vmem>>, vector<2x1x32xf32>
    %139 = vector.shape_cast %138 : vector<2x1x32xf32> to vector<2x32xf32>
    %c0_65 = arith.constant 0 : index
    %c0_66 = arith.constant 0 : index
    %c0_67 = arith.constant 0 : index
    %140 = vector.load %arg24[%c0_65, %c0_66, %c0_67] : memref<8x2x32xf32, #tpu.memory_space<vmem>>, vector<1x2x32xf32>
    %141 = vector.shape_cast %140 : vector<1x2x32xf32> to vector<2x32xf32>
    %142 = vector.shape_cast %139 : vector<2x32xf32> to vector<1x2x32xf32>
    tpu.vector_store %arg24[%c0_65, %c0_66, %c0_67], %142 {strides = array<i32>} : memref<8x2x32xf32, #tpu.memory_space<vmem>>, vector<1x2x32xf32>,
    %c0_68 = arith.constant 0 : index
    %c1 = arith.constant 1 : index
    %c0_69 = arith.constant 0 : index
    %143 = vector.load %arg23[%c0_68, %c1, %c0_69] : memref<2x8x32xf32, #tpu.memory_space<vmem>>, vector<2x1x32xf32>
    %144 = vector.shape_cast %143 : vector<2x1x32xf32> to vector<2x32xf32>
    %c1_70 = arith.constant 1 : index
    %c0_71 = arith.constant 0 : index
    %c0_72 = arith.constant 0 : index
    %145 = vector.load %arg24[%c1_70, %c0_71, %c0_72] : memref<8x2x32xf32, #tpu.memory_space<vmem>>, vector<1x2x32xf32>
    %146 = vector.shape_cast %145 : vector<1x2x32xf32> to vector<2x32xf32>
    %147 = vector.shape_cast %144 : vector<2x32xf32> to vector<1x2x32xf32>
    tpu.vector_store %arg24[%c1_70, %c0_71, %c0_72], %147 {strides = array<i32>} : memref<8x2x32xf32, #tpu.memory_space<vmem>>, vector<1x2x32xf32>,
    %c0_73 = arith.constant 0 : index
    %c2 = arith.constant 2 : index
    %c0_74 = arith.constant 0 : index
    %148 = vector.load %arg23[%c0_73, %c2, %c0_74] : memref<2x8x32xf32, #tpu.memory_space<vmem>>, vector<2x1x32xf32>
    %149 = vector.shape_cast %148 : vector<2x1x32xf32> to vector<2x32xf32>
    %c2_75 = arith.constant 2 : index
    %c0_76 = arith.constant 0 : index
    %c0_77 = arith.constant 0 : index
    %150 = vector.load %arg24[%c2_75, %c0_76, %c0_77] : memref<8x2x32xf32, #tpu.memory_space<vmem>>, vector<1x2x32xf32>
    %151 = vector.shape_cast %150 : vector<1x2x32xf32> to vector<2x32xf32>
    %152 = vector.shape_cast %149 : vector<2x32xf32> to vector<1x2x32xf32>
    tpu.vector_store %arg24[%c2_75, %c0_76, %c0_77], %152 {strides = array<i32>} : memref<8x2x32xf32, #tpu.memory_space<vmem>>, vector<1x2x32xf32>,
    %c0_78 = arith.constant 0 : index
    %c3 = arith.constant 3 : index
    %c0_79 = arith.constant 0 : index
    %153 = vector.load %arg23[%c0_78, %c3, %c0_79] : memref<2x8x32xf32, #tpu.memory_space<vmem>>, vector<2x1x32xf32>
    %154 = vector.shape_cast %153 : vector<2x1x32xf32> to vector<2x32xf32>
    %c3_80 = arith.constant 3 : index
    %c0_81 = arith.constant 0 : index
    %c0_82 = arith.constant 0 : index
    %155 = vector.load %arg24[%c3_80, %c0_81, %c0_82] : memref<8x2x32xf32, #tpu.memory_space<vmem>>, vector<1x2x32xf32>
    %156 = vector.shape_cast %155 : vector<1x2x32xf32> to vector<2x32xf32>
    %157 = vector.shape_cast %154 : vector<2x32xf32> to vector<1x2x32xf32>
    tpu.vector_store %arg24[%c3_80, %c0_81, %c0_82], %157 {strides = array<i32>} : memref<8x2x32xf32, #tpu.memory_space<vmem>>, vector<1x2x32xf32>,
    %c0_83 = arith.constant 0 : index
    %c4 = arith.constant 4 : index
    %c0_84 = arith.constant 0 : index
    %158 = vector.load %arg23[%c0_83, %c4, %c0_84] : memref<2x8x32xf32, #tpu.memory_space<vmem>>, vector<2x1x32xf32>
    %159 = vector.shape_cast %158 : vector<2x1x32xf32> to vector<2x32xf32>
    %c4_85 = arith.constant 4 : index
    %c0_86 = arith.constant 0 : index
    %c0_87 = arith.constant 0 : index
    %160 = vector.load %arg24[%c4_85, %c0_86, %c0_87] : memref<8x2x32xf32, #tpu.memory_space<vmem>>, vector<1x2x32xf32>
    %161 = vector.shape_cast %160 : vector<1x2x32xf32> to vector<2x32xf32>
    %162 = vector.shape_cast %159 : vector<2x32xf32> to vector<1x2x32xf32>
    tpu.vector_store %arg24[%c4_85, %c0_86, %c0_87], %162 {strides = array<i32>} : memref<8x2x32xf32, #tpu.memory_space<vmem>>, vector<1x2x32xf32>,
    %c0_88 = arith.constant 0 : index
    %c5 = arith.constant 5 : index
    %c0_89 = arith.constant 0 : index
    %163 = vector.load %arg23[%c0_88, %c5, %c0_89] : memref<2x8x32xf32, #tpu.memory_space<vmem>>, vector<2x1x32xf32>
    %164 = vector.shape_cast %163 : vector<2x1x32xf32> to vector<2x32xf32>
    %c5_90 = arith.constant 5 : index
    %c0_91 = arith.constant 0 : index
    %c0_92 = arith.constant 0 : index
    %165 = vector.load %arg24[%c5_90, %c0_91, %c0_92] : memref<8x2x32xf32, #tpu.memory_space<vmem>>, vector<1x2x32xf32>
    %166 = vector.shape_cast %165 : vector<1x2x32xf32> to vector<2x32xf32>
    %167 = vector.shape_cast %164 : vector<2x32xf32> to vector<1x2x32xf32>
    tpu.vector_store %arg24[%c5_90, %c0_91, %c0_92], %167 {strides = array<i32>} : memref<8x2x32xf32, #tpu.memory_space<vmem>>, vector<1x2x32xf32>,
    %c0_93 = arith.constant 0 : index
    %c6 = arith.constant 6 : index
    %c0_94 = arith.constant 0 : index
    %168 = vector.load %arg23[%c0_93, %c6, %c0_94] : memref<2x8x32xf32, #tpu.memory_space<vmem>>, vector<2x1x32xf32>
    %169 = vector.shape_cast %168 : vector<2x1x32xf32> to vector<2x32xf32>
    %c6_95 = arith.constant 6 : index
    %c0_96 = arith.constant 0 : index
    %c0_97 = arith.constant 0 : index
    %170 = vector.load %arg24[%c6_95, %c0_96, %c0_97] : memref<8x2x32xf32, #tpu.memory_space<vmem>>, vector<1x2x32xf32>
    %171 = vector.shape_cast %170 : vector<1x2x32xf32> to vector<2x32xf32>
    %172 = vector.shape_cast %169 : vector<2x32xf32> to vector<1x2x32xf32>
    tpu.vector_store %arg24[%c6_95, %c0_96, %c0_97], %172 {strides = array<i32>} : memref<8x2x32xf32, #tpu.memory_space<vmem>>, vector<1x2x32xf32>,
    %c0_98 = arith.constant 0 : index
    %c7 = arith.constant 7 : index
    %c0_99 = arith.constant 0 : index
    %173 = vector.load %arg23[%c0_98, %c7, %c0_99] : memref<2x8x32xf32, #tpu.memory_space<vmem>>, vector<2x1x32xf32>
    %174 = vector.shape_cast %173 : vector<2x1x32xf32> to vector<2x32xf32>
    %c7_100 = arith.constant 7 : index
    %c0_101 = arith.constant 0 : index
    %c0_102 = arith.constant 0 : index
    %175 = vector.load %arg24[%c7_100, %c0_101, %c0_102] : memref<8x2x32xf32, #tpu.memory_space<vmem>>, vector<1x2x32xf32>
    %176 = vector.shape_cast %175 : vector<1x2x32xf32> to vector<2x32xf32>
    %177 = vector.shape_cast %174 : vector<2x32xf32> to vector<1x2x32xf32>
    tpu.vector_store %arg24[%c7_100, %c0_101, %c0_102], %177 {strides = array<i32>} : memref<8x2x32xf32, #tpu.memory_space<vmem>>, vector<1x2x32xf32>,
    %c0_103 = arith.constant 0 : index
    %c0_104 = arith.constant 0 : index
    %c0_105 = arith.constant 0 : index
    %178 = vector.load %arg24[%c0_103, %c0_104, %c0_105] : memref<8x2x32xf32, #tpu.memory_space<vmem>>, vector<8x2x32xf32>
    %179 = vector.extract_strided_slice %135 {offsets = [0, 0], sizes = [64, 32], strides = [1, 1]} : vector<64x64xf32> to vector<64x32xf32>
    %180 = vector.shape_cast %179 : vector<64x32xf32> to vector<8x8x32xf32>
    %181 = vector.extract_strided_slice %135 {offsets = [0, 32], sizes = [64, 32], strides = [1, 1]} : vector<64x64xf32> to vector<64x32xf32>
    %182 = vector.shape_cast %181 : vector<64x32xf32> to vector<8x8x32xf32>
    %183 = vector.extract_strided_slice %178 {offsets = [0, 0, 0], sizes = [8, 2, 8], strides = [1, 1, 1]} : vector<8x2x32xf32> to vector<8x2x8xf32>
    %184 = arith.truncf %183 : vector<8x2x8xf32> to vector<8x2x8xbf16>
    %185 = vector.extract_strided_slice %180 {offsets = [0, 0, 0], sizes = [8, 8, 8], strides = [1, 1, 1]} : vector<8x8x32xf32> to vector<8x8x8xf32>
    %186 = arith.truncf %185 : vector<8x8x8xf32> to vector<8x8x8xbf16>
    %187 = vector.extract_strided_slice %182 {offsets = [0, 0, 0], sizes = [8, 8, 8], strides = [1, 1, 1]} : vector<8x8x32xf32> to vector<8x8x8xf32>
    %188 = arith.truncf %187 : vector<8x8x8xf32> to vector<8x8x8xbf16>
    "tpu.trace_start"() <{level = 10 : i32, message = "gqd,gkd->gqk"}> : () -> ()
    %cst_106 = arith.constant dense<0.000000e+00> : vector<8x2x8xf32>
    %189 = tpu.matmul %184, %186, %cst_106 {dimension_numbers = #tpu.dot_dimension_numbers<[2], [2], [1], [1], [0, 0, 0, 1, 1, 1], [0], [0]>} : vector<8x2x8xbf16>, vector<8x8x8xbf16>, vector<8x2x8xf32> -> vector<8x2x8xf32>
    "tpu.trace_stop"() : () -> ()
    %cst_107 = arith.constant dense<0xFF800000> : vector<8x2xf32>
    %190 = vector.multi_reduction <maximumf>, %189, %cst_107 [2] : vector<8x2x8xf32> to vector<8x2xf32>
    %191 = vector.shape_cast %190 : vector<8x2xf32> to vector<8x2x1xf32>
    %192 = vector.broadcast %191 : vector<8x2x1xf32> to vector<8x2x8xf32>
    %193 = arith.subf %189, %192 : vector<8x2x8xf32>
    %194 = math.exp %193 : vector<8x2x8xf32>
    %cst_108 = arith.constant dense<0.000000e+00> : vector<8x2xf32>
    %195 = vector.multi_reduction <add>, %194, %cst_108 [2] : vector<8x2x8xf32> to vector<8x2xf32>
    %196 = vector.shape_cast %195 : vector<8x2xf32> to vector<8x2x1xf32>
    %197 = tpu.reciprocal %196 {approx = true} : vector<8x2x1xf32> -> vector<8x2x1xf32>
    %198 = vector.broadcast %197 : vector<8x2x1xf32> to vector<8x2x8xf32>
    %199 = arith.mulf %194, %198 : vector<8x2x8xf32>
    %200 = arith.truncf %199 : vector<8x2x8xf32> to vector<8x2x8xbf16>
    "tpu.trace_start"() <{level = 10 : i32, message = "gqk,gkd->gqd"}> : () -> ()
    %cst_109 = arith.constant dense<0.000000e+00> : vector<8x2x8xf32>
    %201 = tpu.matmul %200, %188, %cst_109 {dimension_numbers = #tpu.dot_dimension_numbers<[2], [1], [1], [2], [0, 0, 0, 1, 1, 2], [0], [0]>} : vector<8x2x8xbf16>, vector<8x8x8xbf16>, vector<8x2x8xf32> -> vector<8x2x8xf32>
    "tpu.trace_stop"() : () -> ()
    %c0_110 = arith.constant 0 : index
    %c0_111 = arith.constant 0 : index
    %c0_112 = arith.constant 0 : index
    %202 = vector.load %arg24[%c0_110, %c0_111, %c0_112] : memref<8x2x32xf32, #tpu.memory_space<vmem>>, vector<8x2x8xf32>
    tpu.vector_store %arg24[%c0_110, %c0_111, %c0_112], %201 {strides = array<i32>} : memref<8x2x32xf32, #tpu.memory_space<vmem>>, vector<8x2x8xf32>,
    %203 = vector.extract_strided_slice %178 {offsets = [0, 0, 8], sizes = [8, 2, 8], strides = [1, 1, 1]} : vector<8x2x32xf32> to vector<8x2x8xf32>
    %204 = arith.truncf %203 : vector<8x2x8xf32> to vector<8x2x8xbf16>
    %205 = vector.extract_strided_slice %180 {offsets = [0, 0, 8], sizes = [8, 8, 8], strides = [1, 1, 1]} : vector<8x8x32xf32> to vector<8x8x8xf32>
    %206 = arith.truncf %205 : vector<8x8x8xf32> to vector<8x8x8xbf16>
    %207 = vector.extract_strided_slice %182 {offsets = [0, 0, 8], sizes = [8, 8, 8], strides = [1, 1, 1]} : vector<8x8x32xf32> to vector<8x8x8xf32>
    %208 = arith.truncf %207 : vector<8x8x8xf32> to vector<8x8x8xbf16>
    "tpu.trace_start"() <{level = 10 : i32, message = "gqd,gkd->gqk"}> : () -> ()
    %cst_113 = arith.constant dense<0.000000e+00> : vector<8x2x8xf32>
    %209 = tpu.matmul %204, %206, %cst_113 {dimension_numbers = #tpu.dot_dimension_numbers<[2], [2], [1], [1], [0, 0, 0, 1, 1, 1], [0], [0]>} : vector<8x2x8xbf16>, vector<8x8x8xbf16>, vector<8x2x8xf32> -> vector<8x2x8xf32>
    "tpu.trace_stop"() : () -> ()
    %cst_114 = arith.constant dense<0xFF800000> : vector<8x2xf32>
    %210 = vector.multi_reduction <maximumf>, %209, %cst_114 [2] : vector<8x2x8xf32> to vector<8x2xf32>
    %211 = vector.shape_cast %210 : vector<8x2xf32> to vector<8x2x1xf32>
    %212 = vector.broadcast %211 : vector<8x2x1xf32> to vector<8x2x8xf32>
    %213 = arith.subf %209, %212 : vector<8x2x8xf32>
    %214 = math.exp %213 : vector<8x2x8xf32>
    %cst_115 = arith.constant dense<0.000000e+00> : vector<8x2xf32>
    %215 = vector.multi_reduction <add>, %214, %cst_115 [2] : vector<8x2x8xf32> to vector<8x2xf32>
    %216 = vector.shape_cast %215 : vector<8x2xf32> to vector<8x2x1xf32>
    %217 = tpu.reciprocal %216 {approx = true} : vector<8x2x1xf32> -> vector<8x2x1xf32>
    %218 = vector.broadcast %217 : vector<8x2x1xf32> to vector<8x2x8xf32>
    %219 = arith.mulf %214, %218 : vector<8x2x8xf32>
    %220 = arith.truncf %219 : vector<8x2x8xf32> to vector<8x2x8xbf16>
    "tpu.trace_start"() <{level = 10 : i32, message = "gqk,gkd->gqd"}> : () -> ()
    %cst_116 = arith.constant dense<0.000000e+00> : vector<8x2x8xf32>
    %221 = tpu.matmul %220, %208, %cst_116 {dimension_numbers = #tpu.dot_dimension_numbers<[2], [1], [1], [2], [0, 0, 0, 1, 1, 2], [0], [0]>} : vector<8x2x8xbf16>, vector<8x8x8xbf16>, vector<8x2x8xf32> -> vector<8x2x8xf32>
    "tpu.trace_stop"() : () -> ()
    %c0_117 = arith.constant 0 : index
    %c0_118 = arith.constant 0 : index
    %c8_119 = arith.constant 8 : index
    %222 = vector.load %arg24[%c0_117, %c0_118, %c8_119] : memref<8x2x32xf32, #tpu.memory_space<vmem>>, vector<8x2x8xf32>
    tpu.vector_store %arg24[%c0_117, %c0_118, %c8_119], %221 {strides = array<i32>} : memref<8x2x32xf32, #tpu.memory_space<vmem>>, vector<8x2x8xf32>,
    %223 = vector.extract_strided_slice %178 {offsets = [0, 0, 16], sizes = [8, 2, 8], strides = [1, 1, 1]} : vector<8x2x32xf32> to vector<8x2x8xf32>
    %224 = arith.truncf %223 : vector<8x2x8xf32> to vector<8x2x8xbf16>
    %225 = vector.extract_strided_slice %180 {offsets = [0, 0, 16], sizes = [8, 8, 8], strides = [1, 1, 1]} : vector<8x8x32xf32> to vector<8x8x8xf32>
    %226 = arith.truncf %225 : vector<8x8x8xf32> to vector<8x8x8xbf16>
    %227 = vector.extract_strided_slice %182 {offsets = [0, 0, 16], sizes = [8, 8, 8], strides = [1, 1, 1]} : vector<8x8x32xf32> to vector<8x8x8xf32>
    %228 = arith.truncf %227 : vector<8x8x8xf32> to vector<8x8x8xbf16>
    "tpu.trace_start"() <{level = 10 : i32, message = "gqd,gkd->gqk"}> : () -> ()
    %cst_120 = arith.constant dense<0.000000e+00> : vector<8x2x8xf32>
    %229 = tpu.matmul %224, %226, %cst_120 {dimension_numbers = #tpu.dot_dimension_numbers<[2], [2], [1], [1], [0, 0, 0, 1, 1, 1], [0], [0]>} : vector<8x2x8xbf16>, vector<8x8x8xbf16>, vector<8x2x8xf32> -> vector<8x2x8xf32>
    "tpu.trace_stop"() : () -> ()
    %cst_121 = arith.constant dense<0xFF800000> : vector<8x2xf32>
    %230 = vector.multi_reduction <maximumf>, %229, %cst_121 [2] : vector<8x2x8xf32> to vector<8x2xf32>
    %231 = vector.shape_cast %230 : vector<8x2xf32> to vector<8x2x1xf32>
    %232 = vector.broadcast %231 : vector<8x2x1xf32> to vector<8x2x8xf32>
    %233 = arith.subf %229, %232 : vector<8x2x8xf32>
    %234 = math.exp %233 : vector<8x2x8xf32>
    %cst_122 = arith.constant dense<0.000000e+00> : vector<8x2xf32>
    %235 = vector.multi_reduction <add>, %234, %cst_122 [2] : vector<8x2x8xf32> to vector<8x2xf32>
    %236 = vector.shape_cast %235 : vector<8x2xf32> to vector<8x2x1xf32>
    %237 = tpu.reciprocal %236 {approx = true} : vector<8x2x1xf32> -> vector<8x2x1xf32>
    %238 = vector.broadcast %237 : vector<8x2x1xf32> to vector<8x2x8xf32>
    %239 = arith.mulf %234, %238 : vector<8x2x8xf32>
    %240 = arith.truncf %239 : vector<8x2x8xf32> to vector<8x2x8xbf16>
    "tpu.trace_start"() <{level = 10 : i32, message = "gqk,gkd->gqd"}> : () -> ()
    %cst_123 = arith.constant dense<0.000000e+00> : vector<8x2x8xf32>
    %241 = tpu.matmul %240, %228, %cst_123 {dimension_numbers = #tpu.dot_dimension_numbers<[2], [1], [1], [2], [0, 0, 0, 1, 1, 2], [0], [0]>} : vector<8x2x8xbf16>, vector<8x8x8xbf16>, vector<8x2x8xf32> -> vector<8x2x8xf32>
    "tpu.trace_stop"() : () -> ()
    %c0_124 = arith.constant 0 : index
    %c0_125 = arith.constant 0 : index
    %c16_126 = arith.constant 16 : index
    %242 = vector.load %arg24[%c0_124, %c0_125, %c16_126] : memref<8x2x32xf32, #tpu.memory_space<vmem>>, vector<8x2x8xf32>
    tpu.vector_store %arg24[%c0_124, %c0_125, %c16_126], %241 {strides = array<i32>} : memref<8x2x32xf32, #tpu.memory_space<vmem>>, vector<8x2x8xf32>,
    %243 = vector.extract_strided_slice %178 {offsets = [0, 0, 24], sizes = [8, 2, 8], strides = [1, 1, 1]} : vector<8x2x32xf32> to vector<8x2x8xf32>
    %244 = arith.truncf %243 : vector<8x2x8xf32> to vector<8x2x8xbf16>
    %245 = vector.extract_strided_slice %180 {offsets = [0, 0, 24], sizes = [8, 8, 8], strides = [1, 1, 1]} : vector<8x8x32xf32> to vector<8x8x8xf32>
    %246 = arith.truncf %245 : vector<8x8x8xf32> to vector<8x8x8xbf16>
    %247 = vector.extract_strided_slice %182 {offsets = [0, 0, 24], sizes = [8, 8, 8], strides = [1, 1, 1]} : vector<8x8x32xf32> to vector<8x8x8xf32>
    %248 = arith.truncf %247 : vector<8x8x8xf32> to vector<8x8x8xbf16>
    "tpu.trace_start"() <{level = 10 : i32, message = "gqd,gkd->gqk"}> : () -> ()
    %cst_127 = arith.constant dense<0.000000e+00> : vector<8x2x8xf32>
    %249 = tpu.matmul %244, %246, %cst_127 {dimension_numbers = #tpu.dot_dimension_numbers<[2], [2], [1], [1], [0, 0, 0, 1, 1, 1], [0], [0]>} : vector<8x2x8xbf16>, vector<8x8x8xbf16>, vector<8x2x8xf32> -> vector<8x2x8xf32>
    "tpu.trace_stop"() : () -> ()
    %cst_128 = arith.constant dense<0xFF800000> : vector<8x2xf32>
    %250 = vector.multi_reduction <maximumf>, %249, %cst_128 [2] : vector<8x2x8xf32> to vector<8x2xf32>
    %251 = vector.shape_cast %250 : vector<8x2xf32> to vector<8x2x1xf32>
    %252 = vector.broadcast %251 : vector<8x2x1xf32> to vector<8x2x8xf32>
    %253 = arith.subf %249, %252 : vector<8x2x8xf32>
    %254 = math.exp %253 : vector<8x2x8xf32>
    %cst_129 = arith.constant dense<0.000000e+00> : vector<8x2xf32>
    %255 = vector.multi_reduction <add>, %254, %cst_129 [2] : vector<8x2x8xf32> to vector<8x2xf32>
    %256 = vector.shape_cast %255 : vector<8x2xf32> to vector<8x2x1xf32>
    %257 = tpu.reciprocal %256 {approx = true} : vector<8x2x1xf32> -> vector<8x2x1xf32>
    %258 = vector.broadcast %257 : vector<8x2x1xf32> to vector<8x2x8xf32>
    %259 = arith.mulf %254, %258 : vector<8x2x8xf32>
    %260 = arith.truncf %259 : vector<8x2x8xf32> to vector<8x2x8xbf16>
    "tpu.trace_start"() <{level = 10 : i32, message = "gqk,gkd->gqd"}> : () -> ()
    %cst_130 = arith.constant dense<0.000000e+00> : vector<8x2x8xf32>
    %261 = tpu.matmul %260, %248, %cst_130 {dimension_numbers = #tpu.dot_dimension_numbers<[2], [1], [1], [2], [0, 0, 0, 1, 1, 2], [0], [0]>} : vector<8x2x8xbf16>, vector<8x8x8xbf16>, vector<8x2x8xf32> -> vector<8x2x8xf32>
    "tpu.trace_stop"() : () -> ()
    %c0_131 = arith.constant 0 : index
    %c0_132 = arith.constant 0 : index
    %c24_133 = arith.constant 24 : index
    %262 = vector.load %arg24[%c0_131, %c0_132, %c24_133] : memref<8x2x32xf32, #tpu.memory_space<vmem>>, vector<8x2x8xf32>
    tpu.vector_store %arg24[%c0_131, %c0_132, %c24_133], %261 {strides = array<i32>} : memref<8x2x32xf32, #tpu.memory_space<vmem>>, vector<8x2x8xf32>,
    %c0_134 = arith.constant 0 : index
    %c0_135 = arith.constant 0 : index
    %c0_136 = arith.constant 0 : index
    %263 = vector.load %arg24[%c0_134, %c0_135, %c0_136] : memref<8x2x32xf32, #tpu.memory_space<vmem>>, vector<8x1x32xf32>
    %264 = vector.shape_cast %263 : vector<8x1x32xf32> to vector<8x32xf32>
    %c0_137 = arith.constant 0 : index
    %c0_138 = arith.constant 0 : index
    %c0_139 = arith.constant 0 : index
    %265 = vector.load %arg23[%c0_137, %c0_138, %c0_139] : memref<2x8x32xf32, #tpu.memory_space<vmem>>, vector<1x8x32xf32>
    %266 = vector.shape_cast %265 : vector<1x8x32xf32> to vector<8x32xf32>
    %267 = vector.shape_cast %264 : vector<8x32xf32> to vector<1x8x32xf32>
    tpu.vector_store %arg23[%c0_137, %c0_138, %c0_139], %267 {strides = array<i32>} : memref<2x8x32xf32, #tpu.memory_space<vmem>>, vector<1x8x32xf32>,
    %c0_140 = arith.constant 0 : index
    %c1_141 = arith.constant 1 : index
    %c0_142 = arith.constant 0 : index
    %268 = vector.load %arg24[%c0_140, %c1_141, %c0_142] : memref<8x2x32xf32, #tpu.memory_space<vmem>>, vector<8x1x32xf32>
    %269 = vector.shape_cast %268 : vector<8x1x32xf32> to vector<8x32xf32>
    %c1_143 = arith.constant 1 : index
    %c0_144 = arith.constant 0 : index
    %c0_145 = arith.constant 0 : index
    %270 = vector.load %arg23[%c1_143, %c0_144, %c0_145] : memref<2x8x32xf32, #tpu.memory_space<vmem>>, vector<1x8x32xf32>
    %271 = vector.shape_cast %270 : vector<1x8x32xf32> to vector<8x32xf32>
    %272 = vector.shape_cast %269 : vector<8x32xf32> to vector<1x8x32xf32>
    tpu.vector_store %arg23[%c1_143, %c0_144, %c0_145], %272 {strides = array<i32>} : memref<2x8x32xf32, #tpu.memory_space<vmem>>, vector<1x8x32xf32>,
    %c0_146 = arith.constant 0 : index
    %c0_147 = arith.constant 0 : index
    %c0_148 = arith.constant 0 : index
    %273 = vector.load %arg23[%c0_146, %c0_147, %c0_148] : memref<2x8x32xf32, #tpu.memory_space<vmem>>, vector<2x8x32xf32>
    %274 = vector.shape_cast %273 : vector<2x8x32xf32> to vector<16x32xf32>
    %275 = arith.truncf %274 : vector<16x32xf32> to vector<16x32xbf16>
    %c0_149 = arith.constant 0 : index
    %c0_150 = arith.constant 0 : index
    %276 = vector.load %arg10[%c0_149, %c0_150] : memref<32x32xbf16, #tpu.memory_space<vmem>>, vector<32x32xbf16>
    %cst_151 = arith.constant dense<0.000000e+00> : vector<16x32xf32>
    %277 = tpu.matmul %275, %276, %cst_151 {dimension_numbers = #tpu.dot_dimension_numbers<[1], [0], [0], [1], [0, 0, 1, 1], [], []>} : vector<16x32xbf16>, vector<32x32xbf16>, vector<16x32xf32> -> vector<16x32xf32>
    %c0_152 = arith.constant 0 : index
    %c0_153 = arith.constant 0 : index
    %278 = vector.load %arg11[%c0_152, %c0_153] : memref<1x32xf32, #tpu.memory_space<vmem>>, vector<1x32xf32>
    %279 = vector.broadcast %278 : vector<1x32xf32> to vector<16x32xf32>
    %280 = arith.addf %277, %279 : vector<16x32xf32>
    %c0_154 = arith.constant 0 : index
    %c0_155 = arith.constant 0 : index
    %281 = vector.load %arg18[%c0_154, %c0_155] : memref<1x32xf32, #tpu.memory_space<vmem>>, vector<1x32xf32>
    %c0_156 = arith.constant 0 : index
    %c0_157 = arith.constant 0 : index
    %282 = vector.load %arg19[%c0_156, %c0_157] : memref<1x32xf32, #tpu.memory_space<vmem>>, vector<1x32xf32>
    %283 = arith.addf %124, %280 : vector<16x32xf32>
    %cst_158 = arith.constant dense<0.000000e+00> : vector<16xf32>
    %284 = vector.multi_reduction <add>, %283, %cst_158 [1] : vector<16x32xf32> to vector<16xf32>
    %285 = vector.shape_cast %284 : vector<16xf32> to vector<16x1xf32>
    %cst_159 = arith.constant 3.200000e+01 : f32
    %286 = vector.broadcast %cst_159 : f32 to vector<16x1xf32>
    %287 = arith.divf %285, %286 : vector<16x1xf32>
    %288 = vector.broadcast %287 : vector<16x1xf32> to vector<16x32xf32>
    %289 = arith.subf %283, %288 : vector<16x32xf32>
    %290 = arith.mulf %289, %289 : vector<16x32xf32>
    %cst_160 = arith.constant dense<0.000000e+00> : vector<16xf32>
    %291 = vector.multi_reduction <add>, %290, %cst_160 [1] : vector<16x32xf32> to vector<16xf32>
    %292 = vector.shape_cast %291 : vector<16xf32> to vector<16x1xf32>
    %cst_161 = arith.constant 3.200000e+01 : f32
    %293 = vector.broadcast %cst_161 : f32 to vector<16x1xf32>
    %294 = arith.divf %292, %293 : vector<16x1xf32>
    %cst_162 = arith.constant 9.99999974E-6 : f32
    %295 = vector.broadcast %cst_162 : f32 to vector<16x1xf32>
    %296 = arith.addf %294, %295 : vector<16x1xf32>
    %297 = math.rsqrt %296 : vector<16x1xf32>
    %298 = vector.broadcast %297 : vector<16x1xf32> to vector<16x32xf32>
    %299 = arith.mulf %289, %298 : vector<16x32xf32>
    %300 = vector.broadcast %281 : vector<1x32xf32> to vector<16x32xf32>
    %301 = arith.mulf %299, %300 : vector<16x32xf32>
    %302 = vector.broadcast %282 : vector<1x32xf32> to vector<16x32xf32>
    %303 = arith.addf %301, %302 : vector<16x32xf32>
    %304 = arith.truncf %303 : vector<16x32xf32> to vector<16x32xbf16>
    %c0_163 = arith.constant 0 : index
    %c0_164 = arith.constant 0 : index
    %305 = vector.load %arg12[%c0_163, %c0_164] : memref<32x64xbf16, #tpu.memory_space<vmem>>, vector<32x64xbf16>
    %cst_165 = arith.constant dense<0.000000e+00> : vector<16x64xf32>
    %306 = tpu.matmul %304, %305, %cst_165 {dimension_numbers = #tpu.dot_dimension_numbers<[1], [0], [0], [1], [0, 0, 1, 1], [], []>} : vector<16x32xbf16>, vector<32x64xbf16>, vector<16x64xf32> -> vector<16x64xf32>
    %c0_166 = arith.constant 0 : index
    %c0_167 = arith.constant 0 : index
    %307 = vector.load %arg13[%c0_166, %c0_167] : memref<1x64xf32, #tpu.memory_space<vmem>>, vector<1x64xf32>
    %308 = vector.broadcast %307 : vector<1x64xf32> to vector<16x64xf32>
    %309 = arith.addf %306, %308 : vector<16x64xf32>
    %cst_168 = arith.constant 0.000000e+00 : f32
    %310 = vector.broadcast %cst_168 : f32 to vector<16x64xf32>
    %311 = arith.maximumf %309, %310 : vector<16x64xf32>
    %312 = arith.truncf %311 : vector<16x64xf32> to vector<16x64xbf16>
    %c0_169 = arith.constant 0 : index
    %c0_170 = arith.constant 0 : index
    %313 = vector.load %arg14[%c0_169, %c0_170] : memref<64x32xbf16, #tpu.memory_space<vmem>>, vector<64x32xbf16>
    %cst_171 = arith.constant dense<0.000000e+00> : vector<16x32xf32>
    %314 = tpu.matmul %312, %313, %cst_171 {dimension_numbers = #tpu.dot_dimension_numbers<[1], [0], [0], [1], [0, 0, 1, 1], [], []>} : vector<16x64xbf16>, vector<64x32xbf16>, vector<16x32xf32> -> vector<16x32xf32>
    %c0_172 = arith.constant 0 : index
    %c0_173 = arith.constant 0 : index
    %315 = vector.load %arg15[%c0_172, %c0_173] : memref<1x32xf32, #tpu.memory_space<vmem>>, vector<1x32xf32>
    %316 = vector.broadcast %315 : vector<1x32xf32> to vector<16x32xf32>
    %317 = arith.addf %314, %316 : vector<16x32xf32>
    %c0_174 = arith.constant 0 : index
    %c0_175 = arith.constant 0 : index
    %318 = vector.load %arg20[%c0_174, %c0_175] : memref<1x32xf32, #tpu.memory_space<vmem>>, vector<1x32xf32>
    %c0_176 = arith.constant 0 : index
    %c0_177 = arith.constant 0 : index
    %319 = vector.load %arg21[%c0_176, %c0_177] : memref<1x32xf32, #tpu.memory_space<vmem>>, vector<1x32xf32>
    %320 = arith.addf %303, %317 : vector<16x32xf32>
    %cst_178 = arith.constant dense<0.000000e+00> : vector<16xf32>
    %321 = vector.multi_reduction <add>, %320, %cst_178 [1] : vector<16x32xf32> to vector<16xf32>
    %322 = vector.shape_cast %321 : vector<16xf32> to vector<16x1xf32>
    %cst_179 = arith.constant 3.200000e+01 : f32
    %323 = vector.broadcast %cst_179 : f32 to vector<16x1xf32>
    %324 = arith.divf %322, %323 : vector<16x1xf32>
    %325 = vector.broadcast %324 : vector<16x1xf32> to vector<16x32xf32>
    %326 = arith.subf %320, %325 : vector<16x32xf32>
    %327 = arith.mulf %326, %326 : vector<16x32xf32>
    %cst_180 = arith.constant dense<0.000000e+00> : vector<16xf32>
    %328 = vector.multi_reduction <add>, %327, %cst_180 [1] : vector<16x32xf32> to vector<16xf32>
    %329 = vector.shape_cast %328 : vector<16xf32> to vector<16x1xf32>
    %cst_181 = arith.constant 3.200000e+01 : f32
    %330 = vector.broadcast %cst_181 : f32 to vector<16x1xf32>
    %331 = arith.divf %329, %330 : vector<16x1xf32>
    %cst_182 = arith.constant 9.99999974E-6 : f32
    %332 = vector.broadcast %cst_182 : f32 to vector<16x1xf32>
    %333 = arith.addf %331, %332 : vector<16x1xf32>
    %334 = math.rsqrt %333 : vector<16x1xf32>
    %335 = vector.broadcast %334 : vector<16x1xf32> to vector<16x32xf32>
    %336 = arith.mulf %326, %335 : vector<16x32xf32>
    %337 = vector.broadcast %318 : vector<1x32xf32> to vector<16x32xf32>
    %338 = arith.mulf %336, %337 : vector<16x32xf32>
    %339 = vector.broadcast %319 : vector<1x32xf32> to vector<16x32xf32>
    %340 = arith.addf %338, %339 : vector<16x32xf32>
    %c0_183 = arith.constant 0 : index
    %c0_184 = arith.constant 0 : index
    %341 = vector.load %arg22[%c0_183, %c0_184] : memref<16x32xf32, #tpu.memory_space<vmem>>, vector<16x32xf32>
    tpu.vector_store %arg22[%c0_183, %c0_184], %340 {strides = array<i32>} : memref<16x32xf32, #tpu.memory_space<vmem>>, vector<16x32xf32>,
    return
  }
}

</mosaic_0001>

<bundles_post_ra>
// kernel: tpu_custom_call.1
= control target key start
LH: loop header
LB: loop body
LE: loop exit
PB: predicated region body
PF: predicated region fallthrough
CT: control target
= control target key end

     0   :  { %s4856_s0 = inlined_call_operand.vmem [shape: f32[16,32], index: 0, kind: input, shape index: {}]   ;;  %s4857_s1 = inlined_call_operand.vmem [shape: bf16[64,32], index: 1, kind: input, shape index: {}]   ;;  %s4858_s2 = inlined_call_operand.vmem [shape: bf16[32,96], index: 2, kind: input, shape index: {}]   ;;  %s4859_s3 = inlined_call_operand.vmem [shape: f32[1,96], index: 3, kind: input, shape index: {}]   ;;  %s4860_s4 = inlined_call_operand.vmem [shape: bf16[32,32], index: 4, kind: input, shape index: {}]   ;;  %s4861_s5 = inlined_call_operand.vmem [shape: f32[1,32], index: 5, kind: input, shape index: {}]   ;;  %s4862_s6 = inlined_call_operand.vmem [shape: bf16[32,32], index: 6, kind: input, shape index: {}]   ;;  %s4863_s7 = inlined_call_operand.vmem [shape: f32[1,32], index: 7, kind: input, shape index: {}]   ;;  %s4864_s8 = inlined_call_operand.vmem [shape: bf16[32,64], index: 8, kind: input, shape index: {}]   ;;  %s4865_s9 = inlined_call_operand.vmem [shape: f32[1,64], index: 9, kind: input, shape index: {}]   ;;  %s4866_s10 = inlined_call_operand.vmem [shape: bf16[32,32], index: 10, kind: input, shape index: {}]   ;;  %s4867_s11 = inlined_call_operand.vmem [shape: f32[1,32], index: 11, kind: input, shape index: {}]   ;;  %s4868_s12 = inlined_call_operand.hbm [shape: bf16[32,64], index: 12, kind: input, shape index: {}]   ;;  %s4869_s13 = inlined_call_operand.vmem [shape: f32[1,64], index: 13, kind: input, shape index: {}]   ;;  %s4870_s14 = inlined_call_operand.vmem [shape: bf16[64,32], index: 14, kind: input, shape index: {}]   ;;  %s4871_s15 = inlined_call_operand.vmem [shape: f32[1,32], index: 15, kind: input, shape index: {}]   ;;  %s4872_s16 = inlined_call_operand.vmem [shape: f32[1,32], index: 16, kind: input, shape index: {}]   ;;  %s4873_s17 = inlined_call_operand.vmem [shape: f32[1,32], index: 17, kind: input, shape index: {}]   ;;  %s4874_s18 = inlined_call_operand.vmem [shape: f32[1,32], index: 18, kind: input, shape index: {}]   ;;  %s4875_s19 = inlined_call_operand.vmem [shape: f32[1,32], index: 19, kind: input, shape index: {}]   ;;  %s4876_s20 = inlined_call_operand.vmem [shape: f32[1,32], index: 20, kind: input, shape index: {}]   ;;  %s4877_s21 = inlined_call_operand.vmem [shape: f32[1,32], index: 21, kind: input, shape index: {}]   ;;  %s4878_s22 = inlined_call_operand.hbm [shape: f32[16,32], index: 22, kind: output, shape index: {}]  }
   0x1   :  { %4890 = sst [smem:[#allocation10_spill]] %s4856_s0 }
   0x2   :  { %4891 = sst [smem:[#allocation11_spill]] %s4857_s1 }
   0x3   :  { %4892 = sst [smem:[#allocation12_spill]] %s4858_s2 }
   0x4   :  { %4893 = sst [smem:[#allocation13_spill]] %s4859_s3 }
   0x5   :  { %4894 = sst [smem:[#allocation14_spill]] %s4860_s4 }
   0x6   :  { %4895 = sst [smem:[#allocation15_spill]] %s4861_s5 }
   0x7   :  { %4896 = sst [smem:[#allocation16_spill]] %s4862_s6 }
   0x8   :  { %27 = vsyncpa [#allocation5], 0 }
   0x9   :  { %28 = vsyncpa [#allocation6], 0  ;;  %s57_s29 = sshll.u32 %s4868_s12, 4  ;;  %s3681_s30 = smov [#allocation4]   ;;  %s58_s29 = int_to_ptr.hbm [resolvable:$true] %s57_s29 }
   0xa   :  { %s59_s4 = sshll.u32 %s3681_s30, 4  ;;  %s3682_s0 = smov 64   ;;  %s60_s4 = int_to_ptr.vmem [resolvable:$true] %s59_s4 }
   0xb   :  { %s3683_s23 = smov 4  }
   0xc   :  { %65 = dma.hbm_to_vmem [thread:$0]  %s58_s29, 256, %s60_s4, [#allocation5], %s3682_s0, %s3682_s0, %s3683_s23  }
   0xd   :  { %3677 = dma.done.wait [#allocation5], 256  }
   0xe   :  { %3678 = vsyncadd [#allocation5], 4294967040  ;;  %s4897_s24 = sld [smem:[#allocation12_spill]]  ;;  %vm120_vm0 = vcmask 261120   ;;  %s3684_s4 = smov 120   ;;  %vm145_vm1 = vcmask 64512  }
   0xf   :  { %s4898_s2 = sld [smem:[#allocation10_spill]]  ;;  %s3685_s23 = smov 88   ;;  %vm218_vm2 = vcmask 1043456   ;;  %vm378_vm3 = vcmask 130112   ;;  %vm501_vm4 = vcmask 195712   ;;  %vm624_vm5 = vcmask 261312  }
  0x10   :  { %s4899_s30 = sld [smem:[#allocation13_spill]]  ;;  %s3686_s1 = smov 96   ;;  %vm858_vm13 = vcmask 1041409   ;;  %vm861_vm14 = vcmask 254976   ;;  %vm1102_vm15 = vcmask 58368  }
  0x11   :  { %s3687_s5 = smov 112   ;;  %s3689_s6 = smov 72  }
  0x12   :  { %s3690_s25 = smov 104   ;;  %s3691_s12 = smov 56  }
  0x13   :  { %s3693_s26 = smov 40   ;;  %s4886_s27 = smov 16  }
  0x14   :  { %v3408_v0 = vld [vmem:[%s4897_s24 + $0x8] sm:$0xff]  ;;  %v3407_v1 = vld [vmem:[%s4897_s24] sm:$0xff]  ;;  %s3688_s24 = smov 80   ;;  %s4884_s3 = smov 24  }
  0x15   :  { %v3829_v2 = vld [vmem:[%s4898_s2] sm:$0xff]  ;;  %v3834_v3 = vld [vmem:[%s4898_s2 + $0x8] sm:$0xff]  ;;  %130 = vmatpush.bf16.msra.mxu0 %v3408_v0  ;;  %s4888_s2 = smov 8   ;;  %s4901_s29 = sld [smem:[#allocation15_spill]] }
  0x16   :  { %v99_v4 = vpack.c.bf16 %v3834_v3, %v3829_v2  ;;  %v3442_v5 = vld [vmem:[%s4899_s30] ss:$0 sm:$0xff]  ;;  %s4900_s30 = sld [smem:[#allocation14_spill]] }
  0x19   :  { %131 = vmatpush.bf16.msra.mxu0 %v3407_v1 }
  0x1c   :  { %3241 = vmatmul.msk.bf16.vlgmr.msra.gmra.mxu0 %vm120_vm0, %v99_v4 }
  0x99   :  { %v133_v6 = vpop.f32.mrf.mxu0 }
  0x9a   :  { %v134_v7 = vadd.f32 %v3442_v5, %v133_v6 }
  0x9c   :  { %v138_v8 = vpack.c.bf16 %v134_v7, %v134_v7 }
  0x9e   :  { %v141_v9 = vunpack.c.l.b16 %v138_v8 }
  0xa0   :  { %v3842_v10 = vpack.c.b16 %v141_v9, %v141_v9 }
  0xa1   :  { %v135_v11 = vpop.f32.mrf.mxu0 }
  0xa2   :  { %v136_v12 = vadd.f32 %v3442_v5, %v135_v11  ;;  %258 = vrot.lane.b32.xlu2 %v3842_v10, %s3684_s4  ;;  %260 = vrot.lane.b32.xlu1 %v3842_v10, %s3685_s23 }
  0xa3   :  { %143 = vrot.lane.b32.xlu0 %v3842_v10, %s3686_s1 }
  0xa4   :  { %v139_v13 = vpack.c.bf16 %v136_v12, %v136_v12 }
  0xa6   :  { %v166_v14 = vunpack.c.l.b16 %v139_v13 }
  0xa8   :  { %v3850_v15 = vpack.c.b16 %v166_v14, %v166_v14 }
  0xaa   :  { %281 = vrot.lane.b32.xlu2 %v3850_v15, %s3684_s4  ;;  %283 = vrot.lane.b32.xlu1 %v3850_v15, %s3685_s23 }
  0xab   :  { %168 = vrot.lane.b32.xlu0 %v3850_v15, %s3686_s1 }
  0xb2   :  { %381 = vrot.lane.b32.xlu2 %v3842_v10, %s3687_s5  ;;  %406 = vrot.lane.b32.xlu1 %v3850_v15, %s3688_s24 }
  0xb3   :  { %383 = vrot.lane.b32.xlu0 %v3842_v10, %s3688_s24 }
  0xba   :  { %529 = vrot.lane.b32.xlu2 %v3850_v15, %s3689_s6  ;;  %506 = vrot.lane.b32.xlu1 %v3842_v10, %s3689_s6 }
  0xbb   :  { %404 = vrot.lane.b32.xlu0 %v3850_v15, %s3687_s5 }
  0xc2   :  { %527 = vrot.lane.b32.xlu1 %v3850_v15, %s3690_s25 }
  0xc3   :  { %504 = vrot.lane.b32.xlu0 %v3842_v10, %s3690_s25 }
  0xfc   :  { %v259_v16 = vpop.permute.xlu2 %258 }
 0x104   :  { %v282_v21 = vpop.permute.xlu2 %281 }
 0x10c   :  { %v382_v26 = vpop.permute.xlu2 %381 }
 0x114   :  { %v261_v17 = vpop.permute.xlu1 %260  ;;  %v530_v31 = vpop.permute.xlu2 %529 }
 0x115   :  { %v144_v18 = vpop.permute.xlu0 %143  ;;  %v266_v19 = vsel %vm145_vm1, %v261_v17, 0  ;;  %v535_v34 = vsel %vm145_vm1, %v530_v31, 0 }
 0x116   :  { %v150_v20 = vsel %vm145_vm1, %v144_v18, 0  ;;  %275 = vmatpush.bf16.xpose.msrb.mxu0 %v266_v19 }
 0x117   :  { %159 = vmatpush.bf16.xpose.msra.mxu1 %v150_v20 }
 0x11c   :  { %v284_v22 = vpop.permute.xlu1 %283 }
 0x11d   :  { %v169_v23 = vpop.permute.xlu0 %168  ;;  %3246 = vmatmul.msk.bf16.vlgmr.msrb.gmra.mxu0 %vm145_vm1, %v259_v16  ;;  %v289_v24 = vsel %vm145_vm1, %v284_v22, 0 }
 0x11e   :  { %3242 = vmatmul.msk.bf16.vlgmr.msra.gmra.mxu1 %vm145_vm1, %v138_v8  ;;  %v174_v25 = vsel %vm145_vm1, %v169_v23, 0 }
 0x11f   :  { %183 = vmatpush.bf16.xpose.msra.mxu2 %v174_v25  ;;  %298 = vmatpush.bf16.xpose.msrb.mxu1 %v289_v24 }
 0x124   :  { %v407_v27 = vpop.permute.xlu1 %406 }
 0x125   :  { %v412_v28 = vsel %vm145_vm1, %v407_v27, 0  ;;  %v384_v29 = vpop.permute.xlu0 %383 }
 0x126   :  { %v389_v30 = vsel %vm145_vm1, %v384_v29, 0  ;;  %3243 = vmatmul.msk.bf16.vlgmr.msra.gmra.mxu2 %vm145_vm1, %v139_v13 }
 0x127   :  { %421 = vmatpush.bf16.xpose.msra.mxu1 %v412_v28  ;;  %398 = vmatpush.bf16.xpose.msra.mxu0 %v389_v30 }
 0x12c   :  { %v507_v32 = vpop.permute.xlu1 %506 }
 0x12d   :  { %v512_v33 = vsel %vm145_vm1, %v507_v32, 0  ;;  %v405_v35 = vpop.permute.xlu0 %404 }
 0x12e   :  { %3247 = vmatmul.msk.bf16.vlgmr.msrb.gmra.mxu1 %vm145_vm1, %v282_v21  ;;  %3250 = vmatmul.msk.bf16.vlgmr.msra.gmra.mxu0 %vm145_vm1, %v382_v26 }
 0x12f   :  { %544 = vmatpush.bf16.xpose.msrb.mxu1 %v535_v34  ;;  %521 = vmatpush.bf16.xpose.msrb.mxu0 %v512_v33 }
 0x134   :  { %v528_v37 = vpop.permute.xlu1 %527 }
 0x135   :  { %v505_v36 = vpop.permute.xlu0 %504 }
 0x13e   :  { %3251 = vmatmul.msk.bf16.vlgmr.msra.gmra.mxu1 %vm145_vm1, %v405_v35  ;;  %3254 = vmatmul.msk.bf16.vlgmr.msrb.gmra.mxu0 %vm145_vm1, %v505_v36 }
 0x14e   :  { %3255 = vmatmul.msk.bf16.vlgmr.msrb.gmra.mxu1 %vm145_vm1, %v528_v37 }
 0x19a   :  { %v277_v38 = vpop.f32.mrf.mxu0 }
 0x19b   :  { %v161_v39 = vpop.f32.mrf.mxu1  ;;  %v304_v40 = vsel %vm145_vm1, %v277_v38, -inf }
 0x19c   :  { %305 = vmax.xlane.f32.xlu1 %v304_v40  ;;  %v189_v41 = vsel %vm145_vm1, %v161_v39, -inf }
 0x19d   :  { %190 = vmax.xlane.f32.xlu2 %v189_v41 }
 0x1a2   :  { %v279_v42 = vpop.f32.mrf.mxu0 }
 0x1a3   :  { %v163_v43 = vpop.f32.mrf.mxu1 }
 0x1a9   :  { %v185_v44 = vpop.f32.mrf.mxu2 }
 0x1aa   :  { %v192_v45 = vsel %vm145_vm1, %v185_v44, -inf }
 0x1ab   :  { %v300_v46 = vpop.f32.mrf.mxu1  ;;  %193 = vmax.xlane.f32.xlu0 %v192_v45  ;;  %v3893_v47 = vpop.f32.mrf.mxu0 }
 0x1ac   :  { %v307_v48 = vsel %vm145_vm1, %v300_v46, -inf  ;;  %v427_v60 = vsel %vm145_vm1, %v3893_v47, -inf }
 0x1ad   :  { %308 = vmax.xlane.f32.xlu2 %v307_v48 }
 0x1b1   :  { %v187_v49 = vpop.f32.mrf.mxu2 }
 0x1b3   :  { %v302_v50 = vpop.f32.mrf.mxu1  ;;  %v402_v51 = vpop.f32.mrf.mxu0 }
 0x1b5   :  { %235 = vrot.lane.b32.xlu1 %v3850_v15, %s3682_s0 }
 0x1bb   :  { %v3898_v52 = vpop.f32.mrf.mxu1  ;;  %v3900_v53 = vpop.f32.mrf.mxu0 }
 0x1bc   :  { %v430_v59 = vsel %vm145_vm1, %v3898_v52, -inf  ;;  %v550_v61 = vsel %vm145_vm1, %v3900_v53, -inf }
 0x1bd   :  { %349 = vrot.lane.b32.xlu1 %v3850_v15, %s3691_s12 }
 0x1bf   :  { %328 = vrot.lane.b32.xlu0 %v3842_v10, %s3691_s12 }
 0x1c3   :  { %v425_v54 = vpop.f32.mrf.mxu1  ;;  %v525_v55 = vpop.f32.mrf.mxu0 }
 0x1c5   :  { %213 = vrot.lane.b32.xlu2 %v3842_v10, %s3682_s0  ;;  %s3692_s0 = smov 48  }
 0x1cb   :  { %v546_v56 = vpop.f32.mrf.mxu1 }
 0x1cc   :  { %v553_v58 = vsel %vm145_vm1, %v546_v56, -inf }
 0x1d3   :  { %v548_v57 = vpop.f32.mrf.mxu1 }
 0x1e7   :  { %554 = vmax.xlane.f32.xlu1 %v553_v58 }
 0x1e9   :  { %431 = vmax.xlane.f32.xlu0 %v430_v59 }
 0x1ee   :  { %428 = vmax.xlane.f32.xlu2 %v427_v60 }
 0x1f1   :  { %551 = vmax.xlane.f32.xlu0 %v550_v61 }
 0x20f   :  { %v306_v62 = vpop.xlane.xlu1 %305 }
 0x210   :  { %v310_v63 = vsub.f32 %v277_v38, %v306_v62  ;;  %v191_v0 = vpop.xlane.xlu2 %190 }
 0x211   :  { %v195_v1 = vsub.f32 %v161_v39, %v191_v0 }
 0x212   :  { %v312_v4 = vmul.f32 1.442695, %v310_v63 }
 0x213   :  { %v197_v5 = vmul.f32 1.442695, %v195_v1 }
 0x214   :  { %3455 = vpow2.f32 %v312_v4 }
 0x215   :  { %3457 = vpow2.f32 %v197_v5 }
 0x21a   :  { %v3913_v6 = vpop.eup %3455 }
 0x21b   :  { %v3915_v7 = vpop.eup %3457  ;;  %v316_v8 = vsel %vm145_vm1, %v3913_v6, 0.0 }
 0x21c   :  { %v201_v9 = vsel %vm145_vm1, %v3915_v7, 0.0  ;;  %317 = vadd.xlane.f32.xlu0 %v316_v8 }
 0x21d   :  { %202 = vadd.xlane.f32.xlu1 %v201_v9 }
 0x21e   :  { %v194_v11 = vpop.xlane.xlu0 %193 }
 0x21f   :  { %v196_v12 = vsub.f32 %v185_v44, %v194_v11 }
 0x220   :  { %v309_v13 = vpop.xlane.xlu2 %308 }
 0x221   :  { %v199_v14 = vmul.f32 1.442695, %v196_v12  ;;  %v311_v16 = vsub.f32 %v300_v46, %v309_v13 }
 0x223   :  { %3459 = vpow2.f32 %v199_v14  ;;  %v314_v17 = vmul.f32 1.442695, %v311_v16 }
 0x225   :  { %3461 = vpow2.f32 %v314_v17 }
 0x227   :  { %v236_v18 = vpop.permute.xlu1 %235 }
 0x228   :  { %v214_v19 = vpop.permute.xlu2 %213  ;;  %v241_v20 = vsel %vm218_vm2, %v236_v18, 0 }
 0x229   :  { %v3922_v21 = vpop.eup %3459  ;;  %v220_v22 = vsel %vm218_vm2, %v214_v19, 0 }
 0x22a   :  { %229 = vmatpush.bf16.msra.mxu3 %v220_v22  ;;  %v204_v23 = vsel %vm145_vm1, %v3922_v21, 0.0 }
 0x22b   :  { %v3927_v24 = vpop.eup %3461  ;;  %205 = vadd.xlane.f32.xlu0 %v204_v23 }
 0x22c   :  { %v319_v25 = vsel %vm145_vm1, %v3927_v24, 0.0 }
 0x22d   :  { %320 = vadd.xlane.f32.xlu2 %v319_v25 }
 0x22e   :  { %250 = vmatpush.bf16.msrb.mxu3 %v241_v20 }
 0x22f   :  { %v350_v28 = vpop.permute.xlu1 %349 }
 0x230   :  { %v355_v57 = vsel %vm218_vm2, %v350_v28, 0 }
 0x231   :  { %v329_v26 = vpop.permute.xlu0 %328 }
 0x232   :  { %v334_v27 = vsel %vm218_vm2, %v329_v26, 0 }
 0x233   :  { %343 = vmatpush.bf16.msrb.mxu2 %v334_v27 }
 0x236   :  { %472 = vrot.lane.b32.xlu1 %v3850_v15, %s3692_s0 }
 0x245   :  { %451 = vrot.lane.b32.xlu2 %v3842_v10, %s3692_s0 }
 0x25a   :  { %v555_v29 = vpop.xlane.xlu1 %554 }
 0x25b   :  { %v557_v30 = vsub.f32 %v546_v56, %v555_v29 }
 0x25c   :  { %v432_v31 = vpop.xlane.xlu0 %431 }
 0x25d   :  { %v434_v32 = vsub.f32 %v3898_v52, %v432_v31  ;;  %v560_v34 = vmul.f32 1.442695, %v557_v30 }
 0x25f   :  { %v437_v33 = vmul.f32 1.442695, %v434_v32 }
 0x261   :  { %3463 = vpow2.f32 %v437_v33  ;;  %v429_v35 = vpop.xlane.xlu2 %428 }
 0x262   :  { %v433_v36 = vsub.f32 %v3893_v47, %v429_v35  ;;  %3465 = vpow2.f32 %v560_v34 }
 0x264   :  { %v435_v37 = vmul.f32 1.442695, %v433_v36  ;;  %v552_v38 = vpop.xlane.xlu0 %551 }
 0x265   :  { %v556_v39 = vsub.f32 %v3900_v53, %v552_v38 }
 0x266   :  { %3467 = vpow2.f32 %v435_v37 }
 0x267   :  { %v3464_v40 = vpop.eup %3463  ;;  %v558_v41 = vmul.f32 1.442695, %v556_v39 }
 0x268   :  { %v442_v42 = vsel %vm145_vm1, %v3464_v40, 0.0  ;;  %v3938_v43 = vpop.eup %3465 }
 0x269   :  { %3469 = vpow2.f32 %v558_v41  ;;  %443 = vadd.xlane.f32.xlu0 %v442_v42  ;;  %v565_v46 = vsel %vm145_vm1, %v3938_v43, 0.0 }
 0x26c   :  { %v3468_v44 = vpop.eup %3467 }
 0x26d   :  { %v439_v45 = vsel %vm145_vm1, %v3468_v44, 0.0 }
 0x26e   :  { %440 = vadd.xlane.f32.xlu1 %v439_v45  ;;  %566 = vadd.xlane.f32.xlu2 %v565_v46  ;;  %v3410_v46 = vld [vmem:[%s4900_s30 + $0x8] sm:$0xff] }
 0x26f   :  { %v3470_v47 = vpop.eup %3469  ;;  %659 = vmatpush.bf16.msra.mxu0 %v3410_v46 }
 0x270   :  { %v562_v48 = vsel %vm145_vm1, %v3470_v47, 0.0 }
 0x271   :  { %563 = vadd.xlane.f32.xlu0 %v562_v48 }
 0x285   :  { %574 = vrot.lane.b32.xlu0 %v3842_v10, %s3693_s26 }
 0x287   :  { %595 = vrot.lane.b32.xlu1 %v3850_v15, %s3693_s26 }
 0x28f   :  { %v318_v49 = vpop.xlane.xlu0 %317 }
 0x290   :  { %v203_v50 = vpop.xlane.xlu1 %202  ;;  %3471 = vrcp.f32 %v318_v49 }
 0x291   :  { %3473 = vrcp.f32 %v203_v50 }
 0x296   :  { %v3472_v51 = vpop.eup %3471 }
 0x297   :  { %v3474_v52 = vpop.eup %3473  ;;  %v324_v53 = vmul.f32 %v3472_v51, %v3913_v6 }
 0x298   :  { %v209_v54 = vmul.f32 %v3474_v52, %v3915_v7 }
 0x299   :  { %v326_v55 = vpack.c.bf16 %v324_v53, %v324_v53 }
 0x29a   :  { %v211_v56 = vpack.c.bf16 %v209_v54, %v209_v54 }
 0x29b   :  { %3248 = vmatmul.msk.bf16.vlgmr.msrb.gmra.mxu2 %vm145_vm1, %v326_v55  ;;  %v3443_v55 = vld [vmem:[%s4901_s29] ss:$0 sm:$0xff]  ;;  %s4903_s29 = sld [smem:[#allocation16_spill]] }
 0x29c   :  { %3244 = vmatmul.msk.bf16.vlgmr.msra.gmra.mxu3 %vm145_vm1, %v211_v56 }
 0x29d   :  { %364 = vmatpush.bf16.msra.mxu3 %v355_v57 }
 0x29e   :  { %v206_v10 = vpop.xlane.xlu0 %205 }
 0x29f   :  { %3475 = vrcp.f32 %v206_v10 }
 0x2a0   :  { %v321_v15 = vpop.xlane.xlu2 %320 }
 0x2a1   :  { %3477 = vrcp.f32 %v321_v15 }
 0x2a5   :  { %v3476_v58 = vpop.eup %3475 }
 0x2a6   :  { %v210_v59 = vmul.f32 %v3476_v58, %v3922_v21 }
 0x2a7   :  { %v3478_v1 = vpop.eup %3477 }
 0x2a8   :  { %v452_v60 = vpop.permute.xlu2 %451  ;;  %v473_v62 = vpop.permute.xlu1 %472  ;;  %v212_v63 = vpack.c.bf16 %v210_v59, %v210_v59  ;;  %v325_v4 = vmul.f32 %v3478_v1, %v3927_v24  ;;  %v3414_v1 = vld [vmem:[%s4864_s8 + $0x8] sm:$0xff] }
 0x2a9   :  { %v457_v61 = vsel %vm218_vm2, %v452_v60, 0  ;;  %v478_v0 = vsel %vm218_vm2, %v473_v62, 0  ;;  %v3697_v62 = vmov 32.0  }
 0x2aa   :  { %466 = vmatpush.bf16.msra.mxu2 %v457_v61  ;;  %v327_v5 = vpack.c.bf16 %v325_v4, %v325_v4 }
 0x2ac   :  { %3245 = vmatmul.msk.bf16.vlgmr.msrb.gmra.mxu3 %vm145_vm1, %v212_v63 }
 0x2ad   :  { %487 = vmatpush.bf16.msrb.mxu3 %v478_v0 }
 0x2bc   :  { %3249 = vmatmul.msk.bf16.vlgmr.msra.gmra.mxu3 %vm145_vm1, %v327_v5 }
 0x2dc   :  { %v444_v6 = vpop.xlane.xlu0 %443 }
 0x2dd   :  { %3479 = vrcp.f32 %v444_v6 }
 0x2e1   :  { %v441_v7 = vpop.xlane.xlu1 %440  ;;  %v567_v14 = vpop.xlane.xlu2 %566 }
 0x2e2   :  { %3481 = vrcp.f32 %v441_v7 }
 0x2e3   :  { %v3480_v8 = vpop.eup %3479  ;;  %3483 = vrcp.f32 %v567_v14 }
 0x2e4   :  { %v448_v9 = vmul.f32 %v3480_v8, %v3464_v40  ;;  %v564_v17 = vpop.xlane.xlu0 %563 }
 0x2e5   :  { %3485 = vrcp.f32 %v564_v17 }
 0x2e6   :  { %v450_v11 = vpack.c.bf16 %v448_v9, %v448_v9  ;;  %3487 = vrcp.f32 %v3697_v62 }
 0x2e8   :  { %3253 = vmatmul.msk.bf16.vlgmr.msrb.gmra.mxu3 %vm145_vm1, %v450_v11  ;;  %v3482_v12 = vpop.eup %3481 }
 0x2e9   :  { %v447_v13 = vmul.f32 %v3482_v12, %v3468_v44  ;;  %v3484_v18 = vpop.eup %3483 }
 0x2ea   :  { %v571_v21 = vmul.f32 %v3484_v18, %v3938_v43 }
 0x2eb   :  { %v449_v16 = vpack.c.bf16 %v447_v13, %v447_v13  ;;  %v3486_v19 = vpop.eup %3485 }
 0x2ec   :  { %v570_v22 = vmul.f32 %v3486_v19, %v3470_v47  ;;  %v573_v26 = vpack.c.bf16 %v571_v21, %v571_v21  ;;  %v3409_v47 = vld [vmem:[%s4900_s30] sm:$0xff]  ;;  %v3488_v63 = vpop.eup %3487 }
 0x2ed   :  { %3252 = vmatmul.msk.bf16.vlgmr.msra.gmra.mxu2 %vm145_vm1, %v449_v16  ;;  %660 = vmatpush.bf16.msra.mxu0 %v3409_v47  ;;  %v678_v0 = vmul.f32 32.0, %v3488_v63  ;;  %vm682_vm6 = vweird.f32 %v3488_v63 }
 0x2ee   :  { %v572_v27 = vpack.c.bf16 %v570_v22, %v570_v22  ;;  %v3412_v22 = vld [vmem:[%s4903_s29 + $0x8] sm:$0xff] }
 0x2ef   :  { %v679_v4 = vsub.f32 1.0, %v678_v0  ;;  %762 = vmatpush.bf16.msra.mxu1 %v3412_v22 }
 0x2f1   :  { %v680_v5 = vmul.f32 %v3488_v63, %v679_v4 }
 0x2f3   :  { %v681_v6 = vadd.f32 %v3488_v63, %v680_v5 }
 0x2f5   :  { %v3996_v7 = vsel %vm682_vm6, %v3488_v63, %v681_v6  ;;  %v3445_v63 = vld [vmem:[%s4873_s17] ss:$0 sm:$0xff]  ;;  %vm2915_vm6 = vcmask 1044484  }
 0x2f7   :  { %v575_v20 = vpop.permute.xlu0 %574 }
 0x2f8   :  { %v580_v23 = vsel %vm218_vm2, %v575_v20, 0 }
 0x2f9   :  { %v596_v24 = vpop.permute.xlu1 %595  ;;  %589 = vmatpush.bf16.msrb.mxu2 %v580_v23 }
 0x2fa   :  { %v601_v25 = vsel %vm218_vm2, %v596_v24, 0 }
 0x2fb   :  { %610 = vmatpush.bf16.msra.mxu3 %v601_v25  ;;  %v3411_v25 = vld [vmem:[%s4903_s29] sm:$0xff] }
 0x2fc   :  { %763 = vmatpush.bf16.msra.mxu1 %v3411_v25 }
 0x2fd   :  { %3256 = vmatmul.msk.bf16.vlgmr.msrb.gmra.mxu2 %vm145_vm1, %v572_v27 }
 0x2fe   :  { %3257 = vmatmul.msk.bf16.vlgmr.msra.gmra.mxu3 %vm145_vm1, %v573_v26  ;;  %828 = vmatpush.bf16.msra.mxu2 %v3414_v1 }
 0x31e   :  { %v345_v28 = vpop.f32.mrf.mxu2 }
 0x31f   :  { %v231_v29 = vpop.f32.mrf.mxu3  ;;  %372 = vrot.lane.b32.xlu0 %v345_v28, %s4888_s2  ;;  %v4031_v28 = vld [vmem:[%s4865_s9] ss:$0 sm:$0xff] }
 0x320   :  { %256 = vst.msk [vmem:[#allocation2] sm:$0xff] %vm145_vm1, %v231_v29 }
 0x326   :  { %v347_v30 = vpop.f32.mrf.mxu2 }
 0x327   :  { %v233_v31 = vpop.f32.mrf.mxu3 }
 0x32f   :  { %v252_v32 = vpop.f32.mrf.mxu3 }
 0x330   :  { %257 = vst.msk [vmem:[#allocation2 + $0x8] sm:$0xff] %vm145_vm1, %v252_v32 }
 0x337   :  { %v254_v33 = vpop.f32.mrf.mxu3 }
 0x33f   :  { %v366_v34 = vpop.f32.mrf.mxu3 }
 0x340   :  { %374 = vrot.lane.b32.xlu1 %v366_v34, %s4888_s2 }
 0x347   :  { %v368_v35 = vpop.f32.mrf.mxu3 }
 0x36b   :  { %v489_v36 = vpop.f32.mrf.mxu3 }
 0x36c   :  { %497 = vrot.lane.b32.xlu1 %v489_v36, %s4886_s27 }
 0x370   :  { %v468_v37 = vpop.f32.mrf.mxu2 }
 0x371   :  { %495 = vrot.lane.b32.xlu0 %v468_v37, %s4886_s27 }
 0x373   :  { %v491_v38 = vpop.f32.mrf.mxu3 }
 0x378   :  { %v470_v39 = vpop.f32.mrf.mxu2 }
 0x380   :  { %v591_v40 = vpop.f32.mrf.mxu2 }
 0x381   :  { %v612_v41 = vpop.f32.mrf.mxu3  ;;  %618 = vrot.lane.b32.xlu2 %v591_v40, %s4884_s3 }
 0x382   :  { %620 = vrot.lane.b32.xlu0 %v612_v41, %s4884_s3  ;;  %s4902_s3 = sld [smem:[#allocation11_spill]] }
 0x388   :  { %v593_v42 = vpop.f32.mrf.mxu2  ;;  %v3404_v13 = vld [vmem:[%s4902_s3 + $0x8] sm:$0xff]  ;;  %v3405_v21 = vld [vmem:[%s4902_s3 + $0x10] sm:$0xff]  ;;  %v3406_v27 = vld [vmem:[%s4902_s3 + $0x18] sm:$0xff] }
 0x389   :  { %v614_v43 = vpop.f32.mrf.mxu3 }
 0x391   :  { %v373_v44 = vpop.permute.xlu0 %372 }
 0x392   :  { %379 = vst.msk [vmem:[#allocation2] sm:$0xff] %vm378_vm3, %v373_v44 }
 0x3b2   :  { %v375_v45 = vpop.permute.xlu1 %374 }
 0x3b3   :  { %380 = vst.msk [vmem:[#allocation2 + $0x8] sm:$0xff] %vm378_vm3, %v375_v45  ;;  %vm1903_vm3 = vcmask 123968  }
 0x3db   :  { %v619_v50 = vpop.permute.xlu2 %618 }
 0x3de   :  { %v498_v48 = vpop.permute.xlu1 %497 }
 0x3df   :  { %503 = vst.msk [vmem:[#allocation2 + $0x8] sm:$0xff] %vm501_vm4, %v498_v48 }
 0x3e3   :  { %v496_v49 = vpop.permute.xlu0 %495 }
 0x3e4   :  { %502 = vst.msk [vmem:[#allocation2] sm:$0xff] %vm501_vm4, %v496_v49  ;;  %vm2392_vm4 = vcmask 189568  }
 0x3e5   :  { %625 = vst.msk [vmem:[#allocation2] sm:$0xff] %vm624_vm5, %v619_v50 }
 0x3ec   :  { %v627_v52 = vld [vmem:[#allocation2] sm:$0xff] }
 0x3f4   :  { %v621_v51 = vpop.permute.xlu0 %620 }
 0x3f5   :  { %626 = vst.msk [vmem:[#allocation2 + $0x8] sm:$0xff] %vm624_vm5, %v621_v51  ;;  %vm2912_vm5 = vcmask 1043459  }
 0x3fc   :  { %v628_v53 = vld [vmem:[#allocation2 + $0x8] sm:$0xff] }
 0x3fd   :  { %v629_v54 = vpack.c.bf16 %v628_v53, %v627_v52 }
 0x3ff   :  { %3266 = vmatmul.msk.bf16.vlgmr.msra.gmra.mxu0 %vm120_vm0, %v629_v54 }
 0x47c   :  { %v662_v56 = vpop.f32.mrf.mxu0 }
 0x47d   :  { %v663_v57 = vadd.f32 %v3443_v55, %v662_v56 }
 0x47f   :  { %v669_v10 = vadd.f32 %v663_v57, %v3829_v2  ;;  %v3413_v2 = vld [vmem:[%s4864_s8] sm:$0xff] }
 0x480   :  { %829 = vmatpush.bf16.msra.mxu2 %v3413_v2 }
 0x481   :  { %v671_v15 = vsel %vm120_vm0, %v669_v10, 0.0 }
 0x482   :  { %672 = vadd.xlane.f32.xlu1 %v671_v15 }
 0x484   :  { %v664_v58 = vpop.f32.mrf.mxu0 }
 0x485   :  { %v665_v59 = vadd.f32 %v3443_v55, %v664_v58 }
 0x487   :  { %v670_v60 = vadd.f32 %v665_v59, %v3834_v3  ;;  %v3403_v3 = vld [vmem:[%s4902_s3] sm:$0xff] }
 0x488   :  { %3300 = vmatmul.msk.bf16.vlgmr.msra.gmra.mxu2 %vm120_vm0, %v3403_v3 }
 0x489   :  { %v674_v61 = vsel %vm120_vm0, %v670_v60, 0.0 }
 0x48a   :  { %675 = vadd.xlane.f32.xlu0 %v674_v61 }
 0x498   :  { %3301 = vmatmul.msk.bf16.gmra.mxu2 %vm120_vm0, %v3404_v13 }
 0x4a8   :  { %3302 = vmatmul.msk.bf16.gmra.mxu2 %vm120_vm0, %v3405_v21 }
 0x4b8   :  { %3303 = vmatmul.msk.bf16.gmra.mxu2 %vm120_vm0, %v3406_v27 }
 0x4f5   :  { %v673_v8 = vpop.xlane.xlu1 %672 }
 0x4f6   :  { %v684_v9 = vmul.f32 %v3996_v7, %v673_v8 }
 0x4f8   :  { %v3999_v11 = vsub.f32 %v669_v10, %v684_v9  ;;  %v3444_v10 = vld [vmem:[%s4872_s16] ss:$0 sm:$0xff] }
 0x4fa   :  { %v688_v12 = vmul.f32 %v3999_v11, %v3999_v11 }
 0x4fc   :  { %v690_v14 = vsel %vm120_vm0, %v688_v12, 0.0 }
 0x4fd   :  { %v676_v16 = vpop.xlane.xlu0 %675  ;;  %691 = vadd.xlane.f32.xlu2 %v690_v14 }
 0x4fe   :  { %v685_v17 = vmul.f32 %v3996_v7, %v676_v16 }
 0x500   :  { %v4009_v18 = vsub.f32 %v670_v60, %v685_v17 }
 0x502   :  { %v689_v19 = vmul.f32 %v4009_v18, %v4009_v18 }
 0x504   :  { %v693_v20 = vsel %vm120_vm0, %v689_v19, 0.0 }
 0x505   :  { %694 = vadd.xlane.f32.xlu1 %v693_v20 }
 0x50b   :  { %v831_v29 = vpop.f32.mrf.mxu2 }
 0x50c   :  { %v832_v32 = vadd.f32 %v4031_v28, %v831_v29 }
 0x50e   :  { %v942_v35 = vpack.c.bf16 %v832_v32, %v832_v32 }
 0x510   :  { %v954_v37 = vsel %vm145_vm1, %v942_v35, 0  ;;  %v1200_v38 = vunpack.c.l.b16 %v942_v35  ;;  %v3447_v35 = vld [vmem:[%s4863_s7] ss:$0 sm:$0xff]  ;;  %s4904_s7 = smov 8  }
 0x511   :  { %963 = vmatpush.bf16.xpose.msrb.mxu3 %v954_v37 }
 0x512   :  { %v4037_v40 = vpack.c.b16 %v1200_v38, %v1200_v38 }
 0x513   :  { %v833_v41 = vpop.f32.mrf.mxu2 }
 0x514   :  { %v834_v43 = vadd.f32 %v4031_v28, %v833_v41  ;;  %1202 = vrot.lane.b32.xlu0 %v4037_v40, %s3686_s1 }
 0x516   :  { %v943_v45 = vpack.c.bf16 %v834_v43, %v834_v43 }
 0x518   :  { %v1224_v49 = vunpack.c.l.b16 %v943_v45  ;;  %v973_v22 = vsel %vm145_vm1, %v943_v45, 0 }
 0x519   :  { %982 = vmatpush.bf16.xpose.msrb.mxu0 %v973_v22 }
 0x51a   :  { %v4042_v51 = vpack.c.b16 %v1224_v49, %v1224_v49 }
 0x51b   :  { %v836_v52 = vpop.f32.mrf.mxu2 }
 0x51c   :  { %v837_v55 = vadd.f32 %v4031_v28, %v836_v52 }
 0x51e   :  { %1226 = vrot.lane.b32.xlu1 %v4042_v51, %s3686_s1  ;;  %v944_v57 = vpack.c.bf16 %v837_v55, %v837_v55 }
 0x520   :  { %v992_v59 = vsel %vm145_vm1, %v944_v57, 0  ;;  %v1248_v12 = vunpack.c.l.b16 %v944_v57 }
 0x521   :  { %1001 = vmatpush.bf16.xpose.msrb.mxu1 %v992_v59 }
 0x522   :  { %v4069_v14 = vpack.c.b16 %v1248_v12, %v1248_v12 }
 0x523   :  { %v838_v3 = vpop.f32.mrf.mxu2 }
 0x524   :  { %v839_v13 = vadd.f32 %v4031_v28, %v838_v3 }
 0x526   :  { %v945_v16 = vpack.c.bf16 %v839_v13, %v839_v13 }
 0x528   :  { %v1272_v17 = vunpack.c.l.b16 %v945_v16 }
 0x52b   :  { %v841_v5 = vpop.f32.mrf.mxu2 }
 0x52c   :  { %v842_v6 = vadd.f32 %v4031_v28, %v841_v5 }
 0x52e   :  { %v946_v8 = vpack.c.bf16 %v842_v6, %v842_v6 }
 0x530   :  { %v1296_v9 = vunpack.c.l.b16 %v946_v8  ;;  %v1030_v20 = vsel %vm145_vm1, %v946_v8, 0 }
 0x531   :  { %1039 = vmatpush.bf16.xpose.msra.mxu0 %v1030_v20 }
 0x533   :  { %v843_v19 = vpop.f32.mrf.mxu2 }
 0x534   :  { %v844_v21 = vadd.f32 %v4031_v28, %v843_v19 }
 0x570   :  { %v692_v23 = vpop.xlane.xlu2 %691 }
 0x571   :  { %v696_v24 = vmul.f32 %v692_v23, %v3996_v7  ;;  %v947_v23 = vpack.c.bf16 %v844_v21, %v844_v21 }
 0x573   :  { %v698_v26 = vadd.f32 1e-05, %v696_v24  ;;  %v846_v24 = vpop.f32.mrf.mxu2  ;;  %v1320_v25 = vunpack.c.l.b16 %v947_v23  ;;  %v1049_v41 = vsel %vm145_vm1, %v947_v23, 0 }
 0x575   :  { %3489 = vrsqrt.f32 %v698_v26  ;;  %vm706_vm8 = vweird.f32 %v698_v26 }
 0x578   :  { %v695_v30 = vpop.xlane.xlu1 %694 }
 0x579   :  { %v697_v31 = vmul.f32 %v695_v30, %v3996_v7  ;;  %v847_v30 = vadd.f32 %v4031_v28, %v846_v24 }
 0x57b   :  { %v3490_v33 = vpop.eup %3489  ;;  %v699_v34 = vadd.f32 1e-05, %v697_v31  ;;  %v848_v27 = vpop.f32.mrf.mxu2  ;;  %v1011_v31 = vsel %vm145_vm1, %v945_v16, 0 }
 0x57c   :  { %v701_v36 = vmul.f32 %v3490_v33, %v698_v26  ;;  %vm707_vm7 = vweird.f32 %v3490_v33  ;;  %v4084_v26 = vpack.c.b16 %v1320_v25, %v1320_v25  ;;  %v849_v29 = vadd.f32 %v4031_v28, %v848_v27  ;;  %1020 = vmatpush.bf16.xpose.msra.mxu3 %v1011_v31 }
 0x57d   :  { %3491 = vrsqrt.f32 %v699_v34  ;;  %vm708_vm9 = vmor %vm706_vm8, %vm707_vm7  ;;  %vm716_vm11 = vweird.f32 %v699_v34  ;;  %vm2918_vm7 = vcmask 1045509   ;;  %vm2921_vm8 = vcmask 1046534  }
 0x57e   :  { %v702_v39 = vmul.f32 %v3490_v33, %v701_v36  ;;  %1322 = vrot.lane.b32.xlu1 %v4084_v26, %s3686_s1  ;;  %v4091_v32 = vpack.c.bf16 %v849_v29, %v849_v29 }
 0x580   :  { %v703_v42 = vmul.f32 0.5, %v702_v39  ;;  %v1087_v25 = vsel %vm145_vm1, %v4091_v32, 0 }
 0x582   :  { %v704_v44 = vsub.f32 1.5, %v703_v42 }
 0x583   :  { %v3492_v46 = vpop.eup %3491 }
 0x584   :  { %v705_v47 = vmul.f32 %v3490_v33, %v704_v44  ;;  %v711_v48 = vmul.f32 %v3492_v46, %v699_v34  ;;  %vm717_vm10 = vweird.f32 %v3492_v46  ;;  %v1368_v34 = vunpack.c.l.b16 %v4091_v32 }
 0x585   :  { %vm718_vm12 = vmor %vm716_vm11, %vm717_vm10 }
 0x586   :  { %v712_v50 = vmul.f32 %v3492_v46, %v711_v48  ;;  %v709_v53 = vsel %vm708_vm9, %v3490_v33, %v705_v47  ;;  %v948_v33 = vpack.c.bf16 %v847_v30, %v847_v30  ;;  %v4097_v37 = vpack.c.b16 %v1368_v34, %v1368_v34 }
 0x587   :  { %v720_v15 = vmul.f32 %v709_v53, %v3999_v11  ;;  %v4064_v11 = vpack.c.b16 %v1296_v9, %v1296_v9  ;;  %vm2924_vm9 = vcmask 1047559  }
 0x588   :  { %v713_v54 = vmul.f32 0.5, %v712_v50  ;;  %v1344_v36 = vunpack.c.l.b16 %v948_v33  ;;  %v1068_v20 = vsel %vm145_vm1, %v948_v33, 0 }
 0x589   :  { %v725_v61 = vmul.f32 %v3444_v10, %v720_v15  ;;  %1298 = vrot.lane.b32.xlu2 %v4064_v11, %s3686_s1 }
 0x58a   :  { %v714_v56 = vsub.f32 1.5, %v713_v54  ;;  %v4099_v38 = vpack.c.b16 %v1344_v36, %v1344_v36 }
 0x58b   :  { %v4056_v1 = vadd.f32 %v3445_v63, %v725_v61 }
 0x58c   :  { %v715_v58 = vmul.f32 %v3492_v46, %v714_v56  ;;  %1346 = vrot.lane.b32.xlu0 %v4099_v38, %s3686_s1 }
 0x58e   :  { %v719_v60 = vsel %vm718_vm12, %v3492_v46, %v715_v58 }
 0x58f   :  { %v721_v62 = vmul.f32 %v719_v60, %v4009_v18  ;;  %v4073_v18 = vpack.c.b16 %v1272_v17, %v1272_v17 }
 0x591   :  { %v726_v0 = vmul.f32 %v3444_v10, %v721_v62  ;;  %1250 = vrot.lane.b32.xlu2 %v4069_v14, %s3686_s1 }
 0x593   :  { %v4058_v4 = vadd.f32 %v3445_v63, %v726_v0 }
 0x595   :  { %v732_v2 = vpack.c.bf16 %v4058_v4, %v4056_v1 }
 0x597   :  { %3275 = vmatmul.msk.bf16.vlgmr.msra.gmra.mxu1 %vm120_vm0, %v732_v2 }
 0x598   :  { %1058 = vmatpush.bf16.xpose.msra.mxu1 %v1049_v41 }
 0x599   :  { %1274 = vrot.lane.b32.xlu2 %v4073_v18, %s3686_s1 }
 0x5a1   :  { %1404 = vrot.lane.b32.xlu2 %v4037_v40, %s3684_s4 }
 0x5a9   :  { %1430 = vrot.lane.b32.xlu2 %v4042_v51, %s3684_s4 }
 0x5b1   :  { %1370 = vrot.lane.b32.xlu2 %v4097_v37, %s3686_s1  ;;  %s3220_s1 = sshll.u32 %s4878_s22, 4  ;;  %s3221_s1 = int_to_ptr.hbm [resolvable:$true] %s3220_s1 }
 0x5e3   :  { %v1299_v32 = vpop.permute.xlu2 %1298 }
 0x5e4   :  { %v1304_v34 = vsel %vm218_vm2, %v1299_v32, 0 }
 0x5e5   :  { %1313 = vmatpush.bf16.msrb.mxu2 %v1304_v34 }
 0x5eb   :  { %v1251_v41 = vpop.permute.xlu2 %1250 }
 0x614   :  { %v765_v39 = vpop.f32.mrf.mxu1 }
 0x615   :  { %v766_v28 = vadd.f32 %v3447_v35, %v765_v39 }
 0x617   :  { %851 = vst.msk [vmem:[#allocation2] sm:$0xff] %vm120_vm0, %v766_v28 }
 0x61c   :  { %v767_v42 = vpop.f32.mrf.mxu1 }
 0x61d   :  { %v768_v43 = vadd.f32 %v3447_v35, %v767_v42 }
 0x61e   :  { %v853_v44 = vld [vmem:[#allocation2] sm:$0x1]  ;;  %v863_v45 = vld [vmem:[#allocation2 + $0x1] sm:$0x1]  ;;  %v872_v46 = vld [vmem:[#allocation2 + $0x2] sm:$0x1] }
 0x61f   :  { %852 = vst.msk [vmem:[#allocation2 + $0x8] sm:$0xff] %vm120_vm0, %v768_v43  ;;  %v881_v50 = vld [vmem:[#allocation2 + $0x3] sm:$0x1]  ;;  %v890_v56 = vld [vmem:[#allocation2 + $0x4] sm:$0x1]  ;;  %v1256_v43 = vsel %vm218_vm2, %v1251_v41, 0 }
 0x620   :  { %v899_v6 = vld [vmem:[#allocation2 + $0x5] sm:$0x1]  ;;  %v908_v9 = vld [vmem:[#allocation2 + $0x6] sm:$0x1]  ;;  %v917_v13 = vld [vmem:[#allocation2 + $0x7] sm:$0x1] }
 0x626   :  { %v854_v47 = vld [vmem:[#allocation2 + $0x8] sm:$0x1]  ;;  %v864_v48 = vld [vmem:[#allocation2 + $0x9] sm:$0x1]  ;;  %v873_v49 = vld [vmem:[#allocation2 + $0xa] sm:$0x1] }
 0x627   :  { %v857_v52 = vrot.slane %v854_v47, 7  ;;  %v867_v53 = vrot.slane %v864_v48, 7  ;;  %v876_v54 = vrot.slane %v873_v49, 7  ;;  %v882_v55 = vld [vmem:[#allocation2 + $0xb] sm:$0x1]  ;;  %v1203_v47 = vpop.permute.xlu0 %1202 }
 0x628   :  { %v885_v57 = vrot.slane %v882_v55, 7  ;;  %v891_v10 = vld [vmem:[#allocation2 + $0xc] sm:$0x1]  ;;  %v900_v15 = vld [vmem:[#allocation2 + $0xd] sm:$0x1]  ;;  %v1208_v49 = vsel %vm218_vm2, %v1203_v47, 0 }
 0x629   :  { %v859_v58 = vsel %vm858_vm13, %v857_v52, %v853_v44  ;;  %v868_v59 = vsel %vm858_vm13, %v867_v53, %v863_v45  ;;  %v877_v60 = vsel %vm858_vm13, %v876_v54, %v872_v46  ;;  %v894_v61 = vrot.slane %v891_v10, 7  ;;  %v909_v62 = vld [vmem:[#allocation2 + $0xe] sm:$0x1]  ;;  %v918_v63 = vld [vmem:[#allocation2 + $0xf] sm:$0x1]  ;;  %v1275_v45 = vpop.permute.xlu2 %1274 }
 0x62a   :  { %v886_v0 = vsel %vm858_vm13, %v885_v57, %v881_v50  ;;  %v903_v2 = vrot.slane %v900_v15, 7  ;;  %v912_v3 = vrot.slane %v909_v62, 7  ;;  %v921_v5 = vrot.slane %v918_v63, 7  ;;  %862 = vst.msk [vmem:[#allocation3] sm:$0x3] %vm861_vm14, %v859_v58 }
 0x62b   :  { %v895_v8 = vsel %vm858_vm13, %v894_v61, %v890_v56  ;;  %871 = vst.msk [vmem:[#allocation3 + $0x2] sm:$0x3] %vm861_vm14, %v868_v59  ;;  %v1280_v46 = vsel %vm218_vm2, %v1275_v45, 0  ;;  %v1227_v56 = vpop.permute.xlu1 %1226 }
 0x62c   :  { %v904_v12 = vsel %vm858_vm13, %v903_v2, %v899_v6  ;;  %880 = vst.msk [vmem:[#allocation3 + $0x4] sm:$0x3] %vm861_vm14, %v877_v60  ;;  %v913_v16 = vsel %vm858_vm13, %v912_v3, %v908_v9  ;;  %v922_v17 = vsel %vm858_vm13, %v921_v5, %v917_v13  ;;  %v1232_v57 = vsel %vm218_vm2, %v1227_v56, 0 }
 0x62d   :  { %889 = vst.msk [vmem:[#allocation3 + $0x6] sm:$0x3] %vm861_vm14, %v886_v0 }
 0x62e   :  { %898 = vst.msk [vmem:[#allocation3 + $0x8] sm:$0x3] %vm861_vm14, %v895_v8 }
 0x62f   :  { %907 = vst.msk [vmem:[#allocation3 + $0xa] sm:$0x3] %vm861_vm14, %v904_v12 }
 0x630   :  { %916 = vst.msk [vmem:[#allocation3 + $0xc] sm:$0x3] %vm861_vm14, %v913_v16 }
 0x631   :  { %v926_v19 = vld [vmem:[#allocation3] sm:$0x3]  ;;  %925 = vst.msk [vmem:[#allocation3 + $0xe] sm:$0x3] %vm861_vm14, %v922_v17  ;;  %v1405_v53 = vpop.permute.xlu2 %1404 }
 0x632   :  { %v934_v21 = vpack.c.bf16 %v926_v19, %v926_v19  ;;  %v927_v22 = vld [vmem:[#allocation3 + $0x2] sm:$0x3]  ;;  %v1410_v55 = vsel %vm145_vm1, %v1405_v53, 0  ;;  %v1347_v19 = vpop.permute.xlu0 %1346 }
 0x633   :  { %v935_v23 = vpack.c.bf16 %v927_v22, %v927_v22  ;;  %v928_v24 = vld [vmem:[#allocation3 + $0x4] sm:$0x3]  ;;  %1419 = vmatpush.bf16.xpose.msra.mxu2 %v1410_v55  ;;  %v1323_v10 = vpop.permute.xlu1 %1322 }
 0x634   :  { %3304 = vmatmul.msk.bf16.vlgmr.msrb.gmra.mxu3 %vm145_vm1, %v934_v21  ;;  %v4128_v27 = vpack.c.bf16 %v928_v24, %v928_v24  ;;  %v1400_v29 = vunpack.c.l.b16 %v934_v21  ;;  %v929_v35 = vld [vmem:[#allocation3 + $0x6] sm:$0x3]  ;;  %v1328_v15 = vsel %vm218_vm2, %v1323_v10, 0 }
 0x635   :  { %3305 = vmatmul.msk.bf16.vlgmr.msrb.gmra.mxu0 %vm145_vm1, %v935_v23  ;;  %v1426_v30 = vunpack.c.l.b16 %v935_v23  ;;  %1077 = vmatpush.bf16.xpose.msrb.mxu3 %v1068_v20  ;;  %v930_v36 = vld [vmem:[#allocation3 + $0x8] sm:$0x3]  ;;  %v4142_v28 = vpack.c.bf16 %v929_v35, %v929_v35  ;;  %v1352_v20 = vsel %vm218_vm2, %v1347_v19, 0 }
 0x636   :  { %3306 = vmatmul.msk.bf16.vlgmr.msrb.gmra.mxu1 %vm145_vm1, %v4128_v27  ;;  %v4133_v31 = vpack.c.b16 %v1400_v29, %v1400_v29  ;;  %1096 = vmatpush.bf16.xpose.msrb.mxu0 %v1087_v25  ;;  %v931_v39 = vld [vmem:[#allocation3 + $0xa] sm:$0x3]  ;;  %v4144_v42 = vpack.c.bf16 %v930_v36, %v930_v36 }
 0x637   :  { %v4135_v33 = vpack.c.b16 %v1426_v30, %v1426_v30  ;;  %v4149_v44 = vpack.c.bf16 %v931_v39, %v931_v39  ;;  %v932_v48 = vld [vmem:[#allocation3 + $0xc] sm:$0x3]  ;;  %1217 = vmatpush.bf16.msrb.mxu1 %v1208_v49 }
 0x638   :  { %1402 = vrot.lane.b32.xlu2 %v4133_v31, %s3684_s4  ;;  %v933_v50 = vld [vmem:[#allocation3 + $0xe] sm:$0x3]  ;;  %v4157_v52 = vpack.c.bf16 %v932_v48, %v932_v48 }
 0x639   :  { %1428 = vrot.lane.b32.xlu1 %v4135_v33, %s3684_s4  ;;  %v4159_v54 = vpack.c.bf16 %v933_v50, %v933_v50  ;;  %v4188_v32 = vpop.permute.xlu2 %1430 }
 0x641   :  { %v4190_v34 = vpop.permute.xlu2 %1370 }
 0x644   :  { %3307 = vmatmul.msk.bf16.vlgmr.msra.gmra.mxu3 %vm145_vm1, %v4142_v28 }
 0x645   :  { %3308 = vmatmul.msk.bf16.vlgmr.msra.gmra.mxu0 %vm145_vm1, %v4144_v42  ;;  %1241 = vmatpush.bf16.msra.mxu3 %v1232_v57 }
 0x646   :  { %3309 = vmatmul.msk.bf16.vlgmr.msra.gmra.mxu1 %vm145_vm1, %v4149_v44  ;;  %1265 = vmatpush.bf16.msra.mxu0 %v1256_v43 }
 0x647   :  { %1289 = vmatpush.bf16.msra.mxu1 %v1280_v46 }
 0x654   :  { %3310 = vmatmul.msk.bf16.vlgmr.msrb.gmra.mxu3 %vm145_vm1, %v4157_v52 }
 0x655   :  { %3311 = vmatmul.msk.bf16.vlgmr.msrb.gmra.mxu0 %vm145_vm1, %v4159_v54  ;;  %1337 = vmatpush.bf16.msrb.mxu3 %v1328_v15 }
 0x656   :  { %1361 = vmatpush.bf16.msrb.mxu0 %v1352_v20 }
 0x692   :  { %v4192_v35 = vpop.permute.xlu2 %1402 }
 0x6ab   :  { %v4194_v36 = vpop.permute.xlu1 %1428 }
 0x6b2   :  { %v984_v58 = vpop.f32.mrf.mxu0 }
 0x6b3   :  { %v1003_v59 = vpop.f32.mrf.mxu1  ;;  %v1106_v60 = vsel %vm1102_vm15, %v984_v58, -inf }
 0x6b4   :  { %1107 = vmax.xlane.f32.xlu0 %v1106_v60  ;;  %v1109_v61 = vsel %vm1102_vm15, %v1003_v59, -inf }
 0x6b5   :  { %1110 = vmax.xlane.f32.xlu2 %v1109_v61 }
 0x6b7   :  { %v965_v62 = vpop.f32.mrf.mxu3 }
 0x6b8   :  { %v1103_v63 = vsel %vm1102_vm15, %v965_v62, -inf }
 0x6b9   :  { %1104 = vmax.xlane.f32.xlu1 %v1103_v63 }
 0x6ba   :  { %v986_v0 = vpop.f32.mrf.mxu0 }
 0x6bb   :  { %v1005_v2 = vpop.f32.mrf.mxu1 }
 0x6bf   :  { %v967_v3 = vpop.f32.mrf.mxu3 }
 0x6c2   :  { %v1041_v5 = vpop.f32.mrf.mxu0 }
 0x6c3   :  { %v1060_v6 = vpop.f32.mrf.mxu1  ;;  %v1115_v8 = vsel %vm1102_vm15, %v1041_v5, -inf }
 0x6c4   :  { %1116 = vmax.xlane.f32.xlu0 %v1115_v8  ;;  %v1118_v9 = vsel %vm1102_vm15, %v1060_v6, -inf  ;;  %v1530_v8 = vunpack.c.l.b16 %v4149_v44 }
 0x6c5   :  { %1119 = vmax.xlane.f32.xlu1 %v1118_v9  ;;  %v1452_v9 = vunpack.c.l.b16 %v4128_v27  ;;  %v1478_v27 = vunpack.c.l.b16 %v4142_v28 }
 0x6c7   :  { %v4173_v12 = vpop.f32.mrf.mxu3 }
 0x6c8   :  { %v1112_v17 = vsel %vm1102_vm15, %v4173_v12, -inf }
 0x6ca   :  { %v1043_v13 = vpop.f32.mrf.mxu0 }
 0x6cb   :  { %v1062_v16 = vpop.f32.mrf.mxu1  ;;  %v1504_v13 = vunpack.c.l.b16 %v4144_v42  ;;  %v4236_v42 = vpack.c.b16 %v1478_v27, %v1478_v27 }
 0x6cc   :  { %1113 = vmax.xlane.f32.xlu0 %v1112_v17  ;;  %v4223_v16 = vpack.c.b16 %v1452_v9, %v1452_v9 }
 0x6cd   :  { %v4227_v17 = vpack.c.b16 %v1504_v13, %v1504_v13 }
 0x6cf   :  { %v1024_v21 = vpop.f32.mrf.mxu3 }
 0x6d0   :  { %v1556_v21 = vunpack.c.l.b16 %v4157_v52 }
 0x6d2   :  { %v4178_v22 = vpop.f32.mrf.mxu0 }
 0x6d3   :  { %v1124_v23 = vsel %vm1102_vm15, %v4178_v22, -inf }
 0x6d4   :  { %1125 = vmax.xlane.f32.xlu2 %v1124_v23 }
 0x6d7   :  { %v4182_v24 = vpop.f32.mrf.mxu3 }
 0x6d8   :  { %v1121_v25 = vsel %vm1102_vm15, %v4182_v24, -inf }
 0x6d9   :  { %1122 = vmax.xlane.f32.xlu1 %v1121_v25 }
 0x6da   :  { %v1100_v29 = vpop.f32.mrf.mxu0 }
 0x6db   :  { %v4243_v29 = vpack.c.b16 %v1556_v21, %v1556_v21 }
 0x6df   :  { %v1081_v30 = vpop.f32.mrf.mxu3 }
 0x6ec   :  { %1508 = vrot.lane.b32.xlu2 %v4064_v11, %s3684_s4 }
 0x727   :  { %v1108_v39 = vpop.xlane.xlu0 %1107 }
 0x728   :  { %v1128_v41 = vsub.f32 %v984_v58, %v1108_v39  ;;  %v1111_v43 = vpop.xlane.xlu2 %1110 }
 0x729   :  { %v1129_v45 = vsub.f32 %v1003_v59, %v1111_v43 }
 0x72a   :  { %v1137_v46 = vmul.f32 1.442695, %v1128_v41 }
 0x72b   :  { %v1139_v47 = vmul.f32 1.442695, %v1129_v45 }
 0x72c   :  { %3493 = vpow2.f32 %v1137_v46  ;;  %v1105_v48 = vpop.xlane.xlu1 %1104 }
 0x72d   :  { %3495 = vpow2.f32 %v1139_v47  ;;  %v1127_v49 = vsub.f32 %v965_v62, %v1105_v48 }
 0x72f   :  { %v1135_v50 = vmul.f32 1.442695, %v1127_v49 }
 0x731   :  { %3497 = vpow2.f32 %v1135_v50 }
 0x732   :  { %v4196_v53 = vpop.eup %3493 }
 0x733   :  { %v4198_v55 = vpop.eup %3495  ;;  %v1154_v56 = vsel %vm1102_vm15, %v4196_v53, 0.0 }
 0x734   :  { %1155 = vadd.xlane.f32.xlu0 %v1154_v56  ;;  %v1157_v57 = vsel %vm1102_vm15, %v4198_v55, 0.0 }
 0x735   :  { %1158 = vadd.xlane.f32.xlu1 %v1157_v57 }
 0x737   :  { %v4204_v10 = vpop.eup %3497  ;;  %v1117_v15 = vpop.xlane.xlu0 %1116 }
 0x738   :  { %v1131_v58 = vsub.f32 %v1041_v5, %v1117_v15  ;;  %v1120_v59 = vpop.xlane.xlu1 %1119  ;;  %v1151_v60 = vsel %vm1102_vm15, %v4204_v10, 0.0 }
 0x739   :  { %v1132_v61 = vsub.f32 %v1060_v6, %v1120_v59  ;;  %1152 = vadd.xlane.f32.xlu2 %v1151_v60  ;;  %v4217_v6 = vpack.c.b16 %v1530_v8, %v1530_v8  ;;  %v1436_v60 = vsel %vm145_vm1, %v4188_v32, 0 }
 0x73a   :  { %v1143_v62 = vmul.f32 1.442695, %v1131_v58 }
 0x73b   :  { %v1145_v63 = vmul.f32 1.442695, %v1132_v61 }
 0x73c   :  { %3499 = vpow2.f32 %v1143_v62 }
 0x73d   :  { %3501 = vpow2.f32 %v1145_v63 }
 0x73f   :  { %v1114_v19 = vpop.xlane.xlu0 %1113 }
 0x740   :  { %v1130_v23 = vsub.f32 %v4173_v12, %v1114_v19  ;;  %v1582_v19 = vunpack.c.l.b16 %v4159_v54 }
 0x742   :  { %v4208_v0 = vpop.eup %3499  ;;  %v1141_v30 = vmul.f32 1.442695, %v1130_v23 }
 0x743   :  { %v4210_v2 = vpop.eup %3501  ;;  %v1163_v3 = vsel %vm1102_vm15, %v4208_v0, 0.0 }
 0x744   :  { %1164 = vadd.xlane.f32.xlu0 %v1163_v3  ;;  %v1166_v5 = vsel %vm1102_vm15, %v4210_v2, 0.0 }
 0x745   :  { %1167 = vadd.xlane.f32.xlu2 %v1166_v5 }
 0x74c   :  { %v1123_v44 = vpop.xlane.xlu1 %1122 }
 0x74d   :  { %v1133_v20 = vsub.f32 %v4182_v24, %v1123_v44  ;;  %v1126_v24 = vpop.xlane.xlu2 %1125 }
 0x74e   :  { %1532 = vrot.lane.b32.xlu1 %v4217_v6, %s3684_s4  ;;  %v1134_v48 = vsub.f32 %v4178_v22, %v1126_v24 }
 0x74f   :  { %v1147_v25 = vmul.f32 1.442695, %v1133_v20  ;;  %v4306_v20 = vpack.c.b16 %v1582_v19, %v1582_v19 }
 0x750   :  { %v1149_v15 = vmul.f32 1.442695, %v1134_v48 }
 0x751   :  { %3503 = vpow2.f32 %v1147_v25 }
 0x752   :  { %3505 = vpow2.f32 %v1141_v30 }
 0x755   :  { %v1509_v41 = vpop.permute.xlu2 %1508 }
 0x756   :  { %1454 = vrot.lane.b32.xlu1 %v4223_v16, %s3684_s4  ;;  %v1514_v27 = vsel %vm145_vm1, %v1509_v41, 0 }
 0x757   :  { %v4247_v28 = vpop.eup %3503 }
 0x758   :  { %1506 = vrot.lane.b32.xlu0 %v4227_v17, %s3684_s4  ;;  %v4251_v39 = vpop.eup %3505  ;;  %v1169_v52 = vsel %vm1102_vm15, %v4247_v28, 0.0 }
 0x759   :  { %v1160_v12 = vsel %vm1102_vm15, %v4251_v39, 0.0 }
 0x75d   :  { %1534 = vrot.lane.b32.xlu2 %v4084_v26, %s3684_s4 }
 0x765   :  { %1456 = vrot.lane.b32.xlu2 %v4069_v14, %s3684_s4 }
 0x76d   :  { %1480 = vrot.lane.b32.xlu2 %v4236_v42, %s3684_s4 }
 0x775   :  { %1558 = vrot.lane.b32.xlu2 %v4243_v29, %s3684_s4 }
 0x77d   :  { %1808 = vrot.lane.b32.xlu2 %v4084_v26, %s3685_s23 }
 0x780   :  { %1170 = vadd.xlane.f32.xlu1 %v1169_v52 }
 0x782   :  { %1161 = vadd.xlane.f32.xlu0 %v1160_v12 }
 0x785   :  { %1914 = vrot.lane.b32.xlu2 %v4037_v40, %s3687_s5 }
 0x78d   :  { %2006 = vrot.lane.b32.xlu2 %v4064_v11, %s3687_s5 }
 0x796   :  { %1482 = vrot.lane.b32.xlu0 %v4073_v18, %s3684_s4 }
 0x799   :  { %1586 = vrot.lane.b32.xlu1 %v4097_v37, %s3684_s4 }
 0x7a1   :  { %1703 = vrot.lane.b32.xlu1 %v4037_v40, %s3685_s23 }
 0x7a7   :  { %v1156_v43 = vpop.xlane.xlu0 %1155 }
 0x7a8   :  { %3507 = vrcp.f32 %v1156_v43  ;;  %v1159_v45 = vpop.xlane.xlu1 %1158 }
 0x7a9   :  { %3509 = vrcp.f32 %v1159_v45  ;;  %1787 = vrot.lane.b32.xlu1 %v4064_v11, %s3685_s23 }
 0x7ac   :  { %v1153_v46 = vpop.xlane.xlu2 %1152 }
 0x7ad   :  { %3511 = vrcp.f32 %v1153_v46 }
 0x7ae   :  { %v3508_v47 = vpop.eup %3507  ;;  %3513 = vpow2.f32 %v1149_v15 }
 0x7af   :  { %v3510_v49 = vpop.eup %3509  ;;  %v1184_v50 = vmul.f32 %v3508_v47, %v4196_v53 }
 0x7b0   :  { %v1185_v56 = vmul.f32 %v3510_v49, %v4198_v55  ;;  %v1376_v55 = vsel %vm218_vm2, %v4190_v34, 0 }
 0x7b1   :  { %v1192_v57 = vpack.c.bf16 %v1184_v50, %v1184_v50  ;;  %1745 = vrot.lane.b32.xlu1 %v4069_v14, %s3685_s23 }
 0x7b2   :  { %v1193_v58 = vpack.c.bf16 %v1185_v56, %v1185_v56 }
 0x7b3   :  { %v3512_v59 = vpop.eup %3511  ;;  %3313 = vmatmul.msk.bf16.vlgmr.msra.gmra.mxu3 %vm145_vm1, %v1192_v57 }
 0x7b4   :  { %v1183_v61 = vmul.f32 %v3512_v59, %v4204_v10  ;;  %3314 = vmatmul.msk.bf16.vlgmr.msra.gmra.mxu0 %vm145_vm1, %v1193_v58  ;;  %1445 = vmatpush.bf16.xpose.msra.mxu3 %v1436_v60  ;;  %v4284_v32 = vpop.eup %3513 }
 0x7b5   :  { %v1172_v5 = vsel %vm1102_vm15, %v4284_v32, 0.0 }
 0x7b6   :  { %v1191_v22 = vpack.c.bf16 %v1183_v61, %v1183_v61 }
 0x7b7   :  { %v1165_v53 = vpop.xlane.xlu0 %1164 }
 0x7b8   :  { %3515 = vrcp.f32 %v1165_v53  ;;  %v1168_v62 = vpop.xlane.xlu2 %1167  ;;  %3312 = vmatmul.msk.bf16.vlgmr.msrb.gmra.mxu1 %vm145_vm1, %v1191_v22 }
 0x7b9   :  { %3517 = vrcp.f32 %v1168_v62  ;;  %1766 = vrot.lane.b32.xlu1 %v4073_v18, %s3685_s23  ;;  %1385 = vmatpush.bf16.msrb.mxu1 %v1376_v55 }
 0x7be   :  { %v3516_v10 = vpop.eup %3515 }
 0x7bf   :  { %v3518_v63 = vpop.eup %3517  ;;  %v1187_v3 = vmul.f32 %v3516_v10, %v4208_v0 }
 0x7c0   :  { %v1188_v34 = vmul.f32 %v3518_v63, %v4210_v2  ;;  %v1535_v8 = vpop.permute.xlu2 %1534  ;;  %1173 = vadd.xlane.f32.xlu0 %v1172_v5  ;;  %v1533_v21 = vpop.permute.xlu1 %1532 }
 0x7c1   :  { %v1195_v9 = vpack.c.bf16 %v1187_v3, %v1187_v3  ;;  %1912 = vrot.lane.b32.xlu1 %v4133_v31, %s3687_s5  ;;  %v1540_v44 = vsel %vm145_vm1, %v1535_v8, 0 }
 0x7c2   :  { %v1196_v13 = vpack.c.bf16 %v1188_v34, %v1188_v34 }
 0x7c3   :  { %3316 = vmatmul.msk.bf16.vlgmr.msrb.gmra.mxu2 %vm145_vm1, %v1195_v9 }
 0x7c4   :  { %3317 = vmatmul.msk.bf16.vlgmr.msrb.gmra.mxu3 %vm145_vm1, %v1196_v13  ;;  %1523 = vmatpush.bf16.xpose.msrb.mxu2 %v1514_v27 }
 0x7c5   :  { %1549 = vmatpush.bf16.xpose.msrb.mxu3 %v1540_v44 }
 0x7c8   :  { %v1457_v0 = vpop.permute.xlu2 %1456 }
 0x7c9   :  { %v1462_v2 = vsel %vm145_vm1, %v1457_v0, 0  ;;  %1960 = vrot.lane.b32.xlu1 %v4069_v14, %s3687_s5 }
 0x7ca   :  { %1471 = vmatpush.bf16.xpose.msra.mxu0 %v1462_v2  ;;  %v1507_v23 = vpop.permute.xlu0 %1506 }
 0x7d0   :  { %v1481_v55 = vpop.permute.xlu2 %1480 }
 0x7d3   :  { %3320 = vmatmul.msk.bf16.vlgmr.msra.gmra.mxu2 %vm145_vm1, %v4192_v35  ;;  %v1455_v35 = vpop.permute.xlu1 %1454 }
 0x7d4   :  { %3321 = vmatmul.msk.bf16.vlgmr.msra.gmra.mxu3 %vm145_vm1, %v4194_v36  ;;  %1560 = vrot.lane.b32.xlu0 %v4099_v38, %s3684_s4 }
 0x7dc   :  { %1584 = vrot.lane.b32.xlu0 %v4306_v20, %s3684_s4  ;;  %s4905_s4 = smov 16  }
 0x7e3   :  { %3324 = vmatmul.msk.bf16.vlgmr.msrb.gmra.mxu2 %vm145_vm1, %v1507_v23 }
 0x7e4   :  { %3325 = vmatmul.msk.bf16.vlgmr.msrb.gmra.mxu3 %vm145_vm1, %v1533_v21  ;;  %1724 = vrot.lane.b32.xlu0 %v4042_v51, %s3685_s23 }
 0x7ec   :  { %1937 = vrot.lane.b32.xlu0 %v4042_v51, %s3687_s5 }
 0x7f3   :  { %v1171_v36 = vpop.xlane.xlu1 %1170 }
 0x7f4   :  { %3519 = vrcp.f32 %v1171_v36  ;;  %1829 = vrot.lane.b32.xlu0 %v4099_v38, %s3685_s23 }
 0x7f5   :  { %v1162_v54 = vpop.xlane.xlu0 %1161 }
 0x7f6   :  { %3521 = vrcp.f32 %v1162_v54 }
 0x7fa   :  { %v3520_v25 = vpop.eup %3519 }
 0x7fb   :  { %v1189_v30 = vmul.f32 %v3520_v25, %v4247_v28 }
 0x7fc   :  { %v3522_v52 = vpop.eup %3521  ;;  %1850 = vrot.lane.b32.xlu0 %v4097_v37, %s3685_s23  ;;  %s4906_s23 = smov 24  }
 0x7fd   :  { %v1197_v12 = vpack.c.bf16 %v1189_v30, %v1189_v30  ;;  %v1186_v24 = vmul.f32 %v3522_v52, %v4251_v39 }
 0x7ff   :  { %v1194_v41 = vpack.c.bf16 %v1186_v24, %v1186_v24  ;;  %3318 = vmatmul.msk.bf16.vlgmr.msrb.gmra.mxu0 %vm145_vm1, %v1197_v12 }
 0x801   :  { %3315 = vmatmul.msk.bf16.vlgmr.msra.gmra.mxu1 %vm145_vm1, %v1194_v41 }
 0x804   :  { %1935 = vrot.lane.b32.xlu0 %v4135_v33, %s3687_s5 }
 0x808   :  { %v1483_v43 = vpop.permute.xlu0 %1482 }
 0x809   :  { %v1488_v45 = vsel %vm145_vm1, %v1483_v43, 0 }
 0x80a   :  { %1497 = vmatpush.bf16.xpose.msra.mxu1 %v1488_v45 }
 0x80b   :  { %v1587_v28 = vpop.permute.xlu1 %1586 }
 0x80c   :  { %2029 = vrot.lane.b32.xlu0 %v4084_v26, %s3687_s5  ;;  %v1592_v53 = vsel %vm145_vm1, %v1587_v28, 0 }
 0x80f   :  { %3322 = vmatmul.msk.bf16.vlgmr.msra.gmra.mxu0 %vm145_vm1, %v1455_v35 }
 0x813   :  { %v1704_v46 = vpop.permute.xlu1 %1703 }
 0x814   :  { %v1709_v39 = vsel %vm218_vm2, %v1704_v46, 0 }
 0x815   :  { %1718 = vmatpush.bf16.msra.mxu2 %v1709_v39 }
 0x81b   :  { %v1788_v47 = vpop.permute.xlu1 %1787 }
 0x81c   :  { %v1793_v48 = vsel %vm218_vm2, %v1788_v47, 0 }
 0x81d   :  { %1802 = vmatpush.bf16.msrb.mxu2 %v1793_v48 }
 0x823   :  { %v1746_v62 = vpop.permute.xlu1 %1745 }
 0x824   :  { %v1751_v34 = vsel %vm218_vm2, %v1746_v62, 0 }
 0x82b   :  { %v1767_v8 = vpop.permute.xlu1 %1766 }
 0x82c   :  { %v1772_v27 = vsel %vm218_vm2, %v1767_v8, 0 }
 0x831   :  { %v1267_v49 = vpop.f32.mrf.mxu0 }
 0x832   :  { %1393 = vst.msk [vmem:[#allocation3 + $0x4] sm:$0x3] %vm1102_vm15, %v1267_v49 }
 0x833   :  { %v1174_v50 = vpop.xlane.xlu0 %1173 }
 0x834   :  { %3523 = vrcp.f32 %v1174_v50 }
 0x835   :  { %v1219_v56 = vpop.f32.mrf.mxu1 }
 0x836   :  { %1391 = vst.msk [vmem:[#allocation3] sm:$0x3] %vm1102_vm15, %v1219_v56  ;;  %v1243_v57 = vpop.f32.mrf.mxu3 }
 0x837   :  { %1392 = vst.msk [vmem:[#allocation3 + $0x2] sm:$0x3] %vm1102_vm15, %v1243_v57 }
 0x839   :  { %v1269_v15 = vpop.f32.mrf.mxu0 }
 0x83a   :  { %v3524_v58 = vpop.eup %3523 }
 0x83b   :  { %v1190_v59 = vmul.f32 %v3524_v58, %v4284_v32  ;;  %v1559_v32 = vpop.permute.xlu2 %1558 }
 0x83d   :  { %v1198_v60 = vpack.c.bf16 %v1190_v59, %v1190_v59  ;;  %v1221_v61 = vpop.f32.mrf.mxu1 }
 0x83e   :  { %v1245_v22 = vpop.f32.mrf.mxu3 }
 0x83f   :  { %3319 = vmatmul.msk.bf16.vlgmr.msrb.gmra.mxu1 %vm145_vm1, %v1198_v60  ;;  %v4359_v60 = vpop.permute.xlu1 %1912 }
 0x840   :  { %1601 = vmatpush.bf16.xpose.msrb.mxu1 %v1592_v53 }
 0x843   :  { %v1809_v0 = vpop.permute.xlu2 %1808 }
 0x844   :  { %v1814_v36 = vsel %vm218_vm2, %v1809_v0, 0 }
 0x846   :  { %v1315_v10 = vpop.f32.mrf.mxu2  ;;  %v1561_v63 = vpop.permute.xlu0 %1560 }
 0x847   :  { %1395 = vst.msk [vmem:[#allocation3 + $0x8] sm:$0x3] %vm1102_vm15, %v1315_v10  ;;  %v1566_v3 = vsel %vm145_vm1, %v1561_v63, 0  ;;  %v1339_v5 = vpop.f32.mrf.mxu3  ;;  %v4364_v53 = vpop.permute.xlu1 %1960 }
 0x848   :  { %1396 = vst.msk [vmem:[#allocation3 + $0xa] sm:$0x3] %vm1102_vm15, %v1339_v5  ;;  %1575 = vmatpush.bf16.xpose.msrb.mxu0 %v1566_v3 }
 0x84b   :  { %v4361_v61 = vpop.permute.xlu2 %1914 }
 0x84e   :  { %v1317_v9 = vpop.f32.mrf.mxu2  ;;  %v1585_v13 = vpop.permute.xlu0 %1584 }
 0x84f   :  { %v1341_v44 = vpop.f32.mrf.mxu3  ;;  %3323 = vmatmul.msk.bf16.vlgmr.msra.gmra.mxu1 %vm145_vm1, %v1481_v55  ;;  %3326 = vmatmul.msk.bf16.vlgmr.msrb.gmra.mxu0 %vm145_vm1, %v1559_v32 }
 0x850   :  { %1760 = vmatpush.bf16.msra.mxu0 %v1751_v34  ;;  %1781 = vmatpush.bf16.msra.mxu1 %v1772_v27 }
 0x853   :  { %v4366_v55 = vpop.permute.xlu2 %2006 }
 0x856   :  { %v1421_v2 = vpop.f32.mrf.mxu2  ;;  %v1725_v19 = vpop.permute.xlu0 %1724 }
 0x857   :  { %v1730_v21 = vsel %vm218_vm2, %v1725_v19, 0  ;;  %v1447_v23 = vpop.f32.mrf.mxu3  ;;  %v1607_v35 = vsel %vm1102_vm15, %v1421_v2, -inf }
 0x858   :  { %v1610_v54 = vsel %vm1102_vm15, %v1447_v23, -inf  ;;  %1739 = vmatpush.bf16.msra.mxu3 %v1730_v21  ;;  %1608 = vmax.xlane.f32.xlu1 %v1607_v35 }
 0x859   :  { %1611 = vmax.xlane.f32.xlu2 %v1610_v54 }
 0x85c   :  { %1823 = vmatpush.bf16.msrb.mxu3 %v1814_v36 }
 0x85e   :  { %v1423_v25 = vpop.f32.mrf.mxu2  ;;  %v4349_v30 = vpop.permute.xlu0 %1937 }
 0x85f   :  { %v1449_v52 = vpop.f32.mrf.mxu3  ;;  %3327 = vmatmul.msk.bf16.vlgmr.msrb.gmra.mxu1 %vm145_vm1, %v1585_v13 }
 0x866   :  { %v1525_v12 = vpop.f32.mrf.mxu2  ;;  %v1830_v24 = vpop.permute.xlu0 %1829 }
 0x867   :  { %v1835_v41 = vsel %vm218_vm2, %v1830_v24, 0  ;;  %v1551_v43 = vpop.f32.mrf.mxu3  ;;  %v1619_v45 = vsel %vm1102_vm15, %v1525_v12, -inf }
 0x868   :  { %1620 = vmax.xlane.f32.xlu0 %v1619_v45  ;;  %v1622_v28 = vsel %vm1102_vm15, %v1551_v43, -inf  ;;  %1844 = vmatpush.bf16.msrb.mxu0 %v1835_v41 }
 0x869   :  { %1623 = vmax.xlane.f32.xlu2 %v1622_v28 }
 0x86e   :  { %v1527_v46 = vpop.f32.mrf.mxu2  ;;  %v1851_v39 = vpop.permute.xlu0 %1850 }
 0x86f   :  { %v1856_v47 = vsel %vm218_vm2, %v1851_v39, 0  ;;  %v1553_v48 = vpop.f32.mrf.mxu3 }
 0x870   :  { %1865 = vmatpush.bf16.msrb.mxu1 %v1856_v47 }
 0x876   :  { %v4368_v10 = vpop.permute.xlu0 %1935 }
 0x87c   :  { %v1363_v49 = vpop.f32.mrf.mxu0 }
 0x87d   :  { %1397 = vst.msk [vmem:[#allocation3 + $0xc] sm:$0x3] %vm1102_vm15, %v1363_v49 }
 0x87e   :  { %v1291_v50 = vpop.f32.mrf.mxu1  ;;  %v4372_v0 = vpop.permute.xlu0 %2029 }
 0x87f   :  { %1394 = vst.msk [vmem:[#allocation3 + $0x6] sm:$0x3] %vm1102_vm15, %v1291_v50 }
 0x884   :  { %v1365_v56 = vpop.f32.mrf.mxu0 }
 0x886   :  { %v1293_v57 = vpop.f32.mrf.mxu1 }
 0x88c   :  { %v1473_v15 = vpop.f32.mrf.mxu0 }
 0x88d   :  { %v1613_v58 = vsel %vm1102_vm15, %v1473_v15, -inf }
 0x88e   :  { %1614 = vmax.xlane.f32.xlu1 %v1613_v58 }
 0x894   :  { %v1475_v59 = vpop.f32.mrf.mxu0 }
 0x8bc   :  { %v1387_v22 = vpop.f32.mrf.mxu1 }
 0x8bd   :  { %1398 = vst.msk [vmem:[#allocation3 + $0xe] sm:$0x3] %vm1102_vm15, %v1387_v22 }
 0x8c4   :  { %v1389_v62 = vpop.f32.mrf.mxu1 }
 0x8cb   :  { %v1609_v63 = vpop.xlane.xlu1 %1608 }
 0x8cc   :  { %v1612_v3 = vpop.xlane.xlu2 %1611  ;;  %v1631_v5 = vsub.f32 %v1421_v2, %v1609_v63  ;;  %v1499_v34 = vpop.f32.mrf.mxu1 }
 0x8cd   :  { %v1632_v32 = vsub.f32 %v1447_v23, %v1612_v3  ;;  %v1577_v8 = vpop.f32.mrf.mxu0  ;;  %v1616_v9 = vsel %vm1102_vm15, %v1499_v34, -inf }
 0x8ce   :  { %v1639_v13 = vmul.f32 1.442695, %v1631_v5  ;;  %1617 = vmax.xlane.f32.xlu0 %v1616_v9  ;;  %v1625_v27 = vsel %vm1102_vm15, %v1577_v8, -inf }
 0x8cf   :  { %v1641_v44 = vmul.f32 1.442695, %v1632_v32  ;;  %1626 = vmax.xlane.f32.xlu2 %v1625_v27 }
 0x8d0   :  { %3525 = vpow2.f32 %v1639_v13 }
 0x8d1   :  { %3527 = vpow2.f32 %v1641_v44 }
 0x8d4   :  { %v1501_v19 = vpop.f32.mrf.mxu1 }
 0x8d5   :  { %v1579_v21 = vpop.f32.mrf.mxu0 }
 0x8d6   :  { %v3526_v35 = vpop.eup %3525 }
 0x8d7   :  { %v3528_v36 = vpop.eup %3527  ;;  %v1655_v2 = vsel %vm1102_vm15, %v3526_v35, 0.0 }
 0x8d8   :  { %v1658_v23 = vsel %vm1102_vm15, %v3528_v36, 0.0  ;;  %1656 = vadd.xlane.f32.xlu0 %v1655_v2 }
 0x8d9   :  { %1659 = vadd.xlane.f32.xlu2 %v1658_v23 }
 0x8db   :  { %v1621_v54 = vpop.xlane.xlu0 %1620 }
 0x8dc   :  { %v1635_v25 = vsub.f32 %v1525_v12, %v1621_v54  ;;  %v1624_v52 = vpop.xlane.xlu2 %1623  ;;  %v1603_v24 = vpop.f32.mrf.mxu1 }
 0x8dd   :  { %v1628_v41 = vsel %vm1102_vm15, %v1603_v24, -inf  ;;  %v1636_v28 = vsub.f32 %v1551_v43, %v1624_v52 }
 0x8de   :  { %v1647_v45 = vmul.f32 1.442695, %v1635_v25  ;;  %1629 = vmax.xlane.f32.xlu1 %v1628_v41  ;;  %v1920_v41 = vsel %vm145_vm1, %v4361_v61, 0 }
 0x8df   :  { %v1649_v46 = vmul.f32 1.442695, %v1636_v28 }
 0x8e0   :  { %3529 = vpow2.f32 %v1647_v45  ;;  %v1943_v45 = vsel %vm145_vm1, %v4349_v30, 0 }
 0x8e1   :  { %3531 = vpow2.f32 %v1649_v46 }
 0x8e4   :  { %v1605_v39 = vpop.f32.mrf.mxu1 }
 0x8e5   :  { %v2012_v39 = vsel %vm145_vm1, %v4366_v55, 0 }
 0x8e6   :  { %v3530_v47 = vpop.eup %3529 }
 0x8e7   :  { %v1667_v48 = vsel %vm1102_vm15, %v3530_v47, 0.0  ;;  %v4378_v49 = vpop.eup %3531 }
 0x8e8   :  { %1668 = vadd.xlane.f32.xlu2 %v1667_v48  ;;  %v1670_v12 = vsel %vm1102_vm15, %v4378_v49, 0.0 }
 0x8ec   :  { %1983 = vrot.lane.b32.xlu0 %v4073_v18, %s3687_s5 }
 0x8f0   :  { %1671 = vadd.xlane.f32.xlu2 %v1670_v12 }
 0x8f7   :  { %2004 = vrot.lane.b32.xlu1 %v4227_v17, %s3687_s5 }
 0x901   :  { %v1615_v43 = vpop.xlane.xlu1 %1614 }
 0x902   :  { %v1633_v50 = vsub.f32 %v1473_v15, %v1615_v43 }
 0x904   :  { %v1643_v56 = vmul.f32 1.442695, %v1633_v50  ;;  %v1966_v50 = vsel %vm145_vm1, %v4364_v53, 0 }
 0x906   :  { %3533 = vpow2.f32 %v1643_v56 }
 0x90c   :  { %v4386_v57 = vpop.eup %3533 }
 0x90d   :  { %v1661_v58 = vsel %vm1102_vm15, %v4386_v57, 0.0 }
 0x90e   :  { %1662 = vadd.xlane.f32.xlu2 %v1661_v58 }
 0x926   :  { %1958 = vrot.lane.b32.xlu2 %v4223_v16, %s3687_s5 }
 0x941   :  { %v1618_v59 = vpop.xlane.xlu0 %1617 }
 0x942   :  { %v1634_v22 = vsub.f32 %v1499_v34, %v1618_v59  ;;  %v1627_v62 = vpop.xlane.xlu2 %1626 }
 0x943   :  { %v1637_v63 = vsub.f32 %v1577_v8, %v1627_v62 }
 0x944   :  { %v1645_v3 = vmul.f32 1.442695, %v1634_v22 }
 0x945   :  { %v1651_v5 = vmul.f32 1.442695, %v1637_v63 }
 0x946   :  { %3535 = vpow2.f32 %v1645_v3 }
 0x947   :  { %3537 = vpow2.f32 %v1651_v5 }
 0x94b   :  { %v1657_v15 = vpop.xlane.xlu0 %1656 }
 0x94c   :  { %v4392_v32 = vpop.eup %3535  ;;  %v1660_v9 = vpop.xlane.xlu2 %1659  ;;  %3539 = vrcp.f32 %v1657_v15 }
 0x94d   :  { %v4394_v13 = vpop.eup %3537  ;;  %3541 = vrcp.f32 %v1660_v9  ;;  %v1664_v27 = vsel %vm1102_vm15, %v4392_v32, 0.0 }
 0x94e   :  { %v1673_v34 = vsel %vm1102_vm15, %v4394_v13, 0.0  ;;  %1665 = vadd.xlane.f32.xlu0 %v1664_v27 }
 0x94f   :  { %1674 = vadd.xlane.f32.xlu1 %v1673_v34 }
 0x951   :  { %v1630_v8 = vpop.xlane.xlu1 %1629 }
 0x952   :  { %v3540_v44 = vpop.eup %3539  ;;  %v1638_v19 = vsub.f32 %v1603_v24, %v1630_v8 }
 0x953   :  { %v3542_v21 = vpop.eup %3541  ;;  %v1687_v2 = vmul.f32 %v3540_v44, %v3526_v35 }
 0x954   :  { %v1688_v23 = vmul.f32 %v3542_v21, %v3528_v36  ;;  %v1653_v54 = vmul.f32 1.442695, %v1638_v19 }
 0x955   :  { %v1695_v25 = vpack.c.bf16 %v1687_v2, %v1687_v2 }
 0x956   :  { %v1696_v52 = vpack.c.bf16 %v1688_v23, %v1688_v23  ;;  %3543 = vpow2.f32 %v1653_v54 }
 0x957   :  { %3328 = vmatmul.msk.bf16.vlgmr.msra.gmra.mxu2 %vm145_vm1, %v1695_v25 }
 0x958   :  { %3329 = vmatmul.msk.bf16.vlgmr.msra.gmra.mxu3 %vm145_vm1, %v1696_v52  ;;  %1929 = vmatpush.bf16.xpose.msra.mxu2 %v1920_v41 }
 0x959   :  { %1952 = vmatpush.bf16.xpose.msra.mxu3 %v1943_v45 }
 0x95b   :  { %v1669_v24 = vpop.xlane.xlu2 %1668 }
 0x95c   :  { %v4406_v28 = vpop.eup %3543  ;;  %3545 = vrcp.f32 %v1669_v24 }
 0x95d   :  { %v1676_v35 = vsel %vm1102_vm15, %v4406_v28, 0.0 }
 0x95e   :  { %1677 = vadd.xlane.f32.xlu2 %v1676_v35 }
 0x962   :  { %v3546_v36 = vpop.eup %3545  ;;  %2027 = vrot.lane.b32.xlu0 %v4217_v6, %s3687_s5 }
 0x963   :  { %v1691_v61 = vmul.f32 %v3546_v36, %v3530_v47  ;;  %v1672_v46 = vpop.xlane.xlu2 %1671  ;;  %v2035_v47 = vsel %vm145_vm1, %v4372_v0, 0 }
 0x964   :  { %3547 = vrcp.f32 %v1672_v46 }
 0x965   :  { %v1699_v30 = vpack.c.bf16 %v1691_v61, %v1691_v61 }
 0x967   :  { %3332 = vmatmul.msk.bf16.vlgmr.msrb.gmra.mxu2 %vm145_vm1, %v1699_v30 }
 0x968   :  { %1981 = vrot.lane.b32.xlu1 %v4236_v42, %s3687_s5  ;;  %2021 = vmatpush.bf16.xpose.msrb.mxu2 %v2012_v39 }
 0x96a   :  { %v3548_v48 = vpop.eup %3547  ;;  %2052 = vrot.lane.b32.xlu0 %v4099_v38, %s3687_s5 }
 0x96b   :  { %v1692_v12 = vmul.f32 %v3548_v48, %v4378_v49 }
 0x96d   :  { %v1700_v43 = vpack.c.bf16 %v1692_v12, %v1692_v12 }
 0x96f   :  { %3333 = vmatmul.msk.bf16.vlgmr.msrb.gmra.mxu3 %vm145_vm1, %v1700_v43 }
 0x970   :  { %2044 = vmatpush.bf16.xpose.msrb.mxu3 %v2035_v47  ;;  %2050 = vrot.lane.b32.xlu1 %v4243_v29, %s3687_s5 }
 0x972   :  { %2073 = vrot.lane.b32.xlu0 %v4306_v20, %s3687_s5 }
 0x976   :  { %2075 = vrot.lane.b32.xlu2 %v4097_v37, %s3687_s5  ;;  %s3698_s5 = smov [#allocation7]  }
 0x977   :  { %3336 = vmatmul.msk.bf16.vlgmr.msra.gmra.mxu2 %vm145_vm1, %v4359_v60  ;;  %v2005_v60 = vpop.permute.xlu1 %2004 }
 0x978   :  { %2192 = vrot.lane.b32.xlu1 %v4037_v40, %s3688_s24 }
 0x97a   :  { %2213 = vrot.lane.b32.xlu0 %v4042_v51, %s3688_s24 }
 0x97e   :  { %2255 = vrot.lane.b32.xlu2 %v4073_v18, %s3688_s24 }
 0x97f   :  { %3337 = vmatmul.msk.bf16.vlgmr.msra.gmra.mxu3 %vm145_vm1, %v4368_v10 }
 0x980   :  { %2234 = vrot.lane.b32.xlu1 %v4069_v14, %s3688_s24 }
 0x981   :  { %v1663_v55 = vpop.xlane.xlu2 %1662 }
 0x982   :  { %3549 = vrcp.f32 %v1663_v55  ;;  %2403 = vrot.lane.b32.xlu0 %v4037_v40, %s3690_s25 }
 0x986   :  { %2401 = vrot.lane.b32.xlu2 %v4133_v31, %s3690_s25  ;;  %v1984_v31 = vpop.permute.xlu0 %1983 }
 0x987   :  { %3340 = vmatmul.msk.bf16.vlgmr.msrb.gmra.mxu2 %vm145_vm1, %v2005_v60  ;;  %v1989_v5 = vsel %vm145_vm1, %v1984_v31, 0 }
 0x988   :  { %v3550_v0 = vpop.eup %3549  ;;  %2276 = vrot.lane.b32.xlu1 %v4064_v11, %s3688_s24 }
 0x989   :  { %v1689_v10 = vmul.f32 %v3550_v0, %v4386_v57  ;;  %v1959_v59 = vpop.permute.xlu2 %1958 }
 0x98a   :  { %2426 = vrot.lane.b32.xlu0 %v4042_v51, %s3690_s25 }
 0x98b   :  { %v1697_v49 = vpack.c.bf16 %v1689_v10, %v1689_v10 }
 0x98d   :  { %3330 = vmatmul.msk.bf16.vlgmr.msra.gmra.mxu0 %vm145_vm1, %v1697_v49 }
 0x98e   :  { %1975 = vmatpush.bf16.xpose.msra.mxu0 %v1966_v50 }
 0x990   :  { %2297 = vrot.lane.b32.xlu1 %v4084_v26, %s3688_s24 }
 0x992   :  { %2339 = vrot.lane.b32.xlu0 %v4097_v37, %s3688_s24 }
 0x998   :  { %2318 = vrot.lane.b32.xlu1 %v4099_v38, %s3688_s24  ;;  %s3218_s24 = sshll.u32 %s3698_s5, 4  ;;  %s3219_s24 = int_to_ptr.vmem [resolvable:$true] %s3218_s24 }
 0x99a   :  { %2424 = vrot.lane.b32.xlu0 %v4135_v33, %s3690_s25 }
 0x9a2   :  { %2449 = vrot.lane.b32.xlu0 %v4069_v14, %s3690_s25 }
 0x9c1   :  { %v1666_v53 = vpop.xlane.xlu0 %1665 }
 0x9c2   :  { %3551 = vrcp.f32 %v1666_v53  ;;  %v1675_v56 = vpop.xlane.xlu1 %1674 }
 0x9c3   :  { %3553 = vrcp.f32 %v1675_v56 }
 0x9c8   :  { %v3552_v57 = vpop.eup %3551 }
 0x9c9   :  { %v3554_v58 = vpop.eup %3553  ;;  %v1690_v22 = vmul.f32 %v3552_v57, %v4392_v32 }
 0x9ca   :  { %v1693_v62 = vmul.f32 %v3554_v58, %v4394_v13 }
 0x9cb   :  { %v1698_v63 = vpack.c.bf16 %v1690_v22, %v1690_v22 }
 0x9cc   :  { %v1701_v3 = vpack.c.bf16 %v1693_v62, %v1693_v62 }
 0x9cd   :  { %3331 = vmatmul.msk.bf16.vlgmr.msra.gmra.mxu1 %vm145_vm1, %v1698_v63 }
 0x9ce   :  { %3334 = vmatmul.msk.bf16.vlgmr.msrb.gmra.mxu0 %vm145_vm1, %v1701_v3  ;;  %1998 = vmatpush.bf16.xpose.msra.mxu1 %v1989_v5 }
 0x9d1   :  { %v1678_v33 = vpop.xlane.xlu2 %1677 }
 0x9d2   :  { %3555 = vrcp.f32 %v1678_v33 }
 0x9d4   :  { %v2028_v15 = vpop.permute.xlu0 %2027 }
 0x9d5   :  { %3341 = vmatmul.msk.bf16.vlgmr.msrb.gmra.mxu3 %vm145_vm1, %v2028_v15 }
 0x9d8   :  { %v3556_v9 = vpop.eup %3555 }
 0x9d9   :  { %v1694_v27 = vmul.f32 %v3556_v9, %v4406_v28  ;;  %v2076_v32 = vpop.permute.xlu2 %2075 }
 0x9da   :  { %v1982_v34 = vpop.permute.xlu1 %1981  ;;  %v4471_v13 = vpop.f32.mrf.mxu2  ;;  %v2081_v21 = vsel %vm145_vm1, %v2076_v32, 0 }
 0x9db   :  { %v1702_v8 = vpack.c.bf16 %v1694_v27, %v1694_v27  ;;  %v4473_v44 = vpop.f32.mrf.mxu3 }
 0x9dc   :  { %v2053_v19 = vpop.permute.xlu0 %2052 }
 0x9dd   :  { %v2058_v2 = vsel %vm145_vm1, %v2053_v19, 0  ;;  %3335 = vmatmul.msk.bf16.vlgmr.msrb.gmra.mxu1 %vm145_vm1, %v1702_v8 }
 0x9de   :  { %3338 = vmatmul.msk.bf16.vlgmr.msra.gmra.mxu0 %vm145_vm1, %v1959_v59  ;;  %2090 = vmatpush.bf16.xpose.msrb.mxu1 %v2081_v21 }
 0x9df   :  { %2067 = vmatpush.bf16.xpose.msrb.mxu0 %v2058_v2 }
 0x9e1   :  { %v2256_v41 = vpop.permute.xlu2 %2255 }
 0x9e2   :  { %v2051_v23 = vpop.permute.xlu1 %2050  ;;  %v1722_v54 = vpop.f32.mrf.mxu2  ;;  %v2261_v36 = vsel %vm218_vm2, %v2256_v41, 0 }
 0x9e3   :  { %v1743_v25 = vpop.f32.mrf.mxu3 }
 0x9e4   :  { %v2074_v52 = vpop.permute.xlu0 %2073 }
 0x9e9   :  { %v4514_v41 = vpop.permute.xlu2 %2401 }
 0x9ea   :  { %v2193_v45 = vpop.permute.xlu1 %2192  ;;  %v4479_v24 = vpop.f32.mrf.mxu2 }
 0x9eb   :  { %v2198_v28 = vsel %vm218_vm2, %v2193_v45, 0 }
 0x9ec   :  { %2207 = vmatpush.bf16.msra.mxu2 %v2198_v28  ;;  %v2214_v35 = vpop.permute.xlu0 %2213 }
 0x9ed   :  { %v2219_v61 = vsel %vm218_vm2, %v2214_v35, 0  ;;  %3339 = vmatmul.msk.bf16.vlgmr.msra.gmra.mxu1 %vm145_vm1, %v1982_v34 }
 0x9ee   :  { %3342 = vmatmul.msk.bf16.vlgmr.msrb.gmra.mxu0 %vm145_vm1, %v2051_v23  ;;  %2270 = vmatpush.bf16.msra.mxu1 %v2261_v36 }
 0x9ef   :  { %2228 = vmatpush.bf16.msra.mxu3 %v2219_v61 }
 0x9f2   :  { %v2235_v46 = vpop.permute.xlu1 %2234  ;;  %v1806_v30 = vpop.f32.mrf.mxu2 }
 0x9f3   :  { %v2240_v39 = vsel %vm218_vm2, %v2235_v46, 0  ;;  %v4487_v48 = vpop.f32.mrf.mxu3 }
 0x9f4   :  { %2249 = vmatpush.bf16.msra.mxu0 %v2240_v39  ;;  %v4489_v12 = vpop.permute.xlu0 %2403 }
 0x9fa   :  { %v2277_v43 = vpop.permute.xlu1 %2276  ;;  %v1931_v47 = vpop.f32.mrf.mxu2 }
 0x9fb   :  { %v2282_v55 = vsel %vm218_vm2, %v2277_v43, 0  ;;  %v1827_v60 = vpop.f32.mrf.mxu3  ;;  %v2096_v0 = vsel %vm1102_vm15, %v1931_v47, -inf }
 0x9fc   :  { %2291 = vmatpush.bf16.msrb.mxu2 %v2282_v55  ;;  %v4493_v10 = vpop.permute.xlu0 %2426  ;;  %2097 = vmax.xlane.f32.xlu2 %v2096_v0 }
 0x9fd   :  { %3343 = vmatmul.msk.bf16.vlgmr.msrb.gmra.mxu1 %vm145_vm1, %v2074_v52 }
 0xa02   :  { %v2298_v49 = vpop.permute.xlu1 %2297  ;;  %v1933_v50 = vpop.f32.mrf.mxu2 }
 0xa03   :  { %v2303_v31 = vsel %vm218_vm2, %v2298_v49, 0  ;;  %v1954_v53 = vpop.f32.mrf.mxu3 }
 0xa04   :  { %2312 = vmatpush.bf16.msrb.mxu3 %v2303_v31  ;;  %v2099_v56 = vsel %vm1102_vm15, %v1954_v53, -inf  ;;  %v2340_v57 = vpop.permute.xlu0 %2339 }
 0xa05   :  { %2100 = vmax.xlane.f32.xlu1 %v2099_v56  ;;  %v2345_v58 = vsel %vm218_vm2, %v2340_v57, 0 }
 0xa06   :  { %2354 = vmatpush.bf16.msrb.mxu1 %v2345_v58 }
 0xa0a   :  { %v4499_v59 = vpop.f32.mrf.mxu0  ;;  %v2319_v22 = vpop.permute.xlu1 %2318 }
 0xa0b   :  { %v2324_v62 = vsel %vm218_vm2, %v2319_v22, 0  ;;  %v1956_v63 = vpop.f32.mrf.mxu3  ;;  %v4502_v3 = vpop.f32.mrf.mxu2 }
 0xa0c   :  { %2333 = vmatpush.bf16.msrb.mxu0 %v2324_v62  ;;  %v2108_v5 = vsel %vm1102_vm15, %v4502_v3, -inf  ;;  %v4532_v22 = vpop.permute.xlu0 %2424 }
 0xa0d   :  { %2109 = vmax.xlane.f32.xlu1 %v2108_v5 }
 0xa12   :  { %v1764_v33 = vpop.f32.mrf.mxu0 }
 0xa13   :  { %v2025_v15 = vpop.f32.mrf.mxu2 }
 0xa14   :  { %v4534_v62 = vpop.permute.xlu0 %2449 }
 0xa4a   :  { %v4506_v9 = vpop.f32.mrf.mxu1 }
 0xa4b   :  { %v4508_v27 = vpop.f32.mrf.mxu0 }
 0xa52   :  { %v1785_v32 = vpop.f32.mrf.mxu1 }
 0xa53   :  { %v1848_v34 = vpop.f32.mrf.mxu0 }
 0xa58   :  { %v2046_v8 = vpop.f32.mrf.mxu3 }
 0xa59   :  { %v2111_v52 = vsel %vm1102_vm15, %v2046_v8, -inf }
 0xa5a   :  { %v4510_v19 = vpop.f32.mrf.mxu1 }
 0xa5b   :  { %v1977_v21 = vpop.f32.mrf.mxu0 }
 0xa5c   :  { %v2102_v2 = vsel %vm1102_vm15, %v1977_v21, -inf }
 0xa5d   :  { %2103 = vmax.xlane.f32.xlu0 %v2102_v2 }
 0xa60   :  { %v2048_v23 = vpop.f32.mrf.mxu3 }
 0xa62   :  { %v1869_v54 = vpop.f32.mrf.mxu1 }
 0xa63   :  { %v1979_v25 = vpop.f32.mrf.mxu0 }
 0xa65   :  { %2112 = vmax.xlane.f32.xlu0 %v2111_v52 }
 0xa6a   :  { %v2000_v45 = vpop.f32.mrf.mxu1 }
 0xa6b   :  { %v2069_v28 = vpop.f32.mrf.mxu0  ;;  %v2105_v35 = vsel %vm1102_vm15, %v2000_v45, -inf }
 0xa6c   :  { %2106 = vmax.xlane.f32.xlu2 %v2105_v35  ;;  %v2114_v43 = vsel %vm1102_vm15, %v2069_v28, -inf }
 0xa6f   :  { %v2098_v36 = vpop.xlane.xlu2 %2097 }
 0xa70   :  { %v2120_v61 = vsub.f32 %v1931_v47, %v2098_v36 }
 0xa72   :  { %v2128_v46 = vmul.f32 1.442695, %v2120_v61  ;;  %v2002_v30 = vpop.f32.mrf.mxu1 }
 0xa73   :  { %v2071_v39 = vpop.f32.mrf.mxu0 }
 0xa74   :  { %3557 = vpow2.f32 %v2128_v46  ;;  %2115 = vmax.xlane.f32.xlu2 %v2114_v43 }
 0xa78   :  { %v2101_v47 = vpop.xlane.xlu1 %2100 }
 0xa79   :  { %v2121_v31 = vsub.f32 %v1954_v53, %v2101_v47 }
 0xa7a   :  { %v3558_v55 = vpop.eup %3557  ;;  %v4518_v60 = vpop.f32.mrf.mxu1 }
 0xa7b   :  { %v2144_v0 = vsel %vm1102_vm15, %v3558_v55, 0.0  ;;  %v2117_v49 = vsel %vm1102_vm15, %v4518_v60, -inf  ;;  %v2130_v56 = vmul.f32 1.442695, %v2121_v31  ;;  %v2409_v31 = vsel %vm145_vm1, %v4489_v12, 0 }
 0xa7c   :  { %2145 = vadd.xlane.f32.xlu0 %v2144_v0  ;;  %2118 = vmax.xlane.f32.xlu1 %v2117_v49 }
 0xa7d   :  { %3559 = vpow2.f32 %v2130_v56 }
 0xa80   :  { %v2110_v2 = vpop.xlane.xlu1 %2109 }
 0xa81   :  { %v2124_v25 = vsub.f32 %v4502_v3, %v2110_v2 }
 0xa82   :  { %v2094_v50 = vpop.f32.mrf.mxu1 }
 0xa83   :  { %v3560_v57 = vpop.eup %3559 }
 0xa84   :  { %v2147_v58 = vsel %vm1102_vm15, %v3560_v57, 0.0 }
 0xa8c   :  { %2518 = vrot.lane.b32.xlu2 %v4084_v26, %s3690_s25 }
 0xa90   :  { %2472 = vrot.lane.b32.xlu0 %v4073_v18, %s3690_s25 }
 0xa95   :  { %2495 = vrot.lane.b32.xlu1 %v4064_v11, %s3690_s25 }
 0xa9d   :  { %2470 = vrot.lane.b32.xlu1 %v4236_v42, %s3690_s25 }
 0xab5   :  { %2148 = vadd.xlane.f32.xlu2 %v2147_v58 }
 0xad0   :  { %v2104_v63 = vpop.xlane.xlu0 %2103 }
 0xad1   :  { %v2122_v5 = vsub.f32 %v1977_v21, %v2104_v63  ;;  %v2136_v21 = vmul.f32 1.442695, %v2124_v25 }
 0xad3   :  { %v2132_v33 = vmul.f32 1.442695, %v2122_v5 }
 0xad5   :  { %3561 = vpow2.f32 %v2132_v33 }
 0xad8   :  { %v2113_v15 = vpop.xlane.xlu0 %2112 }
 0xad9   :  { %v2125_v32 = vsub.f32 %v2046_v8, %v2113_v15 }
 0xadb   :  { %v4536_v34 = vpop.eup %3561  ;;  %v2138_v42 = vmul.f32 1.442695, %v2125_v32 }
 0xadc   :  { %v2150_v53 = vsel %vm1102_vm15, %v4536_v34, 0.0 }
 0xadd   :  { %3563 = vpow2.f32 %v2138_v42  ;;  %2151 = vadd.xlane.f32.xlu2 %v2150_v53  ;;  %v2455_v53 = vsel %vm145_vm1, %v4534_v62, 0 }
 0xadf   :  { %v2107_v23 = vpop.xlane.xlu2 %2106 }
 0xae0   :  { %v2123_v54 = vsub.f32 %v2000_v45, %v2107_v23 }
 0xae2   :  { %v2134_v52 = vmul.f32 1.442695, %v2123_v54 }
 0xae3   :  { %v4541_v35 = vpop.eup %3563 }
 0xae4   :  { %3565 = vpow2.f32 %v2134_v52  ;;  %v2159_v8 = vsel %vm1102_vm15, %v4541_v35, 0.0 }
 0xae5   :  { %2160 = vadd.xlane.f32.xlu0 %v2159_v8  ;;  %3567 = vpow2.f32 %v2136_v21 }
 0xae7   :  { %v2116_v36 = vpop.xlane.xlu2 %2115 }
 0xae8   :  { %v2126_v61 = vsub.f32 %v2069_v28, %v2116_v36 }
 0xaea   :  { %v4545_v46 = vpop.eup %3565  ;;  %v2140_v30 = vmul.f32 1.442695, %v2126_v61 }
 0xaeb   :  { %v2153_v45 = vsel %vm1102_vm15, %v4545_v46, 0.0  ;;  %v4549_v39 = vpop.eup %3567 }
 0xaec   :  { %3569 = vpow2.f32 %v2140_v30  ;;  %2154 = vadd.xlane.f32.xlu2 %v2153_v45  ;;  %v2156_v28 = vsel %vm1102_vm15, %v4549_v39, 0.0 }
 0xaef   :  { %v2146_v3 = vpop.xlane.xlu0 %2145  ;;  %v2119_v12 = vpop.xlane.xlu1 %2118 }
 0xaf0   :  { %3571 = vrcp.f32 %v2146_v3 }
 0xaf2   :  { %v4551_v43 = vpop.eup %3569 }
 0xaf3   :  { %v2162_v0 = vsel %vm1102_vm15, %v4551_v43, 0.0 }
 0xaf4   :  { %2163 = vadd.xlane.f32.xlu1 %v2162_v0  ;;  %2157 = vadd.xlane.f32.xlu2 %v2156_v28 }
 0xaf6   :  { %v3572_v49 = vpop.eup %3571 }
 0xaf7   :  { %v2176_v50 = vmul.f32 %v3572_v49, %v3558_v55  ;;  %v2127_v55 = vsub.f32 %v4518_v60, %v2119_v12 }
 0xaf9   :  { %v2184_v47 = vpack.c.bf16 %v2176_v50, %v2176_v50  ;;  %2447 = vrot.lane.b32.xlu0 %v4223_v16, %s3690_s25  ;;  %v2519_v16 = vpop.permute.xlu2 %2518  ;;  %v2142_v56 = vmul.f32 1.442695, %v2127_v55 }
 0xafa   :  { %v2524_v8 = vsel %vm145_vm1, %v2519_v16, 0 }
 0xafb   :  { %3344 = vmatmul.msk.bf16.vlgmr.msra.gmra.mxu2 %vm145_vm1, %v2184_v47 }
 0xafc   :  { %2418 = vmatpush.bf16.xpose.msra.mxu2 %v2409_v31 }
 0xb01   :  { %2516 = vrot.lane.b32.xlu0 %v4217_v6, %s3690_s25 }
 0xb02   :  { %v2473_v60 = vpop.permute.xlu0 %2472 }
 0xb03   :  { %v2478_v30 = vsel %vm145_vm1, %v2473_v60, 0 }
 0xb09   :  { %2539 = vrot.lane.b32.xlu0 %v4243_v29, %s3690_s25 }
 0xb0c   :  { %2493 = vrot.lane.b32.xlu2 %v4227_v17, %s3690_s25  ;;  %v2432_v17 = vsel %vm145_vm1, %v4493_v10, 0 }
 0xb0d   :  { %2541 = vrot.lane.b32.xlu1 %v4099_v38, %s3690_s25 }
 0xb15   :  { %2562 = vrot.lane.b32.xlu1 %v4306_v20, %s3690_s25 }
 0xb28   :  { %v2149_v58 = vpop.xlane.xlu2 %2148 }
 0xb29   :  { %3573 = vrcp.f32 %v2149_v58 }
 0xb2a   :  { %3575 = vpow2.f32 %v2142_v56 }
 0xb2f   :  { %v3574_v6 = vpop.eup %3573 }
 0xb30   :  { %v2177_v63 = vmul.f32 %v3574_v6, %v3560_v57  ;;  %v4573_v29 = vpop.eup %3575  ;;  %v2496_v57 = vpop.permute.xlu1 %2495 }
 0xb31   :  { %v2165_v20 = vsel %vm1102_vm15, %v4573_v29, 0.0 }
 0xb32   :  { %v2185_v5 = vpack.c.bf16 %v2177_v63, %v2177_v63 }
 0xb34   :  { %3345 = vmatmul.msk.bf16.vlgmr.msra.gmra.mxu3 %vm145_vm1, %v2185_v5 }
 0xb35   :  { %2441 = vmatpush.bf16.xpose.msra.mxu3 %v2432_v17  ;;  %2166 = vadd.xlane.f32.xlu2 %v2165_v20 }
 0xb38   :  { %v2471_v23 = vpop.permute.xlu1 %2470 }
 0xb4d   :  { %2564 = vrot.lane.b32.xlu2 %v4097_v37, %s3690_s25 }
 0xb50   :  { %v2152_v33 = vpop.xlane.xlu2 %2151 }
 0xb51   :  { %3577 = vrcp.f32 %v2152_v33 }
 0xb57   :  { %v3578_v15 = vpop.eup %3577 }
 0xb58   :  { %v2178_v32 = vmul.f32 %v3578_v15, %v4536_v34  ;;  %v2161_v42 = vpop.xlane.xlu0 %2160 }
 0xb59   :  { %3579 = vrcp.f32 %v2161_v42 }
 0xb5a   :  { %v2186_v10 = vpack.c.bf16 %v2178_v32, %v2178_v32 }
 0xb5c   :  { %3346 = vmatmul.msk.bf16.vlgmr.msra.gmra.mxu0 %vm145_vm1, %v2186_v10 }
 0xb5d   :  { %2464 = vmatpush.bf16.xpose.msra.mxu0 %v2455_v53 }
 0xb5f   :  { %v3580_v2 = vpop.eup %3579  ;;  %v2155_v54 = vpop.xlane.xlu2 %2154 }
 0xb60   :  { %v2181_v25 = vmul.f32 %v3580_v2, %v4541_v35  ;;  %3581 = vrcp.f32 %v2155_v54 }
 0xb62   :  { %v2189_v52 = vpack.c.bf16 %v2181_v25, %v2181_v25 }
 0xb64   :  { %3349 = vmatmul.msk.bf16.vlgmr.msrb.gmra.mxu3 %vm145_vm1, %v2189_v52 }
 0xb65   :  { %2533 = vmatpush.bf16.xpose.msrb.mxu3 %v2524_v8 }
 0xb66   :  { %v3582_v34 = vpop.eup %3581 }
 0xb67   :  { %v2179_v21 = vmul.f32 %v3582_v34, %v4545_v46  ;;  %v2158_v36 = vpop.xlane.xlu2 %2157  ;;  %v2164_v62 = vpop.xlane.xlu1 %2163  ;;  %v2501_v46 = vsel %vm145_vm1, %v2496_v57, 0 }
 0xb68   :  { %3583 = vrcp.f32 %v2158_v36 }
 0xb69   :  { %v2187_v61 = vpack.c.bf16 %v2179_v21, %v2179_v21  ;;  %3585 = vrcp.f32 %v2164_v62 }
 0xb6b   :  { %3347 = vmatmul.msk.bf16.vlgmr.msra.gmra.mxu1 %vm145_vm1, %v2187_v61  ;;  %v2448_v50 = vpop.permute.xlu0 %2447 }
 0xb6c   :  { %2487 = vmatpush.bf16.xpose.msra.mxu1 %v2478_v30 }
 0xb6e   :  { %v3584_v35 = vpop.eup %3583 }
 0xb6f   :  { %v3586_v45 = vpop.eup %3585  ;;  %v2180_v3 = vmul.f32 %v3584_v35, %v4549_v39  ;;  %v2494_v12 = vpop.permute.xlu2 %2493 }
 0xb70   :  { %v2182_v0 = vmul.f32 %v3586_v45, %v4551_v43 }
 0xb71   :  { %v2188_v28 = vpack.c.bf16 %v2180_v3, %v2180_v3 }
 0xb72   :  { %v2190_v49 = vpack.c.bf16 %v2182_v0, %v2182_v0 }
 0xb73   :  { %3348 = vmatmul.msk.bf16.vlgmr.msrb.gmra.mxu2 %vm145_vm1, %v2188_v28  ;;  %v2517_v43 = vpop.permute.xlu0 %2516 }
 0xb74   :  { %3350 = vmatmul.msk.bf16.vlgmr.msrb.gmra.mxu0 %vm145_vm1, %v2190_v49  ;;  %3353 = vmatmul.msk.bf16.vlgmr.msra.gmra.mxu3 %vm145_vm1, %v4532_v22 }
 0xb75   :  { %2510 = vmatpush.bf16.xpose.msrb.mxu2 %v2501_v46 }
 0xb7b   :  { %v2540_v55 = vpop.permute.xlu0 %2539 }
 0xb7e   :  { %v4599_v47 = vpop.f32.mrf.mxu2 }
 0xb7f   :  { %v2542_v31 = vpop.permute.xlu1 %2541 }
 0xb80   :  { %v2547_v39 = vsel %vm145_vm1, %v2542_v31, 0 }
 0xb81   :  { %2556 = vmatpush.bf16.xpose.msrb.mxu0 %v2547_v39 }
 0xb83   :  { %3352 = vmatmul.msk.bf16.vlgmr.msra.gmra.mxu2 %vm145_vm1, %v4514_v41 }
 0xb84   :  { %3354 = vmatmul.msk.bf16.vlgmr.msra.gmra.mxu0 %vm145_vm1, %v2448_v50  ;;  %3357 = vmatmul.msk.bf16.vlgmr.msrb.gmra.mxu3 %vm145_vm1, %v2517_v43 }
 0xb86   :  { %v2211_v16 = vpop.f32.mrf.mxu2 }
 0xb87   :  { %v2563_v20 = vpop.permute.xlu1 %2562 }
 0xb93   :  { %3356 = vmatmul.msk.bf16.vlgmr.msrb.gmra.mxu2 %vm145_vm1, %v2494_v12 }
 0xb94   :  { %3358 = vmatmul.msk.bf16.vlgmr.msrb.gmra.mxu0 %vm145_vm1, %v2540_v55 }
 0xba8   :  { %v2167_v22 = vpop.xlane.xlu2 %2166 }
 0xba9   :  { %3587 = vrcp.f32 %v2167_v22 }
 0xbaf   :  { %v3588_v56 = vpop.eup %3587 }
 0xbb0   :  { %v2183_v58 = vmul.f32 %v3588_v56, %v4573_v29  ;;  %v2565_v6 = vpop.permute.xlu2 %2564 }
 0xbb1   :  { %v2570_v41 = vsel %vm145_vm1, %v2565_v6, 0 }
 0xbb2   :  { %v2191_v63 = vpack.c.bf16 %v2183_v58, %v2183_v58 }
 0xbb4   :  { %3351 = vmatmul.msk.bf16.vlgmr.msrb.gmra.mxu1 %vm145_vm1, %v2191_v63 }
 0xbb5   :  { %2579 = vmatpush.bf16.xpose.msrb.mxu1 %v2570_v41 }
 0xbb7   :  { %v4611_v5 = vpop.f32.mrf.mxu3 }
 0xbbf   :  { %v2232_v17 = vpop.f32.mrf.mxu3 }
 0xbc4   :  { %3355 = vmatmul.msk.bf16.vlgmr.msra.gmra.mxu1 %vm145_vm1, %v2471_v23 }
 0xbd4   :  { %3359 = vmatmul.msk.bf16.vlgmr.msrb.gmra.mxu1 %vm145_vm1, %v2563_v20 }
 0xbd9   :  { %v4615_v60 = vpop.f32.mrf.mxu0 }
 0xbe1   :  { %v2253_v33 = vpop.f32.mrf.mxu0 }
 0xbe7   :  { %v4617_v57 = vpop.f32.mrf.mxu3 }
 0xbe8   :  { %v4619_v29 = vpop.f32.mrf.mxu1 }
 0xbef   :  { %v2316_v15 = vpop.f32.mrf.mxu3 }
 0xbf0   :  { %v2274_v32 = vpop.f32.mrf.mxu1 }
 0xbf1   :  { %v4621_v42 = vpop.f32.mrf.mxu0 }
 0xbf6   :  { %v4623_v10 = vpop.f32.mrf.mxu2 }
 0xbf7   :  { %v2443_v53 = vpop.f32.mrf.mxu3 }
 0xbf8   :  { %v2588_v2 = vsel %vm1102_vm15, %v2443_v53, -inf }
 0xbf9   :  { %2589 = vmax.xlane.f32.xlu0 %v2588_v2  ;;  %v2337_v23 = vpop.f32.mrf.mxu0 }
 0xbfe   :  { %v2295_v54 = vpop.f32.mrf.mxu2 }
 0xbff   :  { %v2445_v25 = vpop.f32.mrf.mxu3 }
 0xc01   :  { %v4626_v52 = vpop.f32.mrf.mxu0 }
 0xc02   :  { %v2591_v8 = vsel %vm1102_vm15, %v4626_v52, -inf }
 0xc03   :  { %2592 = vmax.xlane.f32.xlu1 %v2591_v8 }
 0xc06   :  { %v2420_v34 = vpop.f32.mrf.mxu2 }
 0xc07   :  { %v2535_v21 = vpop.f32.mrf.mxu3  ;;  %v2585_v36 = vsel %vm1102_vm15, %v2420_v34, -inf }
 0xc08   :  { %v2600_v62 = vsel %vm1102_vm15, %v2535_v21, -inf  ;;  %2586 = vmax.xlane.f32.xlu2 %v2585_v36 }
 0xc09   :  { %2601 = vmax.xlane.f32.xlu0 %v2600_v62  ;;  %v2468_v61 = vpop.f32.mrf.mxu0 }
 0xc0e   :  { %v2422_v30 = vpop.f32.mrf.mxu2 }
 0xc0f   :  { %v2537_v35 = vpop.f32.mrf.mxu3 }
 0xc11   :  { %v4632_v45 = vpop.f32.mrf.mxu0 }
 0xc12   :  { %v2603_v39 = vsel %vm1102_vm15, %v4632_v45, -inf }
 0xc16   :  { %v4634_v3 = vpop.f32.mrf.mxu2 }
 0xc17   :  { %v2597_v16 = vsel %vm1102_vm15, %v4634_v3, -inf }
 0xc19   :  { %v2560_v0 = vpop.f32.mrf.mxu0 }
 0xc1c   :  { %2723 = vrot.lane.b32.xlu1 %v4069_v14, %s3689_s6 }
 0xc1d   :  { %2681 = vrot.lane.b32.xlu0 %v4037_v40, %s3689_s6 }
 0xc1e   :  { %v2514_v28 = vpop.f32.mrf.mxu2 }
 0xc31   :  { %v4640_v49 = vpop.f32.mrf.mxu1 }
 0xc39   :  { %v2358_v46 = vpop.f32.mrf.mxu1 }
 0xc41   :  { %v2489_v50 = vpop.f32.mrf.mxu1 }
 0xc42   :  { %v2594_v31 = vsel %vm1102_vm15, %v2489_v50, -inf }
 0xc43   :  { %2595 = vmax.xlane.f32.xlu2 %v2594_v31 }
 0xc46   :  { %2604 = vmax.xlane.f32.xlu1 %v2603_v39 }
 0xc49   :  { %v2491_v43 = vpop.f32.mrf.mxu1 }
 0xc4b   :  { %2598 = vmax.xlane.f32.xlu2 %v2597_v16 }
 0xc51   :  { %v4647_v14 = vpop.f32.mrf.mxu1 }
 0xc59   :  { %v2583_v40 = vpop.f32.mrf.mxu1 }
 0xc63   :  { %2702 = vrot.lane.b32.xlu2 %v4042_v51, %s3689_s6 }
 0xc6c   :  { %v2590_v12 = vpop.xlane.xlu0 %2589 }
 0xc6d   :  { %v2610_v55 = vsub.f32 %v2443_v53, %v2590_v12  ;;  %v2606_v53 = vsel %vm1102_vm15, %v4647_v14, -inf }
 0xc6f   :  { %v2619_v22 = vmul.f32 1.442695, %v2610_v55 }
 0xc71   :  { %3589 = vpow2.f32 %v2619_v22 }
 0xc76   :  { %v2593_v51 = vpop.xlane.xlu1 %2592 }
 0xc77   :  { %v4651_v56 = vpop.eup %3589  ;;  %v2611_v61 = vsub.f32 %v4626_v52, %v2593_v51 }
 0xc78   :  { %v2636_v58 = vsel %vm1102_vm15, %v4651_v56, 0.0 }
 0xc79   :  { %2637 = vadd.xlane.f32.xlu1 %v2636_v58  ;;  %v2621_v30 = vmul.f32 1.442695, %v2611_v61 }
 0xc7b   :  { %v2587_v6 = vpop.xlane.xlu2 %2586 }
 0xc7c   :  { %v2602_v63 = vpop.xlane.xlu0 %2601  ;;  %v2609_v41 = vsub.f32 %v2420_v34, %v2587_v6 }
 0xc7d   :  { %v2614_v17 = vsub.f32 %v2535_v21, %v2602_v63 }
 0xc7e   :  { %v2617_v20 = vmul.f32 1.442695, %v2609_v41 }
 0xc7f   :  { %v2627_v33 = vmul.f32 1.442695, %v2614_v17 }
 0xc80   :  { %3591 = vpow2.f32 %v2617_v20 }
 0xc81   :  { %3593 = vpow2.f32 %v2627_v33 }
 0xc86   :  { %v4655_v15 = vpop.eup %3591 }
 0xc87   :  { %v2633_v32 = vsel %vm1102_vm15, %v4655_v15, 0.0  ;;  %v4661_v2 = vpop.eup %3593 }
 0xc88   :  { %2634 = vadd.xlane.f32.xlu0 %v2633_v32  ;;  %v2648_v8 = vsel %vm1102_vm15, %v4661_v2, 0.0 }
 0xc8c   :  { %2607 = vmax.xlane.f32.xlu2 %v2606_v53 }
 0xc8e   :  { %v2724_v23 = vpop.permute.xlu1 %2723 }
 0xc8f   :  { %v2729_v54 = vsel %vm218_vm2, %v2724_v23, 0  ;;  %v2682_v25 = vpop.permute.xlu0 %2681 }
 0xc90   :  { %v2687_v34 = vsel %vm218_vm2, %v2682_v25, 0  ;;  %2738 = vmatpush.bf16.msra.mxu0 %v2729_v54  ;;  %2649 = vadd.xlane.f32.xlu0 %v2648_v8 }
 0xc91   :  { %2696 = vmatpush.bf16.msra.mxu2 %v2687_v34 }
 0xca4   :  { %2786 = vrot.lane.b32.xlu0 %v4084_v26, %s3689_s6  ;;  %2744 = vrot.lane.b32.xlu2 %v4073_v18, %s3689_s6 }
 0xcac   :  { %2828 = vrot.lane.b32.xlu0 %v4097_v37, %s3689_s6 }
 0xcb4   :  { %1881 = vrot.lane.b32.xlu0 %v4473_v44, %s4904_s7 }
 0xcb6   :  { %v2596_v21 = vpop.xlane.xlu2 %2595 }
 0xcb7   :  { %v2612_v36 = vsub.f32 %v2489_v50, %v2596_v21 }
 0xcb9   :  { %v2623_v62 = vmul.f32 1.442695, %v2612_v36  ;;  %v2605_v18 = vpop.xlane.xlu1 %2604 }
 0xcba   :  { %v2615_v28 = vsub.f32 %v4632_v45, %v2605_v18 }
 0xcbb   :  { %3595 = vpow2.f32 %v2623_v62 }
 0xcbc   :  { %2370 = vrot.lane.b32.xlu0 %v4611_v5, %s4905_s4  ;;  %3597 = vpow2.f32 %v2621_v30  ;;  %v2629_v52 = vmul.f32 1.442695, %v2615_v28 }
 0xcbe   :  { %v2599_v26 = vpop.xlane.xlu2 %2598 }
 0xcbf   :  { %v2613_v35 = vsub.f32 %v4634_v3, %v2599_v26 }
 0xcc1   :  { %v4679_v0 = vpop.eup %3595  ;;  %v2625_v37 = vmul.f32 1.442695, %v2613_v35 }
 0xcc2   :  { %v2642_v44 = vsel %vm1102_vm15, %v4679_v0, 0.0  ;;  %v4687_v3 = vpop.eup %3597 }
 0xcc3   :  { %3599 = vpow2.f32 %v2625_v37  ;;  %2643 = vadd.xlane.f32.xlu1 %v2642_v44 }
 0xcc4   :  { %1885 = vrot.lane.b32.xlu0 %v4506_v9, %s4904_s7  ;;  %3601 = vpow2.f32 %v2629_v52  ;;  %v2639_v9 = vsel %vm1102_vm15, %v4687_v3, 0.0 }
 0xcc6   :  { %v2703_v5 = vpop.permute.xlu2 %2702 }
 0xcc7   :  { %v2708_v46 = vsel %vm218_vm2, %v2703_v5, 0 }
 0xcc8   :  { %2717 = vmatpush.bf16.msra.mxu3 %v2708_v46 }
 0xcc9   :  { %v4689_v50 = vpop.eup %3599 }
 0xcca   :  { %v2645_v31 = vsel %vm1102_vm15, %v4689_v50, 0.0  ;;  %v4697_v45 = vpop.eup %3601 }
 0xccb   :  { %2646 = vadd.xlane.f32.xlu1 %v2645_v31  ;;  %v2651_v39 = vsel %vm1102_vm15, %v4697_v45, 0.0 }
 0xccc   :  { %2374 = vrot.lane.b32.xlu0 %v4619_v29, %s4905_s4 }
 0xccd   :  { %2640 = vadd.xlane.f32.xlu2 %v2639_v9 }
 0xcd4   :  { %2376 = vrot.lane.b32.xlu0 %v4623_v10, %s4905_s4 }
 0xcd5   :  { %2652 = vadd.xlane.f32.xlu2 %v2651_v39 }
 0xcdc   :  { %1891 = vrot.lane.b32.xlu0 %v4508_v27, %s4904_s7 }
 0xce4   :  { %1893 = vrot.lane.b32.xlu0 %v4510_v19, %s4904_s7  ;;  %2765 = vrot.lane.b32.xlu1 %v4064_v11, %s3689_s6 }
 0xcec   :  { %v2638_v29 = vpop.xlane.xlu1 %2637 }
 0xced   :  { %3603 = vrcp.f32 %v2638_v29  ;;  %2807 = vrot.lane.b32.xlu2 %v4099_v38, %s3689_s6 }
 0xcf3   :  { %v3604_v43 = vpop.eup %3603 }
 0xcf4   :  { %v2666_v10 = vmul.f32 %v3604_v43, %v4651_v56 }
 0xcf5   :  { %1879 = vrot.lane.b32.xlu2 %v4471_v13, %s4904_s7 }
 0xcf6   :  { %v2674_v16 = vpack.c.bf16 %v2666_v10, %v2666_v10 }
 0xcf8   :  { %3361 = vmatmul.msk.bf16.vlgmr.msra.gmra.mxu3 %vm145_vm1, %v2674_v16 }
 0xcfb   :  { %v2635_v27 = vpop.xlane.xlu0 %2634 }
 0xcfc   :  { %3605 = vrcp.f32 %v2635_v27 }
 0xcfd   :  { %2372 = vrot.lane.b32.xlu2 %v4615_v60, %s4905_s4 }
 0xcff   :  { %v2608_v11 = vpop.xlane.xlu2 %2607 }
 0xd00   :  { %v2616_v19 = vsub.f32 %v4647_v14, %v2608_v11 }
 0xd02   :  { %v3606_v40 = vpop.eup %3605  ;;  %v2631_v12 = vmul.f32 1.442695, %v2616_v19 }
 0xd03   :  { %v2665_v38 = vmul.f32 %v3606_v40, %v4655_v15  ;;  %v2650_v56 = vpop.xlane.xlu0 %2649 }
 0xd04   :  { %3607 = vpow2.f32 %v2631_v12 }
 0xd05   :  { %v2673_v55 = vpack.c.bf16 %v2665_v38, %v2665_v38  ;;  %2368 = vrot.lane.b32.xlu2 %v4599_v47, %s4905_s4  ;;  %3609 = vrcp.f32 %v2650_v56 }
 0xd07   :  { %3360 = vmatmul.msk.bf16.vlgmr.msra.gmra.mxu2 %vm145_vm1, %v2673_v55  ;;  %v2745_v13 = vpop.permute.xlu2 %2744 }
 0xd08   :  { %v2750_v22 = vsel %vm218_vm2, %v2745_v13, 0 }
 0xd09   :  { %2759 = vmatpush.bf16.msra.mxu1 %v2750_v22 }
 0xd0a   :  { %v4723_v60 = vpop.eup %3607 }
 0xd0b   :  { %v2654_v14 = vsel %vm1102_vm15, %v4723_v60, 0.0  ;;  %v3610_v58 = vpop.eup %3609 }
 0xd0c   :  { %v2670_v47 = vmul.f32 %v3610_v58, %v4661_v2 }
 0xd0d   :  { %1889 = vrot.lane.b32.xlu2 %v4487_v48, %s4904_s7 }
 0xd0e   :  { %2655 = vadd.xlane.f32.xlu1 %v2654_v14  ;;  %v2678_v41 = vpack.c.bf16 %v2670_v47, %v2670_v47 }
 0xd16   :  { %v2787_v6 = vpop.permute.xlu0 %2786 }
 0xd17   :  { %v2792_v63 = vsel %vm218_vm2, %v2787_v6, 0 }
 0xd18   :  { %2801 = vmatpush.bf16.msrb.mxu3 %v2792_v63 }
 0xd1b   :  { %3365 = vmatmul.msk.bf16.vlgmr.msrb.gmra.mxu3 %vm145_vm1, %v2678_v41 }
 0xd1e   :  { %v2829_v17 = vpop.permute.xlu0 %2828 }
 0xd1f   :  { %v2834_v20 = vsel %vm218_vm2, %v2829_v17, 0 }
 0xd20   :  { %2843 = vmatpush.bf16.msrb.mxu1 %v2834_v20 }
 0xd26   :  { %v1882_v48 = vpop.permute.xlu0 %1881 }
 0xd27   :  { %1905 = vst.msk [vmem:[#allocation3 + $0x2] sm:$0x3] %vm1903_vm3, %v1882_v48  ;;  %1883 = vrot.lane.b32.xlu1 %v4499_v59, %s4904_s7 }
 0xd2e   :  { %v2371_v33 = vpop.permute.xlu0 %2370 }
 0xd2f   :  { %2394 = vst.msk [vmem:[#allocation3 + $0x2] sm:$0x3] %vm2392_vm4, %v2371_v33  ;;  %1887 = vrot.lane.b32.xlu1 %v4479_v24, %s4904_s7 }
 0xd36   :  { %v1886_v15 = vpop.permute.xlu0 %1885  ;;  %v2644_v51 = vpop.xlane.xlu1 %2643 }
 0xd37   :  { %1907 = vst.msk [vmem:[#allocation3 + $0x6] sm:$0x3] %vm1903_vm3, %v1886_v15  ;;  %3611 = vrcp.f32 %v2644_v51  ;;  %2378 = vrot.lane.b32.xlu1 %v4617_v57, %s4905_s4  ;;  %v3416_v15 = vld [vmem:[%s4866_s10 + $0x8] sm:$0xff]  ;;  %v3415_v51 = vld [vmem:[%s4866_s10] sm:$0xff] }
 0xd3d   :  { %v3612_v32 = vpop.eup %3611 }
 0xd3e   :  { %v2668_v53 = vmul.f32 %v3612_v32, %v4679_v0  ;;  %v2375_v2 = vpop.permute.xlu0 %2374  ;;  %v2647_v57 = vpop.xlane.xlu1 %2646 }
 0xd3f   :  { %2396 = vst.msk [vmem:[#allocation3 + $0x6] sm:$0x3] %vm2392_vm4, %v2375_v2  ;;  %2380 = vrot.lane.b32.xlu1 %v4621_v42, %s4905_s4 }
 0xd40   :  { %v2676_v59 = vpack.c.bf16 %v2668_v53, %v2668_v53  ;;  %v2641_v23 = vpop.xlane.xlu2 %2640 }
 0xd41   :  { %3613 = vrcp.f32 %v2641_v23 }
 0xd42   :  { %3363 = vmatmul.msk.bf16.vlgmr.msra.gmra.mxu1 %vm145_vm1, %v2676_v59  ;;  %3615 = vrcp.f32 %v2647_v57 }
 0xd46   :  { %v2377_v24 = vpop.permute.xlu0 %2376 }
 0xd47   :  { %v3614_v54 = vpop.eup %3613 }
 0xd48   :  { %v2667_v25 = vmul.f32 %v3614_v54, %v4687_v3  ;;  %v2653_v8 = vpop.xlane.xlu2 %2652  ;;  %v3616_v62 = vpop.eup %3615 }
 0xd49   :  { %3617 = vrcp.f32 %v2653_v8  ;;  %v2669_v30 = vmul.f32 %v3616_v62, %v4689_v50 }
 0xd4a   :  { %v2675_v34 = vpack.c.bf16 %v2667_v25, %v2667_v25 }
 0xd4b   :  { %v2677_v44 = vpack.c.bf16 %v2669_v30, %v2669_v30 }
 0xd4c   :  { %3362 = vmatmul.msk.bf16.vlgmr.msra.gmra.mxu0 %vm145_vm1, %v2675_v34 }
 0xd4e   :  { %v1892_v21 = vpop.permute.xlu0 %1891 }
 0xd4f   :  { %1910 = vst.msk [vmem:[#allocation3 + $0xc] sm:$0x3] %vm1903_vm3, %v1892_v21  ;;  %v3618_v61 = vpop.eup %3617 }
 0xd50   :  { %v2808_v42 = vpop.permute.xlu2 %2807  ;;  %v2671_v26 = vmul.f32 %v3618_v61, %v4697_v45 }
 0xd51   :  { %v2813_v36 = vsel %vm218_vm2, %v2808_v42, 0 }
 0xd52   :  { %2822 = vmatpush.bf16.msrb.mxu0 %v2813_v36  ;;  %v2679_v28 = vpack.c.bf16 %v2671_v26, %v2671_v26 }
 0xd56   :  { %v1894_v35 = vpop.permute.xlu0 %1893  ;;  %v2766_v18 = vpop.permute.xlu1 %2765 }
 0xd57   :  { %1911 = vst.msk [vmem:[#allocation3 + $0xe] sm:$0x3] %vm1903_vm3, %v1894_v35  ;;  %v2771_v0 = vsel %vm218_vm2, %v2766_v18, 0  ;;  %vm2909_vm2 = vcmask 1042434  }
 0xd58   :  { %v1880_v37 = vpop.permute.xlu2 %1879  ;;  %2780 = vmatpush.bf16.msrb.mxu2 %v2771_v0 }
 0xd59   :  { %1904 = vst.msk [vmem:[#allocation3] sm:$0x3] %vm1903_vm3, %v1880_v37 }
 0xd5b   :  { %3364 = vmatmul.msk.bf16.vlgmr.msrb.gmra.mxu2 %vm145_vm1, %v2677_v44 }
 0xd5c   :  { %3366 = vmatmul.msk.bf16.vlgmr.msrb.gmra.mxu0 %vm145_vm1, %v2679_v28  ;;  %2993 = vmatpush.bf16.msra.mxu2 %v3416_v15 }
 0xd60   :  { %v2373_v5 = vpop.permute.xlu2 %2372  ;;  %2994 = vmatpush.bf16.msra.mxu2 %v3415_v51 }
 0xd68   :  { %v2369_v52 = vpop.permute.xlu2 %2368 }
 0xd69   :  { %2393 = vst.msk [vmem:[#allocation3] sm:$0x3] %vm2392_vm4, %v2369_v52 }
 0xd70   :  { %v1890_v46 = vpop.permute.xlu2 %1889 }
 0xd71   :  { %1909 = vst.msk [vmem:[#allocation3 + $0xa] sm:$0x3] %vm1903_vm3, %v1890_v46 }
 0xd7b   :  { %v2719_v3 = vpop.f32.mrf.mxu3 }
 0xd7c   :  { %2859 = vrot.lane.b32.xlu0 %v2719_v3, %s4906_s23 }
 0xd81   :  { %v2656_v50 = vpop.xlane.xlu1 %2655 }
 0xd82   :  { %3619 = vrcp.f32 %v2656_v50 }
 0xd83   :  { %v2721_v31 = vpop.f32.mrf.mxu3 }
 0xd84   :  { %2382 = vrot.lane.b32.xlu0 %v4640_v49, %s4905_s4 }
 0xd88   :  { %v3620_v9 = vpop.eup %3619 }
 0xd89   :  { %v2672_v45 = vmul.f32 %v3620_v9, %v4723_v60 }
 0xd8a   :  { %v2698_v39 = vpop.f32.mrf.mxu2 }
 0xd8b   :  { %v2680_v29 = vpack.c.bf16 %v2672_v45, %v2672_v45 }
 0xd8d   :  { %3367 = vmatmul.msk.bf16.vlgmr.msrb.gmra.mxu1 %vm145_vm1, %v2680_v29  ;;  %vm2881_vm1 = vcmask 255168  }
 0xd92   :  { %v2700_v43 = vpop.f32.mrf.mxu2 }
 0xd99   :  { %v1884_v10 = vpop.permute.xlu1 %1883 }
 0xd9a   :  { %1906 = vst.msk [vmem:[#allocation3 + $0x4] sm:$0x3] %vm1903_vm3, %v1884_v10 }
 0xd9b   :  { %2395 = vst.msk [vmem:[#allocation3 + $0x4] sm:$0x3] %vm2392_vm4, %v2373_v5 }
 0xd9e   :  { %v2803_v16 = vpop.f32.mrf.mxu3 }
 0xda1   :  { %v1888_v27 = vpop.permute.xlu1 %1887 }
 0xda2   :  { %1908 = vst.msk [vmem:[#allocation3 + $0x8] sm:$0x3] %vm1903_vm3, %v1888_v27  ;;  %vm3136_vm3 = vcmask 523264  }
 0xda3   :  { %2397 = vst.msk [vmem:[#allocation3 + $0x8] sm:$0x3] %vm2392_vm4, %v2377_v24 }
 0xda6   :  { %v2805_v49 = vpop.f32.mrf.mxu3 }
 0xda9   :  { %v2379_v11 = vpop.permute.xlu1 %2378 }
 0xdaa   :  { %2398 = vst.msk [vmem:[#allocation3 + $0xa] sm:$0x3] %vm2392_vm4, %v2379_v11 }
 0xdb1   :  { %v2381_v19 = vpop.permute.xlu1 %2380 }
 0xdb2   :  { %2399 = vst.msk [vmem:[#allocation3 + $0xc] sm:$0x3] %vm2392_vm4, %v2381_v19 }
 0xdbf   :  { %v2761_v40 = vpop.f32.mrf.mxu1 }
 0xdc0   :  { %2863 = vrot.lane.b32.xlu2 %v2761_v40, %s4906_s23 }
 0xdc7   :  { %v2763_v12 = vpop.f32.mrf.mxu1 }
 0xdc9   :  { %v2740_v38 = vpop.f32.mrf.mxu0 }
 0xdca   :  { %2861 = vrot.lane.b32.xlu1 %v2740_v38, %s4906_s23 }
 0xdd1   :  { %v2742_v55 = vpop.f32.mrf.mxu0 }
 0xdd2   :  { %2857 = vrot.lane.b32.xlu1 %v2698_v39, %s4906_s23 }
 0xdd9   :  { %v2824_v13 = vpop.f32.mrf.mxu0 }
 0xdda   :  { %2869 = vrot.lane.b32.xlu1 %v2824_v13, %s4906_s23 }
 0xdde   :  { %v2782_v22 = vpop.f32.mrf.mxu2 }
 0xddf   :  { %2865 = vrot.lane.b32.xlu2 %v2782_v22, %s4906_s23 }
 0xde1   :  { %v2826_v56 = vpop.f32.mrf.mxu0 }
 0xde6   :  { %v2784_v60 = vpop.f32.mrf.mxu2 }
 0xde7   :  { %2867 = vrot.lane.b32.xlu2 %v2803_v16, %s4906_s23  ;;  %v3448_v60 = vld [vmem:[%s4867_s11] ss:$0 sm:$0xff] }
 0xdee   :  { %v2860_v14 = vpop.permute.xlu0 %2859 }
 0xdef   :  { %2883 = vst.msk [vmem:[#allocation3 + $0x2] sm:$0x3] %vm2881_vm1, %v2860_v14 }
 0xdf6   :  { %v2383_v58 = vpop.permute.xlu0 %2382  ;;  %v2891_v32 = vld [vmem:[#allocation3 + $0x2] sm:$0x1]  ;;  %v2929_v53 = vld [vmem:[#allocation3 + $0x3] sm:$0x1] }
 0xdf7   :  { %2400 = vst.msk [vmem:[#allocation3 + $0xe] sm:$0x3] %vm2392_vm4, %v2383_v58  ;;  %v2906_v23 = vrot.slane %v2891_v32, 7  ;;  %v2944_v24 = vrot.slane %v2929_v53, 7 }
 0xe0a   :  { %v2845_v47 = vpop.f32.mrf.mxu1 }
 0xe0b   :  { %2871 = vrot.lane.b32.xlu2 %v2845_v47, %s4906_s23 }
 0xe12   :  { %v2847_v6 = vpop.f32.mrf.mxu1 }
 0xe1a   :  { %v2864_v63 = vpop.permute.xlu2 %2863 }
 0xe1b   :  { %2885 = vst.msk [vmem:[#allocation3 + $0x6] sm:$0x3] %vm2881_vm1, %v2864_v63 }
 0xe22   :  { %v2893_v8 = vld [vmem:[#allocation3 + $0x6] sm:$0x1]  ;;  %v2931_v57 = vld [vmem:[#allocation3 + $0x7] sm:$0x1] }
 0xe23   :  { %v2911_v62 = vrot.slane %v2893_v8, 5  ;;  %v2948_v61 = vrot.slane %v2931_v57, 5  ;;  %v3417_v8 = vld [vmem:[#allocation4] sm:$0xff] }
 0xe39   :  { %v2866_v41 = vpop.permute.xlu2 %2865 }
 0xe3a   :  { %2886 = vst.msk [vmem:[#allocation3 + $0x8] sm:$0x3] %vm2881_vm1, %v2866_v41 }
 0xe3c   :  { %v2862_v17 = vpop.permute.xlu1 %2861 }
 0xe3d   :  { %2884 = vst.msk [vmem:[#allocation3 + $0x4] sm:$0x3] %vm2881_vm1, %v2862_v17 }
 0xe41   :  { %v2868_v20 = vpop.permute.xlu2 %2867  ;;  %v2894_v18 = vld [vmem:[#allocation3 + $0x8] sm:$0x1]  ;;  %v2932_v0 = vld [vmem:[#allocation3 + $0x9] sm:$0x1] }
 0xe42   :  { %2887 = vst.msk [vmem:[#allocation3 + $0xa] sm:$0x3] %vm2881_vm1, %v2868_v20  ;;  %v2914_v52 = vrot.slane %v2894_v18, 4  ;;  %v2950_v46 = vrot.slane %v2932_v0, 4 }
 0xe44   :  { %v2858_v48 = vpop.permute.xlu1 %2857  ;;  %v2892_v54 = vld [vmem:[#allocation3 + $0x4] sm:$0x1]  ;;  %v2930_v25 = vld [vmem:[#allocation3 + $0x5] sm:$0x1] }
 0xe45   :  { %2882 = vst.msk [vmem:[#allocation3] sm:$0x3] %vm2881_vm1, %v2858_v48  ;;  %v2908_v42 = vrot.slane %v2892_v54, 6  ;;  %v2946_v36 = vrot.slane %v2930_v25, 6  ;;  %v3418_v25 = vld [vmem:[#allocation4 + $0x8] sm:$0xff] }
 0xe46   :  { %3089 = vmatpush.bf16.msra.mxu3 %v3418_v25 }
 0xe49   :  { %v2895_v3 = vld [vmem:[#allocation3 + $0xa] sm:$0x1]  ;;  %v2933_v50 = vld [vmem:[#allocation3 + $0xb] sm:$0x1] }
 0xe4a   :  { %v2917_v29 = vrot.slane %v2895_v3, 3  ;;  %v2952_v43 = vrot.slane %v2933_v50, 3  ;;  %3090 = vmatpush.bf16.msra.mxu3 %v3417_v8  ;;  %v3450_v50 = vld [vmem:[%s4875_s19] ss:$0 sm:$0xff] }
 0xe4c   :  { %v2870_v33 = vpop.permute.xlu1 %2869  ;;  %v2890_v2 = vld [vmem:[#allocation3] sm:$0x1]  ;;  %v2928_v59 = vld [vmem:[#allocation3 + $0x1] sm:$0x1] }
 0xe4d   :  { %2888 = vst.msk [vmem:[#allocation3 + $0xc] sm:$0x3] %vm2881_vm1, %v2870_v33  ;;  %v2907_v34 = vsel %vm858_vm13, %v2906_v23, %v2890_v2  ;;  %v2945_v21 = vsel %vm858_vm13, %v2944_v24, %v2928_v59 }
 0xe4e   :  { %v2910_v30 = vsel %vm2909_vm2, %v2908_v42, %v2907_v34  ;;  %v2947_v26 = vsel %vm2909_vm2, %v2946_v36, %v2945_v21 }
 0xe4f   :  { %v2913_v37 = vsel %vm2912_vm5, %v2911_v62, %v2910_v30  ;;  %v2949_v44 = vsel %vm2912_vm5, %v2948_v61, %v2947_v26 }
 0xe50   :  { %v2916_v31 = vsel %vm2915_vm6, %v2914_v52, %v2913_v37  ;;  %v2951_v9 = vsel %vm2915_vm6, %v2950_v46, %v2949_v44 }
 0xe51   :  { %v2919_v27 = vsel %vm2918_vm7, %v2917_v29, %v2916_v31  ;;  %v2953_v49 = vsel %vm2918_vm7, %v2952_v43, %v2951_v9 }
 0xe54   :  { %v2896_v28 = vld [vmem:[#allocation3 + $0xc] sm:$0x1]  ;;  %v2934_v5 = vld [vmem:[#allocation3 + $0xd] sm:$0x1] }
 0xe55   :  { %v2920_v45 = vrot.slane %v2896_v28, 2  ;;  %v2954_v39 = vrot.slane %v2934_v5, 2  ;;  %v3449_v5 = vld [vmem:[%s4874_s18] ss:$0 sm:$0xff] }
 0xe57   :  { %v2922_v40 = vsel %vm2921_vm8, %v2920_v45, %v2919_v27  ;;  %v2955_v12 = vsel %vm2921_vm8, %v2954_v39, %v2953_v49  ;;  %v3420_v27 = vld [vmem:[%s4870_s14 + $0x8] sm:$0xff]  ;;  %v3419_v49 = vld [vmem:[%s4870_s14] sm:$0xff] }
 0xe65   :  { %v2872_v35 = vpop.permute.xlu2 %2871 }
 0xe66   :  { %2889 = vst.msk [vmem:[#allocation3 + $0xe] sm:$0x3] %vm2881_vm1, %v2872_v35 }
 0xe6d   :  { %v2897_v10 = vld [vmem:[#allocation3 + $0xe] sm:$0x1]  ;;  %v2935_v16 = vld [vmem:[#allocation3 + $0xf] sm:$0x1] }
 0xe6e   :  { %v2923_v11 = vrot.slane %v2897_v10, 1  ;;  %v2956_v19 = vrot.slane %v2935_v16, 1  ;;  %v3422_v10 = vld [vmem:[%s4870_s14 + $0x18] sm:$0xff]  ;;  %v3421_v16 = vld [vmem:[%s4870_s14 + $0x10] sm:$0xff] }
 0xe6f   :  { %3144 = vmatpush.bf16.msra.mxu0 %v3422_v10 }
 0xe70   :  { %v2925_v38 = vsel %vm2924_vm9, %v2923_v11, %v2922_v40  ;;  %v2957_v55 = vsel %vm2924_vm9, %v2956_v19, %v2955_v12  ;;  %v3451_v19 = vld [vmem:[%s4869_s13] ss:$0 sm:$0xff] }
 0xe71   :  { %2927 = vst.msk [vmem:[#allocation2] sm:$0xff] %vm120_vm0, %v2925_v38 }
 0xe72   :  { %2960 = vst.msk [vmem:[#allocation2 + $0x8] sm:$0xff] %vm120_vm0, %v2957_v55 }
 0xe73   :  { %3145 = vmatpush.bf16.msra.mxu0 %v3421_v16 }
 0xe77   :  { %3146 = vmatpush.bf16.msra.mxu0 %v3420_v27 }
 0xe78   :  { %v2961_v13 = vld [vmem:[#allocation2] sm:$0xff] }
 0xe79   :  { %v2962_v22 = vld [vmem:[#allocation2 + $0x8] sm:$0xff] }
 0xe7a   :  { %v2963_v56 = vpack.c.bf16 %v2962_v22, %v2961_v13 }
 0xe7b   :  { %3147 = vmatpush.bf16.msra.mxu0 %v3419_v49 }
 0xe7c   :  { %3376 = vmatmul.msk.bf16.vlgmr.msra.gmra.mxu2 %vm120_vm0, %v2963_v56  ;;  %v3452_v56 = vld [vmem:[%s4871_s15] ss:$0 sm:$0xff] }
 0xeff   :  { %v2996_v14 = vpop.f32.mrf.mxu2 }
 0xf00   :  { %v2997_v58 = vadd.f32 %v3448_v60, %v2996_v14 }
 0xf02   :  { %v3003_v47 = vadd.f32 %v2997_v58, %v4056_v1 }
 0xf04   :  { %v3005_v6 = vsel %vm120_vm0, %v3003_v47, 0.0 }
 0xf05   :  { %3006 = vadd.xlane.f32.xlu0 %v3005_v6 }
 0xf07   :  { %v2998_v63 = vpop.f32.mrf.mxu2 }
 0xf08   :  { %v2999_v41 = vadd.f32 %v3448_v60, %v2998_v63 }
 0xf0a   :  { %v3004_v17 = vadd.f32 %v2999_v41, %v4058_v4 }
 0xf0c   :  { %v3008_v20 = vsel %vm120_vm0, %v3004_v17, 0.0 }
 0xf0d   :  { %3009 = vadd.xlane.f32.xlu1 %v3008_v20 }
 0xf78   :  { %v3007_v48 = vpop.xlane.xlu0 %3006 }
 0xf79   :  { %v3011_v33 = vmul.f32 %v3007_v48, %v3996_v7 }
 0xf7b   :  { %v3013_v15 = vsub.f32 %v3003_v47, %v3011_v33 }
 0xf7d   :  { %v3015_v51 = vmul.f32 %v3013_v15, %v3013_v15 }
 0xf7f   :  { %v3017_v32 = vsel %vm120_vm0, %v3015_v51, 0.0 }
 0xf80   :  { %v3010_v53 = vpop.xlane.xlu1 %3009  ;;  %3018 = vadd.xlane.f32.xlu2 %v3017_v32 }
 0xf81   :  { %v3012_v1 = vmul.f32 %v3010_v53, %v3996_v7 }
 0xf83   :  { %v3014_v2 = vsub.f32 %v3004_v17, %v3012_v1 }
 0xf85   :  { %v3016_v59 = vmul.f32 %v3014_v2, %v3014_v2 }
 0xf87   :  { %v3020_v23 = vsel %vm120_vm0, %v3016_v59, 0.0 }
 0xf88   :  { %3021 = vadd.xlane.f32.xlu0 %v3020_v23 }
 0xff3   :  { %v3019_v4 = vpop.xlane.xlu2 %3018 }
 0xff4   :  { %v3023_v24 = vmul.f32 %v3019_v4, %v3996_v7 }
 0xff6   :  { %v3025_v54 = vadd.f32 1e-05, %v3023_v24 }
 0xff8   :  { %3621 = vrsqrt.f32 %v3025_v54  ;;  %vm3033_vm11 = vweird.f32 %v3025_v54 }
 0xffb   :  { %v3022_v57 = vpop.xlane.xlu0 %3021 }
 0xffc   :  { %v3024_v34 = vmul.f32 %v3022_v57, %v3996_v7 }
 0xffe   :  { %v3622_v21 = vpop.eup %3621  ;;  %v3026_v42 = vadd.f32 1e-05, %v3024_v34 }
 0xfff   :  { %v3028_v36 = vmul.f32 %v3622_v21, %v3025_v54  ;;  %vm3034_vm10 = vweird.f32 %v3622_v21 }
0x1000   :  { %3623 = vrsqrt.f32 %v3026_v42  ;;  %vm3035_vm12 = vmor %vm3033_vm11, %vm3034_vm10  ;;  %vm3043_vm14 = vweird.f32 %v3026_v42 }
0x1001   :  { %v3029_v62 = vmul.f32 %v3622_v21, %v3028_v36 }
0x1003   :  { %v3030_v61 = vmul.f32 0.5, %v3029_v62 }
0x1005   :  { %v3031_v30 = vsub.f32 1.5, %v3030_v61 }
0x1006   :  { %v3624_v26 = vpop.eup %3623 }
0x1007   :  { %v3032_v35 = vmul.f32 %v3622_v21, %v3031_v30  ;;  %v3038_v18 = vmul.f32 %v3624_v26, %v3026_v42  ;;  %vm3044_vm13 = vweird.f32 %v3624_v26 }
0x1008   :  { %vm3045_vm15 = vmor %vm3043_vm14, %vm3044_vm13 }
0x1009   :  { %v3039_v0 = vmul.f32 %v3624_v26, %v3038_v18  ;;  %v3036_v37 = vsel %vm3035_vm12, %v3622_v21, %v3032_v35 }
0x100a   :  { %v3047_v52 = vmul.f32 %v3036_v37, %v3013_v15 }
0x100b   :  { %v3040_v44 = vmul.f32 0.5, %v3039_v0 }
0x100c   :  { %v3052_v31 = vmul.f32 %v3449_v5, %v3047_v52 }
0x100d   :  { %v3041_v28 = vsub.f32 1.5, %v3040_v44 }
0x100e   :  { %v3057_v39 = vadd.f32 %v3450_v50, %v3052_v31 }
0x100f   :  { %v3042_v46 = vmul.f32 %v3624_v26, %v3041_v28 }
0x1011   :  { %v3046_v3 = vsel %vm3045_vm15, %v3624_v26, %v3042_v46  ;;  %v3453_v26 = vld [vmem:[%s4876_s20] ss:$0 sm:$0xff] }
0x1012   :  { %v3048_v9 = vmul.f32 %v3046_v3, %v3014_v2 }
0x1014   :  { %v3053_v45 = vmul.f32 %v3449_v5, %v3048_v9 }
0x1016   :  { %v3058_v29 = vadd.f32 %v3450_v50, %v3053_v45 }
0x1018   :  { %v3059_v43 = vpack.c.bf16 %v3058_v29, %v3057_v39 }
0x101a   :  { %3385 = vmatmul.msk.bf16.vlgmr.msra.gmra.mxu3 %vm120_vm0, %v3059_v43 }
0x109d   :  { %v3092_v11 = vpop.f32.mrf.mxu3 }
0x109e   :  { %v3093_v40 = vadd.f32 %v3451_v19, %v3092_v11 }
0x10a0   :  { %v3097_v55 = vmax.f32 %v3093_v40, 0.0 }
0x10a5   :  { %v3094_v12 = vpop.f32.mrf.mxu3 }
0x10a6   :  { %v3095_v38 = vadd.f32 %v3451_v19, %v3094_v12 }
0x10a8   :  { %v3098_v13 = vmax.f32 %v3095_v38, 0.0 }
0x10aa   :  { %v3099_v22 = vpack.c.bf16 %v3098_v13, %v3097_v55 }
0x10ac   :  { %3402 = vmatmul.msk.bf16.vlgmr.msra.gmra.mxu0 %vm3136_vm3, %v3099_v22 }
0x1129   :  { %v3149_v60 = vpop.f32.mrf.mxu0 }
0x112a   :  { %v3150_v14 = vadd.f32 %v3452_v56, %v3149_v60 }
0x112c   :  { %v3156_v58 = vadd.f32 %v3150_v14, %v3057_v39 }
0x112e   :  { %v3158_v47 = vsel %vm120_vm0, %v3156_v58, 0.0 }
0x112f   :  { %3159 = vadd.xlane.f32.xlu1 %v3158_v47 }
0x1131   :  { %v3151_v6 = vpop.f32.mrf.mxu0 }
0x1132   :  { %v3152_v63 = vadd.f32 %v3452_v56, %v3151_v6 }
0x1134   :  { %v3157_v41 = vadd.f32 %v3152_v63, %v3058_v29 }
0x1136   :  { %v3161_v17 = vsel %vm120_vm0, %v3157_v41, 0.0 }
0x1137   :  { %3162 = vadd.xlane.f32.xlu2 %v3161_v17 }
0x11a2   :  { %v3160_v20 = vpop.xlane.xlu1 %3159 }
0x11a3   :  { %v3164_v48 = vmul.f32 %v3160_v20, %v3996_v7 }
0x11a5   :  { %v3166_v33 = vsub.f32 %v3156_v58, %v3164_v48 }
0x11a7   :  { %v3168_v15 = vmul.f32 %v3166_v33, %v3166_v33 }
0x11a9   :  { %v3170_v51 = vsel %vm120_vm0, %v3168_v15, 0.0 }
0x11aa   :  { %v3163_v32 = vpop.xlane.xlu2 %3162  ;;  %3171 = vadd.xlane.f32.xlu0 %v3170_v51 }
0x11ab   :  { %v3165_v53 = vmul.f32 %v3163_v32, %v3996_v7 }
0x11ad   :  { %v3167_v1 = vsub.f32 %v3157_v41, %v3165_v53 }
0x11af   :  { %v3169_v2 = vmul.f32 %v3167_v1, %v3167_v1 }
0x11b1   :  { %v3173_v59 = vsel %vm120_vm0, %v3169_v2, 0.0 }
0x11b2   :  { %3174 = vadd.xlane.f32.xlu1 %v3173_v59 }
0x121d   :  { %v3172_v23 = vpop.xlane.xlu0 %3171 }
0x121e   :  { %v3176_v4 = vmul.f32 %v3172_v23, %v3996_v7 }
0x1220   :  { %v3178_v24 = vadd.f32 1e-05, %v3176_v4 }
0x1222   :  { %3625 = vrsqrt.f32 %v3178_v24  ;;  %vm3186_vm1 = vweird.f32 %v3178_v24 }
0x1225   :  { %v3175_v54 = vpop.xlane.xlu1 %3174 }
0x1226   :  { %v3177_v25 = vmul.f32 %v3175_v54, %v3996_v7  ;;  %v3454_v7 = vld [vmem:[%s4877_s21] ss:$0 sm:$0xff]  ;;  %s3699_s21 = smov 128  }
0x1228   :  { %v3626_v8 = vpop.eup %3625  ;;  %v3179_v57 = vadd.f32 1e-05, %v3177_v25 }
0x1229   :  { %v3181_v34 = vmul.f32 %v3626_v8, %v3178_v24  ;;  %vm3187_vm4 = vweird.f32 %v3626_v8 }
0x122a   :  { %3627 = vrsqrt.f32 %v3179_v57  ;;  %vm3188_vm2 = vmor %vm3186_vm1, %vm3187_vm4  ;;  %vm3196_vm6 = vweird.f32 %v3179_v57 }
0x122b   :  { %v3182_v21 = vmul.f32 %v3626_v8, %v3181_v34 }
0x122d   :  { %v3183_v42 = vmul.f32 0.5, %v3182_v21 }
0x122f   :  { %v3184_v36 = vsub.f32 1.5, %v3183_v42 }
0x1230   :  { %v3628_v62 = vpop.eup %3627 }
0x1231   :  { %v3185_v61 = vmul.f32 %v3626_v8, %v3184_v36  ;;  %v3191_v30 = vmul.f32 %v3628_v62, %v3179_v57  ;;  %vm3197_vm5 = vweird.f32 %v3628_v62 }
0x1232   :  { %vm3198_vm7 = vmor %vm3196_vm6, %vm3197_vm5 }
0x1233   :  { %v3189_v35 = vsel %vm3188_vm2, %v3626_v8, %v3185_v61  ;;  %v3192_v18 = vmul.f32 %v3628_v62, %v3191_v30 }
0x1234   :  { %v3200_v0 = vmul.f32 %v3189_v35, %v3166_v33 }
0x1235   :  { %v3193_v37 = vmul.f32 0.5, %v3192_v18 }
0x1236   :  { %v3205_v44 = vmul.f32 %v3453_v26, %v3200_v0 }
0x1237   :  { %v3194_v28 = vsub.f32 1.5, %v3193_v37 }
0x1238   :  { %v3210_v5 = vadd.f32 %v3454_v7, %v3205_v44 }
0x1239   :  { %v3195_v52 = vmul.f32 %v3628_v62, %v3194_v28 }
0x123a   :  { %3212 = vst.msk [vmem:[#allocation7] sm:$0xff] %vm120_vm0, %v3210_v5 }
0x123b   :  { %v3199_v46 = vsel %vm3198_vm7, %v3628_v62, %v3195_v52 }
0x123c   :  { %v3201_v3 = vmul.f32 %v3199_v46, %v3167_v1 }
0x123e   :  { %v3206_v50 = vmul.f32 %v3453_v26, %v3201_v3 }
0x1240   :  { %v3211_v31 = vadd.f32 %v3454_v7, %v3206_v50 }
0x1242   :  { %3213 = vst.msk [vmem:[#allocation7 + $0x8] sm:$0xff] %vm120_vm0, %v3211_v31 }
0x1243   :  { %3226 = dma.vmem_to_hbm [thread:$0]  %s3219_s24, 256, %s3221_s1, [#allocation6], %s3699_s21, %s3699_s21, %s4904_s7  }
0x1244   :  { %3679 = dma.done.wait [#allocation6], 256  }
0x1245   :  { %3680 = vsyncadd [#allocation6], 4294967040 }
0x1246   :  { %3231 = vsyncpa [#allocation5], 1 }
0x1247   :  { %3232 = vsyncpa [#allocation6], 1 }

</bundles_post_ra>
